<compile_context>
chip_gen: v6e
topology: v6e:2x2x1
jax: 0.10.0
libtpu: 0.0.40
codegen_flags: <defaults>
</compile_context>

<pallas_src>
import jax
import jax.numpy as jnp
from jax.experimental import pallas as pl
from jax.experimental.pallas import tpu as pltpu

EPS = 1e-9
_LANE = 128


def _make_kernel(H, W):
    Hp, Wp = H + 2, W + 2
    n_el = float(H * W)
    inv_n = 1.0 / n_el
    inv_nm1 = 1.0 / (n_el - 1.0)  # unbiased (ddof=1), matches torch.std

    def grad_mag_sq(scr):
        # scr: zero-padded (Hp, Wp, LB) float32 scratch holding one input.
        x = scr[...]
        # Separable 3x3 gradient stencils (hx / hy weights of GMSDLoss).
        sv = x[0:H] + x[1:H + 1] + x[2:Hp]            # (H, Wp, LB) vertical 3-sum
        gx = sv[:, 0:W] - sv[:, 2:Wp]                 # (H, W, LB)  (1/3 folded below)
        sh = x[:, 0:W] + x[:, 1:W + 1] + x[:, 2:Wp]   # (Hp, W, LB) horizontal 3-sum
        gy = sh[0:H] - sh[2:Hp]                       # (H, W, LB)  (1/3 folded below)
        return (gx * gx + gy * gy) * (1.0 / 9.0)      # |grad|^2

    def kernel(pred_ref, tgt_ref, out_ref, pscr, tscr):
        # Build zero-padded planes in VMEM (conv padding=1). Re-zeroed every
        # step -> no cross-step state.
        pscr[...] = jnp.zeros_like(pscr)
        tscr[...] = jnp.zeros_like(tscr)
        pscr[1:H + 1, 1:W + 1, :] = pred_ref[...].astype(jnp.float32)
        tscr[1:H + 1, 1:W + 1, :] = tgt_ref[...].astype(jnp.float32)

        a2 = grad_mag_sq(pscr)   # md**2
        b2 = grad_mag_sq(tscr)   # mr**2

        # gms = (2*mr*md + eps) / (mr^2 + md^2 + eps), with mr*md = sqrt(a2*b2)
        gms = (2.0 * jnp.sqrt(a2 * b2) + EPS) / (a2 + b2 + EPS)   # (H, W, LB)

        # Per-plane unbiased std over (H, W); lanes = planes.
        mean = jnp.sum(jnp.sum(gms, axis=0), axis=0, keepdims=True) * inv_n   # (1, LB)
        d = gms - mean
        var = jnp.sum(jnp.sum(d * d, axis=0), axis=0, keepdims=True) * inv_nm1  # (1, LB)
        out_ref[...] = jnp.sqrt(var)

    return kernel


def _pick_lane_block(H, W, ncp, itemsize, budget_bytes=12 * 1024 * 1024):
    # Per-lane VMEM estimate: 2 inputs x 2 pipeline buffers, 2 padded f32
    # scratches, ~6 live f32 (H, W) intermediates. Conservative budget keeps
    # us under v5e's 16 MiB default scoped VMEM and v7x's smaller VMEM.
    per_lane = (2 * 2 * H * W * itemsize
                + 2 * (H + 2) * (W + 2) * 4
                + 6 * H * W * 4)
    lb = (budget_bytes // (per_lane * _LANE)) * _LANE
    lb = max(_LANE, min(lb, ncp))
    while ncp % lb:
        lb -= _LANE
    return lb


@jax.jit
def gmsd_loss(pred, target):
    """pred, target: (N, C, H, W). Returns scalar GMSD loss (GMSDLoss.forward)."""
    N, C, H, W = pred.shape
    nc = N * C
    ncp = -(-nc // _LANE) * _LANE                 # planes padded up to lane multiple
    lb = _pick_lane_block(H, W, ncp, jnp.dtype(pred.dtype).itemsize)
    num_blocks = ncp // lb

    def prep(x):
        # (N, C, H, W) -> (H, W, NC): planes on the lane axis. Only the plane
        # axis is padded; padded (all-zero) planes give std == 0 and are
        # sliced off below. Input dtype preserved (cast happens in-kernel).
        x = jnp.transpose(x.reshape(nc, H, W), (1, 2, 0))
        return jnp.pad(x, ((0, 0), (0, 0), (0, ncp - nc)))

    stds = pl.pallas_call(
        _make_kernel(H, W),
        out_shape=jax.ShapeDtypeStruct((1, ncp), jnp.float32),
        grid=(num_blocks,),
        in_specs=[
            pl.BlockSpec((H, W, lb), lambda i: (0, 0, i)),
            pl.BlockSpec((H, W, lb), lambda i: (0, 0, i)),
        ],
        out_specs=pl.BlockSpec((1, lb), lambda i: (0, i)),
        scratch_shapes=[
            pltpu.VMEM((H + 2, W + 2, lb), jnp.float32),
            pltpu.VMEM((H + 2, W + 2, lb), jnp.float32),
        ],
        compiler_params=pltpu.CompilerParams(
            dimension_semantics=("parallel",)),
    )(prep(pred), prep(target))

    return jnp.mean(stds[0, :nc])


def gmsd_loss_ref(pred, target):
    """Pure-JAX reference (mirrors the PyTorch module) for validation."""
    N, C, H, W = pred.shape
    x = pred.reshape(N * C, H, W).astype(jnp.float32)
    y = target.reshape(N * C, H, W).astype(jnp.float32)

    def grads(a):
        ap = jnp.pad(a, ((0, 0), (1, 1), (1, 1)))
        gx = ((ap[:, 0:H, 0:W] - ap[:, 0:H, 2:W + 2]) +
              (ap[:, 1:H + 1, 0:W] - ap[:, 1:H + 1, 2:W + 2]) +
              (ap[:, 2:H + 2, 0:W] - ap[:, 2:H + 2, 2:W + 2])) / 3.0
        gy = ((ap[:, 0:H, 0:W] - ap[:, 2:H + 2, 0:W]) +
              (ap[:, 0:H, 1:W + 1] - ap[:, 2:H + 2, 1:W + 1]) +
              (ap[:, 0:H, 2:W + 2] - ap[:, 2:H + 2, 2:W + 2])) / 3.0
        return gx, gy

    gxp, gyp = grads(x)
    gxt, gyt = grads(y)
    md = jnp.sqrt(gxp ** 2 + gyp ** 2)
    mr = jnp.sqrt(gxt ** 2 + gyt ** 2)
    gms = (2 * mr * md + EPS) / (mr ** 2 + md ** 2 + EPS)
    std = jnp.std(gms, axis=(-2, -1), ddof=1)
    return std.mean()


if __name__ == "__main__":
    key = jax.random.PRNGKey(0)
    k1, k2 = jax.random.split(key)
    # in_channel=3 (groups=in_channel with out_channels=3), small spatial size.
    N, C, H, W = 2, 3, 16, 16
    pred = jax.random.uniform(k1, (N, C, H, W), dtype=jnp.float32)
    target = jax.random.uniform(k2, (N, C, H, W), dtype=jnp.float32)

    out = jax.block_until_ready(gmsd_loss(pred, target))
    ref = jax.block_until_ready(gmsd_loss_ref(pred, target))

    assert jnp.allclose(out, ref, rtol=1e-4, atol=1e-6), (out, ref)
    print("KERNEL_OK")
</pallas_src>

<mosaic_0001>
module attributes {stable_mosaic.version = 11 : i64} {
  func.func @kernel(%arg0: i32, %arg1: memref<16x16x128xf32, #tpu.memory_space<vmem>>, %arg2: memref<16x16x128xf32, #tpu.memory_space<vmem>>, %arg3: memref<1x128xf32, #tpu.memory_space<vmem>>, %arg4: memref<18x18x128xf32, #tpu.memory_space<vmem>>, %arg5: memref<18x18x128xf32, #tpu.memory_space<vmem>>) attributes {dimension_semantics = [#tpu.dimension_semantics<parallel>], iteration_bounds = array<i64: 1>, scalar_prefetch = 0 : i64, scratch_operands = 2 : i64, tpu.core_type = #tpu.core_type<tc>, window_params = [{transform_indices = @transform_0, window_bounds = array<i64: 16, 16, 128>}, {transform_indices = @transform_1, window_bounds = array<i64: 16, 16, 128>}, {transform_indices = @transform_2, window_bounds = array<i64: 1, 128>}]} {
    %cst = arith.constant 0.000000e+00 : f32
    %0 = vector.broadcast %cst : f32 to vector<18x18x128xf32>
    %c0 = arith.constant 0 : index
    %c0_0 = arith.constant 0 : index
    %c0_1 = arith.constant 0 : index
    %1 = vector.load %arg4[%c0, %c0_0, %c0_1] : memref<18x18x128xf32, #tpu.memory_space<vmem>>, vector<18x18x128xf32>
    tpu.vector_store %arg4[%c0, %c0_0, %c0_1], %0 {strides = array<i32>} : memref<18x18x128xf32, #tpu.memory_space<vmem>>, vector<18x18x128xf32>,
    %cst_2 = arith.constant 0.000000e+00 : f32
    %2 = vector.broadcast %cst_2 : f32 to vector<18x18x128xf32>
    %c0_3 = arith.constant 0 : index
    %c0_4 = arith.constant 0 : index
    %c0_5 = arith.constant 0 : index
    %3 = vector.load %arg5[%c0_3, %c0_4, %c0_5] : memref<18x18x128xf32, #tpu.memory_space<vmem>>, vector<18x18x128xf32>
    tpu.vector_store %arg5[%c0_3, %c0_4, %c0_5], %2 {strides = array<i32>} : memref<18x18x128xf32, #tpu.memory_space<vmem>>, vector<18x18x128xf32>,
    %c0_6 = arith.constant 0 : index
    %c0_7 = arith.constant 0 : index
    %c0_8 = arith.constant 0 : index
    %4 = vector.load %arg1[%c0_6, %c0_7, %c0_8] : memref<16x16x128xf32, #tpu.memory_space<vmem>>, vector<16x16x128xf32>
    %c1 = arith.constant 1 : index
    %c1_9 = arith.constant 1 : index
    %c0_10 = arith.constant 0 : index
    %5 = vector.load %arg4[%c1, %c1_9, %c0_10] : memref<18x18x128xf32, #tpu.memory_space<vmem>>, vector<16x16x128xf32>
    tpu.vector_store %arg4[%c1, %c1_9, %c0_10], %4 {strides = array<i32>} : memref<18x18x128xf32, #tpu.memory_space<vmem>>, vector<16x16x128xf32>,
    %c0_11 = arith.constant 0 : index
    %c0_12 = arith.constant 0 : index
    %c0_13 = arith.constant 0 : index
    %6 = vector.load %arg2[%c0_11, %c0_12, %c0_13] : memref<16x16x128xf32, #tpu.memory_space<vmem>>, vector<16x16x128xf32>
    %c1_14 = arith.constant 1 : index
    %c1_15 = arith.constant 1 : index
    %c0_16 = arith.constant 0 : index
    %7 = vector.load %arg5[%c1_14, %c1_15, %c0_16] : memref<18x18x128xf32, #tpu.memory_space<vmem>>, vector<16x16x128xf32>
    tpu.vector_store %arg5[%c1_14, %c1_15, %c0_16], %6 {strides = array<i32>} : memref<18x18x128xf32, #tpu.memory_space<vmem>>, vector<16x16x128xf32>,
    %c0_17 = arith.constant 0 : index
    %c0_18 = arith.constant 0 : index
    %c0_19 = arith.constant 0 : index
    %8 = vector.load %arg4[%c0_17, %c0_18, %c0_19] : memref<18x18x128xf32, #tpu.memory_space<vmem>>, vector<18x18x128xf32>
    %9 = vector.extract_strided_slice %8 {offsets = [0, 0, 0], sizes = [16, 18, 128], strides = [1, 1, 1]} : vector<18x18x128xf32> to vector<16x18x128xf32>
    %10 = vector.extract_strided_slice %8 {offsets = [1, 0, 0], sizes = [16, 18, 128], strides = [1, 1, 1]} : vector<18x18x128xf32> to vector<16x18x128xf32>
    %11 = arith.addf %9, %10 : vector<16x18x128xf32>
    %12 = vector.extract_strided_slice %8 {offsets = [2, 0, 0], sizes = [16, 18, 128], strides = [1, 1, 1]} : vector<18x18x128xf32> to vector<16x18x128xf32>
    %13 = arith.addf %11, %12 : vector<16x18x128xf32>
    %14 = vector.extract_strided_slice %13 {offsets = [0, 0, 0], sizes = [16, 16, 128], strides = [1, 1, 1]} : vector<16x18x128xf32> to vector<16x16x128xf32>
    %15 = vector.extract_strided_slice %13 {offsets = [0, 2, 0], sizes = [16, 16, 128], strides = [1, 1, 1]} : vector<16x18x128xf32> to vector<16x16x128xf32>
    %16 = arith.subf %14, %15 : vector<16x16x128xf32>
    %17 = vector.extract_strided_slice %8 {offsets = [0, 0, 0], sizes = [18, 16, 128], strides = [1, 1, 1]} : vector<18x18x128xf32> to vector<18x16x128xf32>
    %18 = vector.extract_strided_slice %8 {offsets = [0, 1, 0], sizes = [18, 16, 128], strides = [1, 1, 1]} : vector<18x18x128xf32> to vector<18x16x128xf32>
    %19 = arith.addf %17, %18 : vector<18x16x128xf32>
    %20 = vector.extract_strided_slice %8 {offsets = [0, 2, 0], sizes = [18, 16, 128], strides = [1, 1, 1]} : vector<18x18x128xf32> to vector<18x16x128xf32>
    %21 = arith.addf %19, %20 : vector<18x16x128xf32>
    %22 = vector.extract_strided_slice %21 {offsets = [0, 0, 0], sizes = [16, 16, 128], strides = [1, 1, 1]} : vector<18x16x128xf32> to vector<16x16x128xf32>
    %23 = vector.extract_strided_slice %21 {offsets = [2, 0, 0], sizes = [16, 16, 128], strides = [1, 1, 1]} : vector<18x16x128xf32> to vector<16x16x128xf32>
    %24 = arith.subf %22, %23 : vector<16x16x128xf32>
    %25 = arith.mulf %16, %16 : vector<16x16x128xf32>
    %26 = arith.mulf %24, %24 : vector<16x16x128xf32>
    %27 = arith.addf %25, %26 : vector<16x16x128xf32>
    %cst_20 = arith.constant 0.111111112 : f32
    %28 = vector.broadcast %cst_20 : f32 to vector<16x16x128xf32>
    %29 = arith.mulf %27, %28 : vector<16x16x128xf32>
    %c0_21 = arith.constant 0 : index
    %c0_22 = arith.constant 0 : index
    %c0_23 = arith.constant 0 : index
    %30 = vector.load %arg5[%c0_21, %c0_22, %c0_23] : memref<18x18x128xf32, #tpu.memory_space<vmem>>, vector<18x18x128xf32>
    %31 = vector.extract_strided_slice %30 {offsets = [0, 0, 0], sizes = [16, 18, 128], strides = [1, 1, 1]} : vector<18x18x128xf32> to vector<16x18x128xf32>
    %32 = vector.extract_strided_slice %30 {offsets = [1, 0, 0], sizes = [16, 18, 128], strides = [1, 1, 1]} : vector<18x18x128xf32> to vector<16x18x128xf32>
    %33 = arith.addf %31, %32 : vector<16x18x128xf32>
    %34 = vector.extract_strided_slice %30 {offsets = [2, 0, 0], sizes = [16, 18, 128], strides = [1, 1, 1]} : vector<18x18x128xf32> to vector<16x18x128xf32>
    %35 = arith.addf %33, %34 : vector<16x18x128xf32>
    %36 = vector.extract_strided_slice %35 {offsets = [0, 0, 0], sizes = [16, 16, 128], strides = [1, 1, 1]} : vector<16x18x128xf32> to vector<16x16x128xf32>
    %37 = vector.extract_strided_slice %35 {offsets = [0, 2, 0], sizes = [16, 16, 128], strides = [1, 1, 1]} : vector<16x18x128xf32> to vector<16x16x128xf32>
    %38 = arith.subf %36, %37 : vector<16x16x128xf32>
    %39 = vector.extract_strided_slice %30 {offsets = [0, 0, 0], sizes = [18, 16, 128], strides = [1, 1, 1]} : vector<18x18x128xf32> to vector<18x16x128xf32>
    %40 = vector.extract_strided_slice %30 {offsets = [0, 1, 0], sizes = [18, 16, 128], strides = [1, 1, 1]} : vector<18x18x128xf32> to vector<18x16x128xf32>
    %41 = arith.addf %39, %40 : vector<18x16x128xf32>
    %42 = vector.extract_strided_slice %30 {offsets = [0, 2, 0], sizes = [18, 16, 128], strides = [1, 1, 1]} : vector<18x18x128xf32> to vector<18x16x128xf32>
    %43 = arith.addf %41, %42 : vector<18x16x128xf32>
    %44 = vector.extract_strided_slice %43 {offsets = [0, 0, 0], sizes = [16, 16, 128], strides = [1, 1, 1]} : vector<18x16x128xf32> to vector<16x16x128xf32>
    %45 = vector.extract_strided_slice %43 {offsets = [2, 0, 0], sizes = [16, 16, 128], strides = [1, 1, 1]} : vector<18x16x128xf32> to vector<16x16x128xf32>
    %46 = arith.subf %44, %45 : vector<16x16x128xf32>
    %47 = arith.mulf %38, %38 : vector<16x16x128xf32>
    %48 = arith.mulf %46, %46 : vector<16x16x128xf32>
    %49 = arith.addf %47, %48 : vector<16x16x128xf32>
    %cst_24 = arith.constant 0.111111112 : f32
    %50 = vector.broadcast %cst_24 : f32 to vector<16x16x128xf32>
    %51 = arith.mulf %49, %50 : vector<16x16x128xf32>
    %52 = arith.mulf %29, %51 : vector<16x16x128xf32>
    %53 = math.sqrt %52 : vector<16x16x128xf32>
    %cst_25 = arith.constant 2.000000e+00 : f32
    %54 = vector.broadcast %cst_25 : f32 to vector<16x16x128xf32>
    %55 = arith.mulf %54, %53 : vector<16x16x128xf32>
    %cst_26 = arith.constant 9.99999971E-10 : f32
    %56 = vector.broadcast %cst_26 : f32 to vector<16x16x128xf32>
    %57 = arith.addf %55, %56 : vector<16x16x128xf32>
    %58 = arith.addf %29, %51 : vector<16x16x128xf32>
    %cst_27 = arith.constant 9.99999971E-10 : f32
    %59 = vector.broadcast %cst_27 : f32 to vector<16x16x128xf32>
    %60 = arith.addf %58, %59 : vector<16x16x128xf32>
    %61 = arith.divf %57, %60 : vector<16x16x128xf32>
    %cst_28 = arith.constant dense<0.000000e+00> : vector<16x128xf32>
    %62 = vector.multi_reduction <add>, %61, %cst_28 [0] : vector<16x16x128xf32> to vector<16x128xf32>
    %cst_29 = arith.constant dense<0.000000e+00> : vector<128xf32>
    %63 = vector.multi_reduction <add>, %62, %cst_29 [0] : vector<16x128xf32> to vector<128xf32>
    %64 = vector.shape_cast %63 : vector<128xf32> to vector<1x128xf32>
    %cst_30 = arith.constant 3.906250e-03 : f32
    %65 = vector.broadcast %cst_30 : f32 to vector<1x128xf32>
    %66 = arith.mulf %64, %65 : vector<1x128xf32>
    %67 = vector.shape_cast %66 : vector<1x128xf32> to vector<1x1x128xf32>
    %68 = vector.broadcast %67 : vector<1x1x128xf32> to vector<16x16x128xf32>
    %69 = arith.subf %61, %68 : vector<16x16x128xf32>
    %70 = arith.mulf %69, %69 : vector<16x16x128xf32>
    %cst_31 = arith.constant dense<0.000000e+00> : vector<16x128xf32>
    %71 = vector.multi_reduction <add>, %70, %cst_31 [0] : vector<16x16x128xf32> to vector<16x128xf32>
    %cst_32 = arith.constant dense<0.000000e+00> : vector<128xf32>
    %72 = vector.multi_reduction <add>, %71, %cst_32 [0] : vector<16x128xf32> to vector<128xf32>
    %73 = vector.shape_cast %72 : vector<128xf32> to vector<1x128xf32>
    %cst_33 = arith.constant 0.00392156886 : f32
    %74 = vector.broadcast %cst_33 : f32 to vector<1x128xf32>
    %75 = arith.mulf %73, %74 : vector<1x128xf32>
    %76 = math.sqrt %75 : vector<1x128xf32>
    %c0_34 = arith.constant 0 : index
    %c0_35 = arith.constant 0 : index
    %77 = vector.load %arg3[%c0_34, %c0_35] : memref<1x128xf32, #tpu.memory_space<vmem>>, vector<1x128xf32>
    tpu.vector_store %arg3[%c0_34, %c0_35], %76 {strides = array<i32>} : memref<1x128xf32, #tpu.memory_space<vmem>>, vector<1x128xf32>,
    return
  }
  func.func @transform_0(%arg0: i32) -> (i32, i32, i32) {
    %c0_i32 = arith.constant 0 : i32
    %c0_i32_0 = arith.constant 0 : i32
    %c0_i32_1 = arith.constant 0 : i32
    return %c0_i32, %c0_i32_0, %arg0 : i32, i32, i32
  }
  func.func @transform_1(%arg0: i32) -> (i32, i32, i32) {
    %c0_i32 = arith.constant 0 : i32
    %c0_i32_0 = arith.constant 0 : i32
    %c0_i32_1 = arith.constant 0 : i32
    return %c0_i32, %c0_i32_0, %arg0 : i32, i32, i32
  }
  func.func @transform_2(%arg0: i32) -> (i32, i32) {
    %c0_i32 = arith.constant 0 : i32
    %c0_i32_0 = arith.constant 0 : i32
    return %c0_i32, %arg0 : i32, i32
  }
}

</mosaic_0001>

<bundles_post_ra>
// kernel: gmsd_loss.1
= control target key start
LH: loop header
LB: loop body
LE: loop exit
PB: predicated region body
PF: predicated region fallthrough
CT: control target
= control target key end

     0   :  { %v2753_v0 = vmov 0.0   ;;  %vm646_vm0 = vcmask 1046528   ;;  %vm447_vm1 = vcmask 1045504   ;;  %s5174_s0 = inlined_call_operand.vmem [shape: f32[16,16,128], index: 0, kind: input, shape index: {}]   ;;  %s5175_s1 = inlined_call_operand.vmem [shape: f32[16,16,128], index: 1, kind: input, shape index: {}]   ;;  %s5176_s2 = inlined_call_operand.vmem [shape: f32[1,128], index: 2, kind: output, shape index: {}]  }
   0x1   :  { %11 = vst [vmem:[#allocation2] sm:$0xff] %v2753_v0  ;;  %13 = vst [vmem:[#allocation2 + $0x10] sm:$0x3] %v2753_v0  ;;  %v119_v1 = vld [vmem:[%s5174_s0] sm:$0xff]  ;;  %v120_v2 = vld [vmem:[%s5174_s0 + $0x8] sm:$0xff]  ;;  %v2934_v22 = vrot.slane %v2753_v0, 1 }
   0x2   :  { %14 = vst [vmem:[#allocation2 + $0x18] sm:$0xff] %v2753_v0  ;;  %15 = vst [vmem:[#allocation2 + $0x20] sm:$0xff] %v2753_v0  ;;  %v121_v3 = vld [vmem:[%s5174_s0 + $0x10] sm:$0xff]  ;;  %v122_v4 = vld [vmem:[%s5174_s0 + $0x18] sm:$0xff]  ;;  %v2986_v41 = vrot.slane %v2753_v0, 2 }
   0x3   :  { %16 = vst [vmem:[#allocation2 + $0x28] sm:$0x3] %v2753_v0  ;;  %17 = vst [vmem:[#allocation2 + $0x30] sm:$0xff] %v2753_v0  ;;  %v123_v5 = vld [vmem:[%s5174_s0 + $0x20] sm:$0xff]  ;;  %v124_v6 = vld [vmem:[%s5174_s0 + $0x28] sm:$0xff] }
   0x4   :  { %18 = vst [vmem:[#allocation2 + $0x38] sm:$0xff] %v2753_v0  ;;  %19 = vst [vmem:[#allocation2 + $0x40] sm:$0x3] %v2753_v0  ;;  %v125_v7 = vld [vmem:[%s5174_s0 + $0x30] sm:$0xff]  ;;  %v126_v8 = vld [vmem:[%s5174_s0 + $0x38] sm:$0xff]  ;;  %v3006_v56 = vadd.f32 %v2986_v41, %v2934_v22 }
   0x5   :  { %20 = vst [vmem:[#allocation2 + $0x48] sm:$0xff] %v2753_v0  ;;  %21 = vst [vmem:[#allocation2 + $0x50] sm:$0xff] %v2753_v0  ;;  %v127_v9 = vld [vmem:[%s5174_s0 + $0x40] sm:$0xff]  ;;  %v128_v10 = vld [vmem:[%s5174_s0 + $0x48] sm:$0xff] }
   0x6   :  { %22 = vst [vmem:[#allocation2 + $0x58] sm:$0x3] %v2753_v0  ;;  %23 = vst [vmem:[#allocation2 + $0x60] sm:$0xff] %v2753_v0  ;;  %v129_v11 = vld [vmem:[%s5174_s0 + $0x50] sm:$0xff]  ;;  %v130_v12 = vld [vmem:[%s5174_s0 + $0x58] sm:$0xff] }
   0x7   :  { %24 = vst [vmem:[#allocation2 + $0x68] sm:$0xff] %v2753_v0  ;;  %25 = vst [vmem:[#allocation2 + $0x70] sm:$0x3] %v2753_v0  ;;  %v131_v13 = vld [vmem:[%s5174_s0 + $0x60] sm:$0xff]  ;;  %v132_v14 = vld [vmem:[%s5174_s0 + $0x68] sm:$0xff] }
   0x8   :  { %26 = vst [vmem:[#allocation2 + $0x78] sm:$0xff] %v2753_v0  ;;  %27 = vst [vmem:[#allocation2 + $0x80] sm:$0xff] %v2753_v0  ;;  %v133_v15 = vld [vmem:[%s5174_s0 + $0x70] sm:$0xff]  ;;  %v134_v16 = vld [vmem:[%s5174_s0 + $0x78] sm:$0xff] }
   0x9   :  { %28 = vst [vmem:[#allocation2 + $0x88] sm:$0x3] %v2753_v0  ;;  %29 = vst [vmem:[#allocation2 + $0x90] sm:$0xff] %v2753_v0  ;;  %v135_v17 = vld [vmem:[%s5174_s0 + $0x80] sm:$0xff]  ;;  %v136_v18 = vld [vmem:[%s5174_s0 + $0x88] sm:$0xff] }
   0xa   :  { %30 = vst [vmem:[#allocation2 + $0x98] sm:$0xff] %v2753_v0  ;;  %31 = vst [vmem:[#allocation2 + $0xa0] sm:$0x3] %v2753_v0  ;;  %v137_v19 = vld [vmem:[%s5174_s0 + $0x90] sm:$0xff]  ;;  %v138_v20 = vld [vmem:[%s5174_s0 + $0x98] sm:$0xff] }
   0xb   :  { %32 = vst [vmem:[#allocation2 + $0xa8] sm:$0xff] %v2753_v0  ;;  %33 = vst [vmem:[#allocation2 + $0xb0] sm:$0xff] %v2753_v0  ;;  %v139_v21 = vld [vmem:[%s5174_s0 + $0xa0] sm:$0xff]  ;;  %v140_v23 = vld [vmem:[%s5174_s0 + $0xa8] sm:$0xff] }
   0xc   :  { %34 = vst [vmem:[#allocation2 + $0xb8] sm:$0x3] %v2753_v0  ;;  %35 = vst [vmem:[#allocation2 + $0xc0] sm:$0xff] %v2753_v0  ;;  %v141_v24 = vld [vmem:[%s5174_s0 + $0xb0] sm:$0xff]  ;;  %v142_v25 = vld [vmem:[%s5174_s0 + $0xb8] sm:$0xff] }
   0xd   :  { %36 = vst [vmem:[#allocation2 + $0xc8] sm:$0xff] %v2753_v0  ;;  %37 = vst [vmem:[#allocation2 + $0xd0] sm:$0x3] %v2753_v0  ;;  %v143_v26 = vld [vmem:[%s5174_s0 + $0xc0] sm:$0xff]  ;;  %v144_v27 = vld [vmem:[%s5174_s0 + $0xc8] sm:$0xff] }
   0xe   :  { %38 = vst [vmem:[#allocation2 + $0xd8] sm:$0xff] %v2753_v0  ;;  %39 = vst [vmem:[#allocation2 + $0xe0] sm:$0xff] %v2753_v0  ;;  %v251_v28 = vld [vmem:[#allocation2 + $0x10] sm:$0x3]  ;;  %v146_v30 = vld [vmem:[%s5174_s0 + $0xd8] sm:$0xff] }
   0xf   :  { %40 = vst [vmem:[#allocation2 + $0xe8] sm:$0x3] %v2753_v0  ;;  %41 = vst [vmem:[#allocation2 + $0xf0] sm:$0xff] %v2753_v0  ;;  %v145_v29 = vld [vmem:[%s5174_s0 + $0xd0] sm:$0xff]  ;;  %v147_v31 = vld [vmem:[%s5174_s0 + $0xe0] sm:$0xff]  ;;  %v650_v43 = vrot.slane %v251_v28, 1 }
  0x10   :  { %42 = vst [vmem:[#allocation2 + $0xf8] sm:$0xff] %v2753_v0  ;;  %43 = vst [vmem:[#allocation2 + $0x100] sm:$0x3] %v2753_v0  ;;  %v148_v32 = vld [vmem:[%s5174_s0 + $0xe8] sm:$0xff]  ;;  %v184_v33 = vld [vmem:[%s5175_s1] sm:$0xff]  ;;  %v812_v50 = vrot.slane %v251_v28, 2 }
  0x11   :  { %44 = vst [vmem:[#allocation2 + $0x108] sm:$0xff] %v2753_v0  ;;  %45 = vst [vmem:[#allocation2 + $0x110] sm:$0xff] %v2753_v0  ;;  %v185_v34 = vld [vmem:[%s5175_s1 + $0x8] sm:$0xff]  ;;  %v186_v35 = vld [vmem:[%s5175_s1 + $0x10] sm:$0xff]  ;;  %v651_v55 = vsel %vm646_vm0, %v2934_v22, %v650_v43 }
  0x12   :  { %46 = vst [vmem:[#allocation2 + $0x118] sm:$0x3] %v2753_v0  ;;  %47 = vst [vmem:[#allocation2 + $0x120] sm:$0xff] %v2753_v0  ;;  %v187_v36 = vld [vmem:[%s5175_s1 + $0x18] sm:$0xff]  ;;  %v188_v37 = vld [vmem:[%s5175_s1 + $0x20] sm:$0xff] }
  0x13   :  { %48 = vst [vmem:[#allocation2 + $0x128] sm:$0xff] %v2753_v0  ;;  %49 = vst [vmem:[#allocation2 + $0x130] sm:$0x3] %v2753_v0  ;;  %v189_v40 = vld [vmem:[%s5175_s1 + $0x28] sm:$0xff] }
  0x14   :  { %50 = vst [vmem:[#allocation2 + $0x138] sm:$0xff] %v2753_v0  ;;  %51 = vst [vmem:[#allocation2 + $0x140] sm:$0xff] %v2753_v0 }
  0x15   :  { %52 = vst [vmem:[#allocation2 + $0x148] sm:$0x3] %v2753_v0  ;;  %53 = vst [vmem:[#allocation2 + $0x150] sm:$0xff] %v2753_v0 }
  0x16   :  { %54 = vst [vmem:[#allocation2 + $0x158] sm:$0xff] %v2753_v0  ;;  %55 = vst [vmem:[#allocation2 + $0x160] sm:$0x3] %v2753_v0 }
  0x17   :  { %56 = vst [vmem:[#allocation2 + $0x168] sm:$0xff] %v2753_v0  ;;  %57 = vst [vmem:[#allocation2 + $0x170] sm:$0xff] %v2753_v0 }
  0x18   :  { %58 = vst [vmem:[#allocation2 + $0x178] sm:$0x3] %v2753_v0  ;;  %59 = vst [vmem:[#allocation2 + $0x180] sm:$0xff] %v2753_v0 }
  0x19   :  { %60 = vst [vmem:[#allocation2 + $0x188] sm:$0xff] %v2753_v0  ;;  %61 = vst [vmem:[#allocation2 + $0x190] sm:$0x3] %v2753_v0 }
  0x1a   :  { %64 = vst [vmem:[#allocation2 + $0x1a8] sm:$0x3] %v2753_v0  ;;  %67 = vst [vmem:[#allocation3 + $0x10] sm:$0x3] %v2753_v0 }
  0x1b   :  { %68 = vst [vmem:[#allocation3 + $0x18] sm:$0xff] %v2753_v0  ;;  %69 = vst [vmem:[#allocation3 + $0x20] sm:$0xff] %v2753_v0 }
  0x1c   :  { %70 = vst [vmem:[#allocation3 + $0x28] sm:$0x3] %v2753_v0  ;;  %71 = vst [vmem:[#allocation3 + $0x30] sm:$0xff] %v2753_v0 }
  0x1d   :  { %72 = vst [vmem:[#allocation3 + $0x38] sm:$0xff] %v2753_v0  ;;  %73 = vst [vmem:[#allocation3 + $0x40] sm:$0x3] %v2753_v0 }
  0x1e   :  { %74 = vst [vmem:[#allocation3 + $0x48] sm:$0xff] %v2753_v0  ;;  %75 = vst [vmem:[#allocation3 + $0x50] sm:$0xff] %v2753_v0 }
  0x1f   :  { %76 = vst [vmem:[#allocation3 + $0x58] sm:$0x3] %v2753_v0  ;;  %77 = vst [vmem:[#allocation3 + $0x60] sm:$0xff] %v2753_v0 }
  0x20   :  { %78 = vst [vmem:[#allocation3 + $0x68] sm:$0xff] %v2753_v0  ;;  %79 = vst [vmem:[#allocation3 + $0x70] sm:$0x3] %v2753_v0 }
  0x21   :  { %80 = vst [vmem:[#allocation3 + $0x78] sm:$0xff] %v2753_v0  ;;  %81 = vst [vmem:[#allocation3 + $0x80] sm:$0xff] %v2753_v0  ;;  %v302_v42 = vld [vmem:[#allocation2 + $0x1a8] sm:$0x3]  ;;  %v2992_v46 = vld [vmem:[#allocation3 + $0x10] sm:$0x3] }
  0x22   :  { %82 = vst [vmem:[#allocation3 + $0x88] sm:$0x3] %v2753_v0  ;;  %83 = vst [vmem:[#allocation3 + $0x90] sm:$0xff] %v2753_v0  ;;  %v735_v47 = vrot.slane %v302_v42, 1  ;;  %v897_v51 = vrot.slane %v302_v42, 2  ;;  %v1530_v57 = vrot.slane %v2992_v46, 1 }
  0x23   :  { %84 = vst [vmem:[#allocation3 + $0x98] sm:$0xff] %v2753_v0  ;;  %85 = vst [vmem:[#allocation3 + $0xa0] sm:$0x3] %v2753_v0  ;;  %v1692_v63 = vrot.slane %v2992_v46, 2 }
  0x24   :  { %86 = vst [vmem:[#allocation3 + $0xa8] sm:$0xff] %v2753_v0  ;;  %87 = vst [vmem:[#allocation3 + $0xb0] sm:$0xff] %v2753_v0  ;;  %v3019_v62 = vsel %vm646_vm0, %v2934_v22, %v735_v47 }
  0x25   :  { %88 = vst [vmem:[#allocation3 + $0xb8] sm:$0x3] %v2753_v0  ;;  %89 = vst [vmem:[#allocation3 + $0xc0] sm:$0xff] %v2753_v0 }
  0x26   :  { %90 = vst [vmem:[#allocation3 + $0xc8] sm:$0xff] %v2753_v0  ;;  %91 = vst [vmem:[#allocation3 + $0xd0] sm:$0x3] %v2753_v0 }
  0x27   :  { %92 = vst [vmem:[#allocation3 + $0xd8] sm:$0xff] %v2753_v0  ;;  %93 = vst [vmem:[#allocation3 + $0xe0] sm:$0xff] %v2753_v0 }
  0x28   :  { %94 = vst [vmem:[#allocation3 + $0xe8] sm:$0x3] %v2753_v0  ;;  %95 = vst [vmem:[#allocation3 + $0xf0] sm:$0xff] %v2753_v0 }
  0x29   :  { %96 = vst [vmem:[#allocation3 + $0xf8] sm:$0xff] %v2753_v0  ;;  %97 = vst [vmem:[#allocation3 + $0x100] sm:$0x3] %v2753_v0 }
  0x2a   :  { %98 = vst [vmem:[#allocation3 + $0x108] sm:$0xff] %v2753_v0  ;;  %99 = vst [vmem:[#allocation3 + $0x110] sm:$0xff] %v2753_v0 }
  0x2b   :  { %100 = vst [vmem:[#allocation3 + $0x118] sm:$0x3] %v2753_v0  ;;  %101 = vst [vmem:[#allocation3 + $0x120] sm:$0xff] %v2753_v0 }
  0x2c   :  { %102 = vst [vmem:[#allocation3 + $0x128] sm:$0xff] %v2753_v0  ;;  %103 = vst [vmem:[#allocation3 + $0x130] sm:$0x3] %v2753_v0 }
  0x2d   :  { %104 = vst [vmem:[#allocation3 + $0x138] sm:$0xff] %v2753_v0  ;;  %105 = vst [vmem:[#allocation3 + $0x140] sm:$0xff] %v2753_v0 }
  0x2e   :  { %106 = vst [vmem:[#allocation3 + $0x148] sm:$0x3] %v2753_v0  ;;  %107 = vst [vmem:[#allocation3 + $0x150] sm:$0xff] %v2753_v0 }
  0x2f   :  { %108 = vst [vmem:[#allocation3 + $0x158] sm:$0xff] %v2753_v0  ;;  %109 = vst [vmem:[#allocation3 + $0x160] sm:$0x3] %v2753_v0 }
  0x30   :  { %110 = vst [vmem:[#allocation3 + $0x168] sm:$0xff] %v2753_v0  ;;  %111 = vst [vmem:[#allocation3 + $0x170] sm:$0xff] %v2753_v0 }
  0x31   :  { %112 = vst [vmem:[#allocation3 + $0x178] sm:$0x3] %v2753_v0  ;;  %113 = vst [vmem:[#allocation3 + $0x180] sm:$0xff] %v2753_v0 }
  0x32   :  { %114 = vst [vmem:[#allocation3 + $0x188] sm:$0xff] %v2753_v0  ;;  %115 = vst [vmem:[#allocation3 + $0x190] sm:$0x3] %v2753_v0 }
  0x33   :  { %118 = vst [vmem:[#allocation3 + $0x1a8] sm:$0x3] %v2753_v0  ;;  %152 = vst [vmem:[#allocation2 + $0x19] sm:$0xff] %v119_v1 }
  0x34   :  { %153 = vst [vmem:[#allocation2 + $0x21] sm:$0xff] %v120_v2  ;;  %154 = vst [vmem:[#allocation2 + $0x31] sm:$0xff] %v121_v3  ;;  %v813_v2 = vsel %vm447_vm1, %v2986_v41, %v812_v50  ;;  %v3028_v3 = vsel %vm447_vm1, %v2986_v41, %v897_v51 }
  0x35   :  { %155 = vst [vmem:[#allocation2 + $0x39] sm:$0xff] %v122_v4  ;;  %156 = vst [vmem:[#allocation2 + $0x49] sm:$0xff] %v123_v5  ;;  %v936_v43 = vadd.f32 %v813_v2, %v651_v55 }
  0x36   :  { %157 = vst [vmem:[#allocation2 + $0x51] sm:$0xff] %v124_v6  ;;  %158 = vst [vmem:[#allocation2 + $0x61] sm:$0xff] %v125_v7 }
  0x37   :  { %159 = vst [vmem:[#allocation2 + $0x69] sm:$0xff] %v126_v8  ;;  %160 = vst [vmem:[#allocation2 + $0x79] sm:$0xff] %v127_v9 }
  0x38   :  { %161 = vst [vmem:[#allocation2 + $0x81] sm:$0xff] %v128_v10  ;;  %162 = vst [vmem:[#allocation2 + $0x91] sm:$0xff] %v129_v11 }
  0x39   :  { %163 = vst [vmem:[#allocation2 + $0x99] sm:$0xff] %v130_v12  ;;  %164 = vst [vmem:[#allocation2 + $0xa9] sm:$0xff] %v131_v13  ;;  %v190_v13 = vld [vmem:[%s5175_s1 + $0x30] sm:$0xff] }
  0x3a   :  { %165 = vst [vmem:[#allocation2 + $0xb1] sm:$0xff] %v132_v14  ;;  %166 = vst [vmem:[#allocation2 + $0xc1] sm:$0xff] %v133_v15  ;;  %v2978_v38 = vld [vmem:[#allocation2 + $0x18] sm:$0xff]  ;;  %v3046_v15 = vsel %vm646_vm0, %v2934_v22, %v1530_v57 }
  0x3b   :  { %167 = vst [vmem:[#allocation2 + $0xc9] sm:$0xff] %v134_v16  ;;  %168 = vst [vmem:[#allocation2 + $0xd9] sm:$0xff] %v135_v17  ;;  %v2980_v39 = vld [vmem:[#allocation2 + $0x20] sm:$0xff]  ;;  %v2988_v44 = vld [vmem:[#allocation2 + $0x30] sm:$0xff]  ;;  %v652_v5 = vrot.slane %v2978_v38, 1 }
  0x3c   :  { %169 = vst [vmem:[#allocation2 + $0xe1] sm:$0xff] %v136_v18  ;;  %170 = vst [vmem:[#allocation2 + $0xf1] sm:$0xff] %v137_v19  ;;  %v2990_v45 = vld [vmem:[#allocation2 + $0x38] sm:$0xff]  ;;  %v2996_v49 = vld [vmem:[#allocation2 + $0x28] sm:$0x3]  ;;  %v657_v52 = vrot.slane %v2988_v44, 1  ;;  %v351_v60 = vadd.f32 %v2988_v44, %v2978_v38 }
  0x3d   :  { %171 = vst [vmem:[#allocation2 + $0xf9] sm:$0xff] %v138_v20  ;;  %172 = vst [vmem:[#allocation2 + $0x109] sm:$0xff] %v139_v21  ;;  %v2994_v48 = vld [vmem:[#allocation3 + $0x1a8] sm:$0x3]  ;;  %v2999_v53 = vld [vmem:[#allocation2 + $0x40] sm:$0x3]  ;;  %v305_v59 = vadd.f32 %v2996_v49, %v251_v28  ;;  %v3015_v61 = vadd.f32 %v2990_v45, %v2980_v39 }
  0x3e   :  { %173 = vst [vmem:[#allocation2 + $0x111] sm:$0xff] %v140_v23  ;;  %174 = vst [vmem:[#allocation2 + $0x121] sm:$0xff] %v141_v24  ;;  %v658_v54 = vrot.slane %v2990_v45, 1  ;;  %v1615_v58 = vrot.slane %v2994_v48, 1  ;;  %v1777_v0 = vrot.slane %v2994_v48, 2  ;;  %v660_v1 = vrot.slane %v2999_v53, 1 }
  0x3f   :  { %175 = vst [vmem:[#allocation2 + $0x129] sm:$0xff] %v142_v25  ;;  %176 = vst [vmem:[#allocation2 + $0x139] sm:$0xff] %v143_v26  ;;  %v653_v6 = vrot.slane %v2980_v39, 1  ;;  %v655_v7 = vrot.slane %v2996_v49, 1  ;;  %v819_v8 = vrot.slane %v2988_v44, 2  ;;  %v448_v9 = vrot.slane %v351_v60, 2 }
  0x40   :  { %177 = vst [vmem:[#allocation2 + $0x141] sm:$0xff] %v144_v27  ;;  %178 = vst [vmem:[#allocation2 + $0x151] sm:$0xff] %v145_v29  ;;  %v659_v4 = vsel %vm646_vm0, %v657_v52, %v658_v54  ;;  %v353_v10 = vadd.f32 %v305_v59, %v2999_v53  ;;  %v449_v11 = vrot.slane %v3015_v61, 2  ;;  %v820_v12 = vrot.slane %v2990_v45, 2  ;;  %v191_v14 = vld [vmem:[%s5175_s1 + $0x38] sm:$0xff]  ;;  %v3052_v20 = vld [vmem:[#allocation2 + $0x48] sm:$0xff] }
  0x41   :  { %179 = vst [vmem:[#allocation2 + $0x159] sm:$0xff] %v146_v30  ;;  %180 = vst [vmem:[#allocation2 + $0x169] sm:$0xff] %v147_v31  ;;  %v661_v16 = vsel %vm646_vm0, %v658_v54, %v660_v1  ;;  %v777_v17 = vadd.f32 %v659_v4, %v2988_v44  ;;  %v814_v18 = vrot.slane %v2978_v38, 2  ;;  %v815_v19 = vrot.slane %v2980_v39, 2  ;;  %v3054_v21 = vld [vmem:[#allocation2 + $0x50] sm:$0xff]  ;;  %v192_v52 = vld [vmem:[%s5175_s1 + $0x40] sm:$0xff] }
  0x42   :  { %181 = vst [vmem:[#allocation2 + $0x171] sm:$0xff] %v148_v32  ;;  %217 = vst [vmem:[#allocation3 + $0x19] sm:$0xff] %v184_v33  ;;  %v3056_v23 = vld [vmem:[#allocation2 + $0x58] sm:$0x3]  ;;  %v654_v24 = vsel %vm646_vm0, %v652_v5, %v653_v6  ;;  %v656_v25 = vsel %vm646_vm0, %v653_v6, %v655_v7  ;;  %v308_v26 = vadd.f32 %v2999_v53, %v2996_v49  ;;  %v822_v27 = vrot.slane %v2999_v53, 2 }
  0x43   :  { %218 = vst [vmem:[#allocation3 + $0x21] sm:$0xff] %v185_v34  ;;  %219 = vst [vmem:[#allocation3 + $0x31] sm:$0xff] %v186_v35  ;;  %v450_v28 = vsel %vm447_vm1, %v448_v9, %v449_v11  ;;  %v451_v29 = vrot.slane %v353_v10, 2  ;;  %v778_v30 = vadd.f32 %v661_v16, %v2990_v45  ;;  %v821_v31 = vsel %vm447_vm1, %v819_v8, %v820_v12 }
  0x44   :  { %220 = vst [vmem:[#allocation3 + $0x39] sm:$0xff] %v187_v36  ;;  %221 = vst [vmem:[#allocation3 + $0x49] sm:$0xff] %v188_v37  ;;  %v3066_v32 = vadd.f32 %v821_v31, %v777_v17  ;;  %v662_v33 = vrot.slane %v3052_v20, 1  ;;  %v663_v34 = vrot.slane %v3054_v21, 1  ;;  %v665_v35 = vrot.slane %v3056_v23, 1 }
  0x45   :  { %222 = vst [vmem:[#allocation3 + $0x51] sm:$0xff] %v189_v40  ;;  %5227 = vst [vmem:[#allocation4_spill] sm:$0xff] %v3006_v56  ;;  %v3073_v36 = vsel %vm646_vm0, %v2934_v22, %v1615_v58  ;;  %v817_v37 = vrot.slane %v2996_v49, 2  ;;  %v354_v40 = vadd.f32 %v351_v60, %v3052_v20  ;;  %v355_v42 = vadd.f32 %v3015_v61, %v3054_v21 }
  0x46   :  { %223 = vst [vmem:[#allocation3 + $0x61] sm:$0xff] %v190_v13  ;;  %224 = vst [vmem:[#allocation3 + $0x69] sm:$0xff] %v191_v14  ;;  %v775_v47 = vadd.f32 %v654_v24, %v2978_v38  ;;  %v816_v50 = vsel %vm447_vm1, %v814_v18, %v815_v19  ;;  %v823_v51 = vsel %vm447_vm1, %v820_v12, %v822_v27  ;;  %v825_v6 = vrot.slane %v3054_v21, 2  ;;  %v3112_v18 = vld [vmem:[#allocation2 + $0x60] sm:$0xff] }
  0x47   :  { %v776_v22 = vadd.f32 %v656_v25, %v2980_v39  ;;  %v452_v49 = vsel %vm447_vm1, %v449_v11, %v451_v29  ;;  %v560_v54 = vsub.f32 %v351_v60, %v450_v28  ;;  %v3087_v57 = vadd.f32 %v823_v51, %v778_v30  ;;  %225 = vst [vmem:[#allocation3 + $0x79] sm:$0xff] %v192_v52  ;;  %v193_v11 = vld [vmem:[%s5175_s1 + $0x48] sm:$0xff]  ;;  %v194_v51 = vld [vmem:[%s5175_s1 + $0x50] sm:$0xff] }
  0x48   :  { %v971_v55 = vsub.f32 %v3006_v56, %v3066_v32  ;;  %v356_v38 = vadd.f32 %v308_v26, %v3056_v23  ;;  %v664_v58 = vsel %vm646_vm0, %v662_v33, %v663_v34  ;;  %v666_v59 = vsel %vm646_vm0, %v663_v34, %v665_v35  ;;  %226 = vst [vmem:[#allocation3 + $0x81] sm:$0xff] %v193_v11  ;;  %v3119_v26 = vld [vmem:[#allocation2 + $0x70] sm:$0x3] }
  0x49   :  { %v818_v1 = vsel %vm447_vm1, %v815_v19, %v817_v37  ;;  %v309_v39 = vadd.f32 %v3052_v20, %v2988_v44  ;;  %v453_v2 = vrot.slane %v354_v40, 2  ;;  %v454_v4 = vrot.slane %v355_v42, 2  ;;  %227 = vst [vmem:[#allocation3 + $0x91] sm:$0xff] %v194_v51 }
  0x4a   :  { %v824_v60 = vrot.slane %v3052_v20, 2  ;;  %v310_v5 = vadd.f32 %v3054_v21, %v2990_v45  ;;  %v827_v7 = vrot.slane %v3056_v23, 2  ;;  %v561_v8 = vsub.f32 %v3015_v61, %v452_v49 }
  0x4b   :  { %v311_v9 = vadd.f32 %v3056_v23, %v2999_v53  ;;  %v779_v10 = vadd.f32 %v664_v58, %v3052_v20  ;;  %v780_v44 = vadd.f32 %v666_v59, %v3054_v21  ;;  %v972_v12 = vsub.f32 %v936_v43, %v3087_v57  ;;  %v3114_v53 = vld [vmem:[#allocation2 + $0x68] sm:$0xff] }
  0x4c   :  { %v1003_v45 = vmul.f32 %v560_v54, %v560_v54  ;;  %v1035_v13 = vmul.f32 %v971_v55, %v971_v55  ;;  %v456_v14 = vrot.slane %v356_v38, 2  ;;  %v937_v16 = vadd.f32 %v816_v50, %v775_v47 }
  0x4d   :  { %v938_v17 = vadd.f32 %v818_v1, %v776_v22  ;;  %v455_v61 = vsel %vm447_vm1, %v453_v2, %v454_v4  ;;  %v826_v19 = vsel %vm447_vm1, %v824_v60, %v825_v6  ;;  %v828_v24 = vsel %vm447_vm1, %v825_v6, %v827_v7 }
  0x4e   :  { %v357_v25 = vadd.f32 %v309_v39, %v3112_v18  ;;  %v358_v27 = vadd.f32 %v310_v5, %v3114_v53  ;;  %v1004_v28 = vmul.f32 %v561_v8, %v561_v8  ;;  %v3122_v29 = vadd.f32 %v826_v19, %v779_v10  ;;  %v3164_v39 = vld [vmem:[#allocation2 + $0x78] sm:$0xff]  ;;  %v3195_v19 = vld [vmem:[#allocation2 + $0x90] sm:$0xff] }
  0x4f   :  { %v3124_v30 = vadd.f32 %v828_v24, %v780_v44  ;;  %v359_v31 = vadd.f32 %v311_v9, %v3119_v26  ;;  %v1036_v33 = vmul.f32 %v972_v12, %v972_v12  ;;  %v1067_v34 = vadd.f32 %v1035_v13, %v1003_v45  ;;  %v195_v13 = vld [vmem:[%s5175_s1 + $0x58] sm:$0xff] }
  0x50   :  { %v457_v35 = vsel %vm447_vm1, %v454_v4, %v456_v14  ;;  %v562_v37 = vsub.f32 %v354_v40, %v455_v61  ;;  %v3132_v43 = vsel %vm447_vm1, %v2986_v41, %v1692_v63  ;;  %v3138_v47 = vsel %vm447_vm1, %v2986_v41, %v1777_v0  ;;  %v3197_v24 = vld [vmem:[#allocation2 + $0x98] sm:$0xff]  ;;  %228 = vst [vmem:[#allocation3 + $0x99] sm:$0xff] %v195_v13 }
  0x51   :  { %v667_v50 = vrot.slane %v3112_v18, 1  ;;  %v458_v52 = vrot.slane %v357_v25, 2  ;;  %v459_v40 = vrot.slane %v358_v27, 2  ;;  %v668_v46 = vrot.slane %v3114_v53, 1 }
  0x52   :  { %v670_v22 = vrot.slane %v3119_v26, 1  ;;  %v563_v63 = vsub.f32 %v355_v42, %v457_v35  ;;  %v973_v48 = vsub.f32 %v937_v16, %v3122_v29  ;;  %v974_v49 = vsub.f32 %v938_v17, %v3124_v30 }
  0x53   :  { %v461_v41 = vrot.slane %v359_v31, 2  ;;  %v3150_v0 = vadd.f32 %v3028_v3, %v3019_v62  ;;  %v3152_v54 = vadd.f32 %v1036_v33, %v1004_v28  ;;  %v3154_v55 = vmul.f32 0.11111111, %v1067_v34  ;;  %v3166_v62 = vld [vmem:[#allocation2 + $0x80] sm:$0xff]  ;;  %v3168_v3 = vld [vmem:[#allocation2 + $0x88] sm:$0x3] }
  0x54   :  { %v3156_v38 = vmul.f32 %v562_v37, %v562_v37  ;;  %v312_v58 = vadd.f32 %v3112_v18, %v3052_v20  ;;  %v829_v42 = vrot.slane %v3112_v18, 2  ;;  %v313_v59 = vadd.f32 %v3114_v53, %v3054_v21 }
  0x55   :  { %v830_v1 = vrot.slane %v3114_v53, 2  ;;  %v314_v2 = vadd.f32 %v3119_v26, %v3056_v23  ;;  %v460_v4 = vsel %vm447_vm1, %v458_v52, %v459_v40  ;;  %v669_v20 = vsel %vm646_vm0, %v667_v50, %v668_v46 }
  0x56   :  { %v671_v60 = vsel %vm646_vm0, %v668_v46, %v670_v22  ;;  %v3175_v5 = vmul.f32 %v563_v63, %v563_v63  ;;  %v3177_v21 = vmul.f32 %v973_v48, %v973_v48  ;;  %v3179_v6 = vmul.f32 %v974_v49, %v974_v49 }
  0x57   :  { %v462_v7 = vsel %vm447_vm1, %v459_v40, %v461_v41  ;;  %v832_v8 = vrot.slane %v3119_v26, 2  ;;  %v672_v9 = vrot.slane %v3164_v39, 1  ;;  %v673_v23 = vrot.slane %v3166_v62, 1 }
  0x58   :  { %v675_v10 = vrot.slane %v3168_v3, 1  ;;  %v564_v44 = vsub.f32 %v357_v25, %v460_v4  ;;  %v781_v11 = vadd.f32 %v669_v20, %v3112_v18  ;;  %v782_v12 = vadd.f32 %v671_v60, %v3114_v53  ;;  %v3199_v25 = vld [vmem:[#allocation2 + $0xa0] sm:$0x3] }
  0x59   :  { %v831_v45 = vsel %vm447_vm1, %v829_v42, %v830_v1  ;;  %v565_v14 = vsub.f32 %v358_v27, %v462_v7  ;;  %v360_v16 = vadd.f32 %v312_v58, %v3164_v39  ;;  %v361_v17 = vadd.f32 %v313_v59, %v3166_v62 }
  0x5a   :  { %v362_v61 = vadd.f32 %v314_v2, %v3168_v3  ;;  %v315_v28 = vadd.f32 %v3164_v39, %v3112_v18  ;;  %v834_v31 = vrot.slane %v3164_v39, 2  ;;  %v835_v27 = vrot.slane %v3166_v62, 2 }
  0x5b   :  { %v837_v33 = vrot.slane %v3168_v3, 2  ;;  %v316_v34 = vadd.f32 %v3166_v62, %v3114_v53  ;;  %v317_v35 = vadd.f32 %v3168_v3, %v3119_v26  ;;  %v674_v37 = vsel %vm646_vm0, %v672_v9, %v673_v23  ;;  %v196_v26 = vld [vmem:[%s5175_s1 + $0x60] sm:$0xff] }
  0x5c   :  { %v676_v50 = vsel %vm646_vm0, %v673_v23, %v675_v10  ;;  %v833_v51 = vsel %vm447_vm1, %v830_v1, %v832_v8  ;;  %v677_v18 = vrot.slane %v3195_v19, 1  ;;  %v678_v52 = vrot.slane %v3197_v24, 1  ;;  %229 = vst [vmem:[#allocation3 + $0xa9] sm:$0xff] %v196_v26 }
  0x5d   :  { %v680_v40 = vrot.slane %v3199_v25, 1  ;;  %v3216_v46 = vadd.f32 %v831_v45, %v781_v11  ;;  %v463_v22 = vrot.slane %v360_v16, 2  ;;  %v464_v63 = vrot.slane %v361_v17, 2 }
  0x5e   :  { %v466_v53 = vrot.slane %v362_v61, 2  ;;  %v783_v48 = vadd.f32 %v674_v37, %v3164_v39  ;;  %v784_v49 = vadd.f32 %v676_v50, %v3166_v62  ;;  %v836_v41 = vsel %vm447_vm1, %v834_v31, %v835_v27 }
  0x5f   :  { %v838_v58 = vsel %vm447_vm1, %v835_v27, %v837_v33  ;;  %v363_v42 = vadd.f32 %v315_v28, %v3195_v19  ;;  %v839_v59 = vrot.slane %v3195_v19, 2  ;;  %v364_v1 = vadd.f32 %v316_v34, %v3197_v24  ;;  %v3249_v27 = vld [vmem:[#allocation2 + $0xb0] sm:$0xff] }
  0x60   :  { %v365_v2 = vadd.f32 %v317_v35, %v3199_v25  ;;  %v679_v4 = vsel %vm646_vm0, %v677_v18, %v678_v52  ;;  %v681_v20 = vsel %vm646_vm0, %v678_v52, %v680_v40  ;;  %v840_v60 = vrot.slane %v3197_v24, 2 }
  0x61   :  { %v842_v7 = vrot.slane %v3199_v25, 2  ;;  %v944_v8 = vadd.f32 %v833_v51, %v782_v12  ;;  %v975_v9 = vsub.f32 %v3066_v32, %v3216_v46  ;;  %v1007_v23 = vmul.f32 %v564_v44, %v564_v44  ;;  %v3247_v44 = vld [vmem:[#allocation2 + $0xa8] sm:$0xff] }
  0x62   :  { %v465_v10 = vsel %vm447_vm1, %v463_v22, %v464_v63  ;;  %v467_v11 = vsel %vm447_vm1, %v464_v63, %v466_v53  ;;  %v3237_v45 = vadd.f32 %v836_v41, %v783_v48  ;;  %v3239_v13 = vadd.f32 %v838_v58, %v784_v49  ;;  %v3260_v63 = vld [vmem:[#allocation2 + $0xb8] sm:$0x3]  ;;  %v198_v41 = vld [vmem:[%s5175_s1 + $0x70] sm:$0xff] }
  0x63   :  { %v318_v61 = vadd.f32 %v3195_v19, %v3164_v39  ;;  %v468_v28 = vrot.slane %v363_v42, 2  ;;  %v319_v31 = vadd.f32 %v3197_v24, %v3166_v62  ;;  %v785_v12 = vadd.f32 %v679_v4, %v3195_v19  ;;  %v197_v39 = vld [vmem:[%s5175_s1 + $0x68] sm:$0xff]  ;;  %231 = vst [vmem:[#allocation3 + $0xc1] sm:$0xff] %v198_v41 }
  0x64   :  { %v786_v32 = vadd.f32 %v681_v20, %v3197_v24  ;;  %v469_v33 = vrot.slane %v364_v1, 2  ;;  %v471_v34 = vrot.slane %v365_v2, 2  ;;  %v841_v35 = vsel %vm447_vm1, %v839_v59, %v840_v60  ;;  %230 = vst [vmem:[#allocation3 + $0xb1] sm:$0xff] %v197_v39 }
  0x65   :  { %v843_v37 = vsel %vm447_vm1, %v840_v60, %v842_v7  ;;  %v976_v62 = vsub.f32 %v3087_v57, %v944_v8  ;;  %v1008_v50 = vmul.f32 %v565_v14, %v565_v14  ;;  %v566_v51 = vsub.f32 %v360_v16, %v465_v10 }
  0x66   :  { %v320_v18 = vadd.f32 %v3199_v25, %v3168_v3  ;;  %v1039_v52 = vmul.f32 %v975_v9, %v975_v9  ;;  %v567_v40 = vsub.f32 %v361_v17, %v467_v11  ;;  %v682_v22 = vrot.slane %v3247_v44, 1 }
  0x67   :  { %v683_v53 = vrot.slane %v3249_v27, 1  ;;  %v977_v26 = vsub.f32 %v3122_v29, %v3237_v45  ;;  %v978_v57 = vsub.f32 %v3124_v30, %v3239_v13  ;;  %v3267_v14 = vadd.f32 %v841_v35, %v785_v12 }
  0x68   :  { %v3269_v16 = vadd.f32 %v843_v37, %v786_v32  ;;  %v470_v3 = vsel %vm447_vm1, %v468_v28, %v469_v33  ;;  %v472_v17 = vsel %vm447_vm1, %v469_v33, %v471_v34  ;;  %v366_v48 = vadd.f32 %v318_v61, %v3247_v44 }
  0x69   :  { %v367_v49 = vadd.f32 %v319_v31, %v3249_v27  ;;  %v1040_v29 = vmul.f32 %v976_v62, %v976_v62  ;;  %v1009_v58 = vmul.f32 %v566_v51, %v566_v51  ;;  %v368_v30 = vadd.f32 %v320_v18, %v3260_v63 }
  0x6a   :  { %v685_v59 = vrot.slane %v3260_v63, 1  ;;  %v1010_v2 = vmul.f32 %v567_v40, %v567_v40  ;;  %v844_v4 = vrot.slane %v3247_v44, 2  ;;  %v684_v20 = vsel %vm646_vm0, %v682_v22, %v683_v53 }
  0x6b   :  { %v845_v60 = vrot.slane %v3249_v27, 2  ;;  %v568_v7 = vsub.f32 %v363_v42, %v470_v3  ;;  %v569_v9 = vsub.f32 %v364_v1, %v472_v17  ;;  %v979_v10 = vsub.f32 %v3216_v46, %v3267_v14 }
  0x6c   :  { %v980_v11 = vsub.f32 %v944_v8, %v3269_v16  ;;  %v1041_v61 = vmul.f32 %v977_v26, %v977_v26  ;;  %v1042_v28 = vmul.f32 %v978_v57, %v978_v57  ;;  %v473_v31 = vrot.slane %v366_v48, 2 }
  0x6d   :  { %v474_v12 = vrot.slane %v367_v49, 2  ;;  %v476_v32 = vrot.slane %v368_v30, 2  ;;  %v686_v33 = vsel %vm646_vm0, %v683_v53, %v685_v59  ;;  %v787_v34 = vadd.f32 %v684_v20, %v3247_v44  ;;  %v3314_v30 = vld [vmem:[#allocation2 + $0xc8] sm:$0xff]  ;;  %v3322_v20 = vld [vmem:[#allocation2 + $0xd0] sm:$0x3] }
  0x6e   :  { %v847_v35 = vrot.slane %v3260_v63, 2  ;;  %v1069_v42 = vadd.f32 %v3177_v21, %v3156_v38  ;;  %v1070_v1 = vadd.f32 %v3179_v6, %v3175_v5  ;;  %v1071_v46 = vadd.f32 %v1039_v52, %v1007_v23  ;;  %v199_v38 = vld [vmem:[%s5175_s1 + $0x78] sm:$0xff] }
  0x6f   :  { %v846_v8 = vsel %vm447_vm1, %v844_v4, %v845_v60  ;;  %v1011_v37 = vmul.f32 %v568_v7, %v568_v7  ;;  %v1012_v39 = vmul.f32 %v569_v9, %v569_v9  ;;  %v1043_v62 = vmul.f32 %v979_v10, %v979_v10  ;;  %232 = vst [vmem:[#allocation3 + $0xc9] sm:$0xff] %v199_v38  ;;  %v200_v7 = vld [vmem:[%s5175_s1 + $0x80] sm:$0xff] }
  0x70   :  { %v1044_v51 = vmul.f32 %v980_v11, %v980_v11  ;;  %v1072_v18 = vadd.f32 %v1040_v29, %v1008_v50  ;;  %v1073_v40 = vadd.f32 %v1041_v61, %v1009_v58  ;;  %v475_v22 = vsel %vm447_vm1, %v473_v31, %v474_v12  ;;  %v273_v58 = vld [vmem:[#allocation2 + $0xc0] sm:$0xff]  ;;  %233 = vst [vmem:[#allocation3 + $0xd9] sm:$0xff] %v200_v7 }
  0x71   :  { %v788_v53 = vadd.f32 %v686_v33, %v3249_v27  ;;  %v1074_v21 = vadd.f32 %v1042_v28, %v1010_v2  ;;  %v477_v5 = vsel %vm447_vm1, %v474_v12, %v476_v32  ;;  %v848_v6 = vsel %vm447_vm1, %v845_v60, %v847_v35  ;;  %v3353_v35 = vld [vmem:[#allocation2 + $0xe0] sm:$0xff] }
  0x72   :  { %v3301_v23 = vadd.f32 %v846_v8, %v787_v34  ;;  %v3304_v52 = vmul.f32 0.11111111, %v3152_v54  ;;  %v3306_v50 = vmul.f32 0.11111111, %v1069_v42  ;;  %v321_v26 = vadd.f32 %v3247_v44, %v3195_v19  ;;  %v3351_v34 = vld [vmem:[#allocation2 + $0xd8] sm:$0xff] }
  0x73   :  { %v322_v57 = vadd.f32 %v3249_v27, %v3197_v24  ;;  %v3312_v3 = vmul.f32 0.11111111, %v1070_v1  ;;  %v1075_v17 = vadd.f32 %v1043_v62, %v1011_v37  ;;  %v1076_v41 = vadd.f32 %v1044_v51, %v1012_v39  ;;  %v3355_v42 = vld [vmem:[#allocation2 + $0xe8] sm:$0x3] }
  0x74   :  { %v570_v29 = vsub.f32 %v366_v48, %v475_v22  ;;  %v3316_v59 = vmul.f32 0.11111111, %v1071_v46  ;;  %v3318_v54 = vmul.f32 0.11111111, %v1072_v18  ;;  %v571_v2 = vsub.f32 %v367_v49, %v477_v5 }
  0x75   :  { %v3320_v4 = vadd.f32 %v848_v6, %v788_v53  ;;  %v3324_v19 = vmul.f32 0.11111111, %v1073_v40  ;;  %v3326_v24 = vmul.f32 0.11111111, %v1074_v21  ;;  %v323_v60 = vadd.f32 %v3260_v63, %v3199_v25  ;;  %v201_v21 = vld [vmem:[%s5175_s1 + $0x88] sm:$0xff] }
  0x76   :  { %v981_v48 = vsub.f32 %v3237_v45, %v3301_v23  ;;  %v369_v9 = vadd.f32 %v321_v26, %v273_v58  ;;  %v687_v49 = vrot.slane %v273_v58, 1  ;;  %v3336_v10 = vadd.f32 %v322_v57, %v3314_v30  ;;  %234 = vst [vmem:[#allocation3 + $0xe1] sm:$0xff] %v201_v21 }
  0x77   :  { %v688_v11 = vrot.slane %v3314_v30, 1  ;;  %v3339_v61 = vmul.f32 0.11111111, %v1075_v17  ;;  %v3341_v28 = vmul.f32 0.11111111, %v1076_v41  ;;  %v1013_v25 = vmul.f32 %v570_v29, %v570_v29 }
  0x78   :  { %v690_v31 = vrot.slane %v3322_v20, 1  ;;  %v982_v45 = vsub.f32 %v3239_v13, %v3320_v4  ;;  %v3346_v12 = vmul.f32 %v571_v2, %v571_v2  ;;  %v324_v32 = vadd.f32 %v273_v58, %v3247_v44 }
  0x79   :  { %5228 = vst [vmem:[#allocation5_spill] sm:$0xff] %v3341_v28  ;;  %v325_v33 = vadd.f32 %v3314_v30, %v3249_v27  ;;  %v1045_v1 = vmul.f32 %v981_v48, %v981_v48  ;;  %v849_v46 = vrot.slane %v273_v58, 2  ;;  %v371_v8 = vadd.f32 %v323_v60, %v3322_v20  ;;  %v3382_v60 = vld [vmem:[#allocation2 + $0xf0] sm:$0xff]  ;;  %v3384_v48 = vld [vmem:[#allocation2 + $0xf8] sm:$0xff] }
  0x7a   :  { %v850_v37 = vrot.slane %v3314_v30, 2  ;;  %v478_v13 = vrot.slane %v369_v9, 2  ;;  %v326_v39 = vadd.f32 %v3322_v20, %v3260_v63  ;;  %v479_v44 = vrot.slane %v3336_v10, 2 }
  0x7b   :  { %v689_v27 = vsel %vm646_vm0, %v687_v49, %v688_v11  ;;  %v691_v62 = vsel %vm646_vm0, %v688_v11, %v690_v31  ;;  %v692_v51 = vrot.slane %v3351_v34, 1  ;;  %v693_v18 = vrot.slane %v3353_v35, 1 }
  0x7c   :  { %v695_v40 = vrot.slane %v3355_v42, 1  ;;  %v3367_v22 = vmul.f32 %v982_v45, %v982_v45  ;;  %v852_v53 = vrot.slane %v3322_v20, 2  ;;  %v372_v38 = vadd.f32 %v324_v32, %v3351_v34 }
  0x7d   :  { %v373_v63 = vadd.f32 %v325_v33, %v3353_v35  ;;  %v3375_v5 = vadd.f32 %v1045_v1, %v1013_v25  ;;  %v481_v6 = vrot.slane %v371_v8, 2  ;;  %v789_v26 = vadd.f32 %v689_v27, %v273_v58  ;;  %v202_v1 = vld [vmem:[%s5175_s1 + $0x90] sm:$0xff] }
  0x7e   :  { %v851_v57 = vsel %vm447_vm1, %v849_v46, %v850_v37  ;;  %v480_v17 = vsel %vm447_vm1, %v478_v13, %v479_v44  ;;  %v790_v41 = vadd.f32 %v691_v62, %v3314_v30  ;;  %v854_v29 = vrot.slane %v3351_v34, 2  ;;  %235 = vst [vmem:[#allocation3 + $0xf1] sm:$0xff] %v202_v1 }
  0x7f   :  { %v374_v2 = vadd.f32 %v326_v39, %v3355_v42  ;;  %v694_v7 = vsel %vm646_vm0, %v692_v51, %v693_v18  ;;  %v696_v49 = vsel %vm646_vm0, %v693_v18, %v695_v40  ;;  %v855_v11 = vrot.slane %v3353_v35, 2  ;;  %v3399_v39 = vld [vmem:[#allocation2 + $0x100] sm:$0x3] }
  0x80   :  { %v857_v25 = vrot.slane %v3355_v42, 2  ;;  %v853_v31 = vsel %vm447_vm1, %v850_v37, %v852_v53  ;;  %v327_v45 = vadd.f32 %v3351_v34, %v273_v58  ;;  %v483_v32 = vrot.slane %v372_v38, 2 }
  0x81   :  { %v484_v33 = vrot.slane %v373_v63, 2  ;;  %v482_v46 = vsel %vm447_vm1, %v479_v44, %v481_v6  ;;  %v328_v8 = vadd.f32 %v3353_v35, %v3314_v30  ;;  %v697_v13 = vrot.slane %v3382_v60, 1 }
  0x82   :  { %v698_v27 = vrot.slane %v3384_v48, 1  ;;  %v572_v37 = vsub.f32 %v369_v9, %v480_v17  ;;  %v486_v58 = vrot.slane %v374_v2, 2  ;;  %v791_v62 = vadd.f32 %v694_v7, %v3351_v34 }
  0x83   :  { %v792_v51 = vadd.f32 %v696_v49, %v3353_v35  ;;  %v951_v18 = vadd.f32 %v851_v57, %v789_v26  ;;  %v3404_v40 = vadd.f32 %v853_v31, %v790_v41  ;;  %v856_v44 = vsel %vm447_vm1, %v854_v29, %v855_v11 }
  0x84   :  { %v858_v30 = vsel %vm447_vm1, %v855_v11, %v857_v25  ;;  %v329_v53 = vadd.f32 %v3355_v42, %v3322_v20  ;;  %v485_v21 = vsel %vm447_vm1, %v483_v32, %v484_v33  ;;  %v375_v6 = vadd.f32 %v327_v45, %v3382_v60  ;;  %v203_v45 = vld [vmem:[%s5175_s1 + $0x98] sm:$0xff] }
  0x85   :  { %v700_v9 = vrot.slane %v3399_v39, 1  ;;  %v859_v17 = vrot.slane %v3382_v60, 2  ;;  %v3415_v2 = vadd.f32 %v328_v8, %v3384_v48  ;;  %v699_v26 = vsel %vm646_vm0, %v697_v13, %v698_v27  ;;  %236 = vst [vmem:[#allocation3 + $0xf9] sm:$0xff] %v203_v45 }
  0x86   :  { %v860_v57 = vrot.slane %v3384_v48, 2  ;;  %v573_v41 = vsub.f32 %v3336_v10, %v482_v46  ;;  %v487_v29 = vsel %vm447_vm1, %v484_v33, %v486_v58  ;;  %v3421_v20 = vadd.f32 %v856_v44, %v791_v62 }
  0x87   :  { %v3423_v7 = vadd.f32 %v858_v30, %v792_v51  ;;  %v983_v49 = vsub.f32 %v3267_v14, %v951_v18  ;;  %v984_v11 = vsub.f32 %v3269_v16, %v3404_v40  ;;  %v1015_v25 = vmul.f32 %v572_v37, %v572_v37 }
  0x88   :  { %v574_v31 = vsub.f32 %v372_v38, %v485_v21  ;;  %v377_v32 = vadd.f32 %v329_v53, %v3399_v39  ;;  %v701_v10 = vsel %vm646_vm0, %v698_v27, %v700_v9  ;;  %v793_v33 = vadd.f32 %v699_v26, %v3382_v60  ;;  %v3457_v26 = vld [vmem:[#allocation2 + $0x110] sm:$0xff] }
  0x89   :  { %v862_v1 = vrot.slane %v3399_v39, 2  ;;  %v575_v46 = vsub.f32 %v373_v63, %v487_v29  ;;  %v488_v14 = vrot.slane %v375_v6, 2  ;;  %v489_v8 = vrot.slane %v3415_v2, 2  ;;  %v3459_v29 = vld [vmem:[#allocation2 + $0x118] sm:$0x3] }
  0x8a   :  { %v861_v16 = vsel %vm447_vm1, %v859_v17, %v860_v57  ;;  %v985_v38 = vsub.f32 %v3301_v23, %v3421_v20  ;;  %v986_v13 = vsub.f32 %v3320_v4, %v3423_v7  ;;  %v330_v27 = vadd.f32 %v3382_v60, %v3351_v34  ;;  %v204_v4 = vld [vmem:[%s5175_s1 + $0xa0] sm:$0xff]  ;;  %v282_v17 = vld [vmem:[#allocation2 + $0x108] sm:$0xff] }
  0x8b   :  { %v331_v37 = vadd.f32 %v3384_v48, %v3353_v35  ;;  %v1016_v58 = vmul.f32 %v573_v41, %v573_v41  ;;  %v1047_v62 = vmul.f32 %v983_v49, %v983_v49  ;;  %v1048_v63 = vmul.f32 %v984_v11, %v984_v11  ;;  %237 = vst [vmem:[#allocation3 + $0x109] sm:$0xff] %v204_v4 }
  0x8c   :  { %v794_v51 = vadd.f32 %v701_v10, %v3384_v48  ;;  %v332_v44 = vadd.f32 %v3399_v39, %v3355_v42  ;;  %v491_v30 = vrot.slane %v377_v32, 2  ;;  %v863_v23 = vsel %vm447_vm1, %v860_v57, %v862_v1 }
  0x8d   :  { %v3449_v53 = vadd.f32 %v861_v16, %v793_v33  ;;  %v1078_v34 = vadd.f32 %v3367_v22, %v3346_v12  ;;  %v1017_v35 = vmul.f32 %v574_v31, %v574_v31  ;;  %v1018_v21 = vmul.f32 %v575_v46, %v575_v46 }
  0x8e   :  { %v490_v9 = vsel %vm447_vm1, %v488_v14, %v489_v8  ;;  %v1049_v42 = vmul.f32 %v985_v38, %v985_v38  ;;  %v1050_v41 = vmul.f32 %v986_v13, %v986_v13  ;;  %v378_v57 = vadd.f32 %v330_v27, %v282_v17 }
  0x8f   :  { %v379_v49 = vadd.f32 %v331_v37, %v3457_v26  ;;  %v3463_v11 = vmul.f32 0.11111111, %v3375_v5  ;;  %v1079_v45 = vadd.f32 %v1047_v62, %v1015_v25  ;;  %v1080_v12 = vadd.f32 %v1048_v63, %v1016_v58 }
  0x90   :  { %v3465_v22 = vadd.f32 %v863_v23, %v794_v51  ;;  %v492_v31 = vsel %vm447_vm1, %v489_v8, %v491_v30  ;;  %v576_v32 = vsub.f32 %v375_v6, %v490_v9  ;;  %v987_v10 = vsub.f32 %v951_v18, %v3449_v53  ;;  %v205_v8 = vld [vmem:[%s5175_s1 + $0xa8] sm:$0xff] }
  0x91   :  { %5229 = vst [vmem:[#allocation6_spill] sm:$0xff] %v3463_v11  ;;  %v380_v33 = vadd.f32 %v332_v44, %v3459_v29  ;;  %v3470_v1 = vmul.f32 0.11111111, %v1078_v34  ;;  %v702_v46 = vrot.slane %v282_v17, 1  ;;  %v703_v14 = vrot.slane %v3457_v26, 1  ;;  %238 = vst [vmem:[#allocation3 + $0x111] sm:$0xff] %v205_v8 }
  0x92   :  { %v705_v16 = vrot.slane %v3459_v29, 1  ;;  %v1081_v5 = vadd.f32 %v1049_v42, %v1017_v35  ;;  %v1082_v38 = vadd.f32 %v1050_v41, %v1018_v21  ;;  %v493_v25 = vrot.slane %v378_v57, 2  ;;  %v3495_v21 = vld [vmem:[#allocation2 + $0x120] sm:$0xff] }
  0x93   :  { %5230 = vst [vmem:[#allocation7_spill] sm:$0xff] %v3470_v1  ;;  %v494_v13 = vrot.slane %v379_v49, 2  ;;  %v3474_v27 = vmul.f32 0.11111111, %v1079_v45  ;;  %v3476_v37 = vmul.f32 0.11111111, %v1080_v12  ;;  %v577_v6 = vsub.f32 %v3415_v2, %v492_v31 }
  0x94   :  { %v988_v18 = vsub.f32 %v3404_v40, %v3465_v22  ;;  %v1019_v58 = vmul.f32 %v576_v32, %v576_v32  ;;  %v1051_v62 = vmul.f32 %v987_v10, %v987_v10  ;;  %v333_v63 = vadd.f32 %v282_v17, %v3382_v60  ;;  %v286_v45 = vld [vmem:[#allocation2 + $0x128] sm:$0xff]  ;;  %v3504_v12 = vld [vmem:[#allocation2 + $0x130] sm:$0x3] }
  0x95   :  { %5231 = vst [vmem:[#allocation8_spill] sm:$0xff] %v3474_v27  ;;  %5232 = vst [vmem:[#allocation9_spill] sm:$0xff] %v3476_v37  ;;  %v496_v51 = vrot.slane %v380_v33, 2  ;;  %v864_v44 = vrot.slane %v282_v17, 2  ;;  %v704_v30 = vsel %vm646_vm0, %v702_v46, %v703_v14  ;;  %v706_v23 = vsel %vm646_vm0, %v703_v14, %v705_v16  ;;  %v3513_v46 = vld [vmem:[#allocation2 + $0x138] sm:$0xff]  ;;  %v3515_v14 = vld [vmem:[#allocation2 + $0x140] sm:$0xff] }
  0x96   :  { %v865_v2 = vrot.slane %v3457_v26, 2  ;;  %v3488_v4 = vmul.f32 0.11111111, %v1081_v5  ;;  %v3490_v40 = vmul.f32 0.11111111, %v1082_v38  ;;  %v334_v34 = vadd.f32 %v3457_v26, %v3384_v48  ;;  %v206_v48 = vld [vmem:[%s5175_s1 + $0xb0] sm:$0xff] }
  0x97   :  { %v495_v35 = vsel %vm447_vm1, %v493_v25, %v494_v13  ;;  %v3497_v60 = vmul.f32 %v577_v6, %v577_v6  ;;  %v3499_v9 = vmul.f32 %v988_v18, %v988_v18  ;;  %v335_v42 = vadd.f32 %v3459_v29, %v3399_v39  ;;  %239 = vst [vmem:[#allocation3 + $0x121] sm:$0xff] %v206_v48  ;;  %v3520_v25 = vld [vmem:[#allocation2 + $0x148] sm:$0x3] }
  0x98   :  { %5233 = vst [vmem:[#allocation10_spill] sm:$0xff] %v3488_v4  ;;  %5234 = vst [vmem:[#allocation11_spill] sm:$0xff] %v3490_v40  ;;  %v867_v41 = vrot.slane %v3459_v29, 2  ;;  %v3509_v31 = vadd.f32 %v1051_v62, %v1019_v58  ;;  %v497_v32 = vsel %vm447_vm1, %v494_v13, %v496_v51  ;;  %v795_v10 = vadd.f32 %v704_v30, %v282_v17 }
  0x99   :  { %v796_v33 = vadd.f32 %v706_v23, %v3457_v26  ;;  %v578_v39 = vsub.f32 %v378_v57, %v495_v35  ;;  %v866_v16 = vsel %vm447_vm1, %v864_v44, %v865_v2  ;;  %v336_v5 = vadd.f32 %v3495_v21, %v282_v17 }
  0x9a   :  { %v381_v38 = vadd.f32 %v333_v63, %v3495_v21  ;;  %v707_v6 = vrot.slane %v3495_v21, 1  ;;  %v3523_v13 = vadd.f32 %v334_v34, %v286_v45  ;;  %v708_v18 = vrot.slane %v286_v45, 1 }
  0x9b   :  { %v710_v8 = vrot.slane %v3504_v12, 1  ;;  %v579_v58 = vsub.f32 %v379_v49, %v497_v32  ;;  %v337_v62 = vadd.f32 %v286_v45, %v3457_v26  ;;  %v712_v57 = vrot.slane %v3513_v46, 1 }
  0x9c   :  { %v713_v51 = vrot.slane %v3515_v14, 1  ;;  %v868_v17 = vsel %vm447_vm1, %v865_v2, %v867_v41  ;;  %v869_v63 = vrot.slane %v3495_v21, 2  ;;  %v338_v44 = vadd.f32 %v3504_v12, %v3459_v29 }
  0x9d   :  { %v715_v30 = vrot.slane %v3520_v25, 1  ;;  %v498_v23 = vrot.slane %v381_v38, 2  ;;  %v383_v34 = vadd.f32 %v335_v42, %v3504_v12  ;;  %v870_v35 = vrot.slane %v286_v45, 2  ;;  %v207_v42 = vld [vmem:[%s5175_s1 + $0xb8] sm:$0xff] }
  0x9e   :  { %v872_v49 = vrot.slane %v3504_v12, 2  ;;  %v499_v26 = vrot.slane %v3523_v13, 2  ;;  %v709_v48 = vsel %vm646_vm0, %v707_v6, %v708_v18  ;;  %v711_v32 = vsel %vm646_vm0, %v708_v18, %v710_v8  ;;  %240 = vst [vmem:[#allocation3 + $0x129] sm:$0xff] %v207_v42 }
  0x9f   :  { %v384_v2 = vadd.f32 %v336_v5, %v3513_v46  ;;  %v874_v41 = vrot.slane %v3513_v46, 2  ;;  %v385_v29 = vadd.f32 %v337_v62, %v3515_v14  ;;  %v714_v40 = vsel %vm646_vm0, %v712_v57, %v713_v51 }
  0xa0   :  { %v875_v4 = vrot.slane %v3515_v14, 2  ;;  %v957_v37 = vadd.f32 %v866_v16, %v795_v10  ;;  %v386_v27 = vadd.f32 %v338_v44, %v3520_v25  ;;  %v716_v6 = vsel %vm646_vm0, %v713_v51, %v715_v30 }
  0xa1   :  { %v877_v18 = vrot.slane %v3520_v25, 2  ;;  %v958_v5 = vadd.f32 %v868_v17, %v796_v33  ;;  %v501_v8 = vrot.slane %v383_v34, 2  ;;  %v797_v62 = vadd.f32 %v709_v48, %v3495_v21 }
  0xa2   :  { %v871_v57 = vsel %vm447_vm1, %v869_v63, %v870_v35  ;;  %v500_v1 = vsel %vm447_vm1, %v498_v23, %v499_v26  ;;  %v798_v11 = vadd.f32 %v711_v32, %v286_v45  ;;  %v873_v28 = vsel %vm447_vm1, %v870_v35, %v872_v49  ;;  %v208_v23 = vld [vmem:[%s5175_s1 + $0xc0] sm:$0xff] }
  0xa3   :  { %v799_v10 = vadd.f32 %v714_v40, %v3513_v46  ;;  %v503_v16 = vrot.slane %v384_v2, 2  ;;  %v504_v44 = vrot.slane %v385_v29, 2  ;;  %v800_v51 = vadd.f32 %v716_v6, %v3515_v14  ;;  %241 = vst [vmem:[#allocation3 + $0x139] sm:$0xff] %v208_v23 }
  0xa4   :  { %v876_v30 = vsel %vm447_vm1, %v874_v41, %v875_v4  ;;  %v339_v33 = vadd.f32 %v3513_v46, %v3495_v21  ;;  %v340_v17 = vadd.f32 %v3515_v14, %v286_v45  ;;  %v506_v34 = vrot.slane %v386_v27, 2  ;;  %v292_v41 = vld [vmem:[#allocation2 + $0x158] sm:$0xff] }
  0xa5   :  { %v878_v63 = vsel %vm447_vm1, %v875_v4, %v877_v18  ;;  %v1084_v40 = vadd.f32 %v3499_v9, %v3497_v60  ;;  %v989_v35 = vsub.f32 %v3421_v20, %v957_v37  ;;  %v1021_v49 = vmul.f32 %v578_v39, %v578_v39  ;;  %v291_v4 = vld [vmem:[#allocation2 + $0x150] sm:$0xff] }
  0xa6   :  { %v3567_v48 = vadd.f32 %v871_v57, %v797_v62  ;;  %v990_v21 = vsub.f32 %v3423_v7, %v958_v5  ;;  %v1022_v32 = vmul.f32 %v579_v58, %v579_v58  ;;  %v3570_v45 = vadd.f32 %v873_v28, %v798_v11  ;;  %v3581_v58 = vld [vmem:[#allocation2 + $0x160] sm:$0x3]  ;;  %v209_v57 = vld [vmem:[%s5175_s1 + $0xc8] sm:$0xff] }
  0xa7   :  { %v3572_v27 = vadd.f32 %v876_v30, %v799_v10  ;;  %v502_v42 = vsel %vm447_vm1, %v499_v26, %v501_v8  ;;  %v580_v6 = vsub.f32 %v381_v38, %v500_v1  ;;  %v505_v60 = vsel %vm447_vm1, %v503_v16, %v504_v44  ;;  %242 = vst [vmem:[#allocation3 + $0x141] sm:$0xff] %v209_v57 }
  0xa8   :  { %v3576_v9 = vadd.f32 %v878_v63, %v800_v51  ;;  %v341_v20 = vadd.f32 %v3520_v25, %v3504_v12  ;;  %v507_v39 = vsel %vm447_vm1, %v504_v44, %v506_v34  ;;  %v387_v7 = vadd.f32 %v339_v33, %v291_v4 }
  0xa9   :  { %v3583_v28 = vadd.f32 %v340_v17, %v292_v41  ;;  %v1053_v11 = vmul.f32 %v989_v35, %v989_v35  ;;  %v991_v18 = vsub.f32 %v3449_v53, %v3567_v48  ;;  %v717_v26 = vrot.slane %v291_v4, 1 }
  0xaa   :  { %v718_v1 = vrot.slane %v292_v41, 1  ;;  %v581_v38 = vsub.f32 %v3523_v13, %v502_v42  ;;  %v992_v8 = vsub.f32 %v3465_v22, %v3570_v45  ;;  %v582_v62 = vsub.f32 %v384_v2, %v505_v60 }
  0xab   :  { %v993_v12 = vsub.f32 %v957_v37, %v3572_v27  ;;  %v1054_v10 = vmul.f32 %v990_v21, %v990_v21  ;;  %v583_v16 = vsub.f32 %v385_v29, %v507_v39  ;;  %v994_v44 = vsub.f32 %v958_v5, %v3576_v9  ;;  %v210_v5 = vld [vmem:[%s5175_s1 + $0xd0] sm:$0xff] }
  0xac   :  { %v720_v53 = vrot.slane %v3581_v58, 1  ;;  %v1023_v51 = vmul.f32 %v580_v6, %v580_v6  ;;  %v508_v30 = vrot.slane %v387_v7, 2  ;;  %v389_v13 = vadd.f32 %v341_v20, %v3581_v58  ;;  %243 = vst [vmem:[#allocation3 + $0x151] sm:$0xff] %v210_v5 }
  0xad   :  { %v509_v22 = vrot.slane %v3583_v28, 2  ;;  %v1055_v2 = vmul.f32 %v991_v18, %v991_v18  ;;  %v879_v33 = vrot.slane %v291_v4, 2  ;;  %v719_v37 = vsel %vm646_vm0, %v717_v26, %v718_v1 }
  0xae   :  { %v880_v17 = vrot.slane %v292_v41, 2  ;;  %v1024_v34 = vmul.f32 %v581_v38, %v581_v38  ;;  %v1056_v63 = vmul.f32 %v992_v8, %v992_v8  ;;  %v1025_v23 = vmul.f32 %v582_v62, %v582_v62 }
  0xaf   :  { %v1057_v29 = vmul.f32 %v993_v12, %v993_v12  ;;  %v1026_v35 = vmul.f32 %v583_v16, %v583_v16  ;;  %v1058_v21 = vmul.f32 %v994_v44, %v994_v44  ;;  %v721_v42 = vsel %vm646_vm0, %v718_v1, %v720_v53 }
  0xb0   :  { %v882_v6 = vrot.slane %v3581_v58, 2  ;;  %v1085_v60 = vadd.f32 %v1053_v11, %v1021_v49  ;;  %v510_v20 = vsel %vm447_vm1, %v508_v30, %v509_v22  ;;  %v511_v39 = vrot.slane %v389_v13, 2  ;;  %v3613_v30 = vld [vmem:[#allocation3 + $0x18] sm:$0xff] }
  0xb1   :  { %v801_v18 = vadd.f32 %v719_v37, %v291_v4  ;;  %v3606_v26 = vmul.f32 0.11111111, %v3509_v31  ;;  %v1086_v38 = vadd.f32 %v1054_v10, %v1022_v32  ;;  %v1087_v8 = vadd.f32 %v1055_v2, %v1023_v51  ;;  %v3623_v51 = vld [vmem:[#allocation3 + $0x20] sm:$0xff]  ;;  %v3625_v2 = vld [vmem:[#allocation3 + $0x28] sm:$0x3] }
  0xb2   :  { %v881_v62 = vsel %vm447_vm1, %v879_v33, %v880_v17  ;;  %v3609_v12 = vmul.f32 0.11111111, %v1084_v40  ;;  %v1088_v57 = vadd.f32 %v1056_v63, %v1024_v34  ;;  %v1089_v16 = vadd.f32 %v1057_v29, %v1025_v23  ;;  %v3621_v40 = vld [vmem:[#allocation2 + $0x168] sm:$0xff]  ;;  %v211_v33 = vld [vmem:[%s5175_s1 + $0xd8] sm:$0xff]  ;;  %v3660_v29 = vld [vmem:[#allocation2 + $0x170] sm:$0xff] }
  0xb3   :  { %v802_v1 = vadd.f32 %v721_v42, %v292_v41  ;;  %v1090_v44 = vadd.f32 %v1058_v21, %v1026_v35  ;;  %v342_v53 = vadd.f32 %v291_v4, %v3513_v46  ;;  %v584_v49 = vsub.f32 %v387_v7, %v510_v20  ;;  %v3627_v46 = vld [vmem:[#allocation3 + $0x30] sm:$0xff]  ;;  %244 = vst [vmem:[#allocation3 + $0x159] sm:$0xff] %v211_v33  ;;  %v296_v35 = vld [vmem:[#allocation2 + $0x178] sm:$0x3] }
  0xb4   :  { %v883_v11 = vsel %vm447_vm1, %v880_v17, %v882_v6  ;;  %v3615_v13 = vmul.f32 0.11111111, %v1085_v60  ;;  %v343_v31 = vadd.f32 %v292_v41, %v3515_v14  ;;  %v512_v32 = vsel %vm447_vm1, %v509_v22, %v511_v39  ;;  %v3641_v22 = vld [vmem:[#allocation3 + $0x38] sm:$0xff]  ;;  %v2743_v6 = vld [vmem:[#allocation3 + $0x10] sm:$0x3] }
  0xb5   :  { %v3619_v10 = vadd.f32 %v881_v62, %v801_v18  ;;  %v3631_v4 = vadd.f32 %v3132_v43, %v3046_v15  ;;  %v3635_v7 = vadd.f32 %v3138_v47, %v3073_v36  ;;  %v3637_v14 = vmul.f32 0.11111111, %v1086_v38  ;;  %v3654_v36 = vld [vmem:[#allocation3 + $0x40] sm:$0x3] }
  0xb6   :  { %v3639_v41 = vmul.f32 0.11111111, %v1087_v8  ;;  %v3646_v37 = vmul.f32 0.11111111, %v1088_v57  ;;  %v3648_v17 = vmul.f32 0.11111111, %v1089_v16  ;;  %v344_v15 = vadd.f32 %v3581_v58, %v3520_v25 }
  0xb7   :  { %5235 = vst [vmem:[#allocation12_spill] sm:$0xff] %v3619_v10  ;;  %5236 = vst [vmem:[#allocation13_spill] sm:$0xff] %v3635_v7  ;;  %v3652_v43 = vadd.f32 %v883_v11, %v802_v1  ;;  %v3656_v47 = vmul.f32 0.11111111, %v1090_v44  ;;  %v585_v34 = vsub.f32 %v3583_v28, %v512_v32  ;;  %v1027_v63 = vmul.f32 %v584_v49, %v584_v49  ;;  %v2742_v58 = vld [vmem:[#allocation2] sm:$0xff] }
  0xb8   :  { %5237 = vst [vmem:[#allocation14_spill] sm:$0xff] %v3639_v41  ;;  %5238 = vst [vmem:[#allocation15_spill] sm:$0xff] %v3646_v37  ;;  %v390_v23 = vadd.f32 %v342_v53, %v3621_v40  ;;  %v995_v5 = vsub.f32 %v3567_v48, %v3619_v10  ;;  %v391_v25 = vadd.f32 %v343_v31, %v3660_v29  ;;  %v1537_v28 = vrot.slane %v3627_v46, 1  ;;  %v212_v44 = vld [vmem:[%s5175_s1 + $0xe0] sm:$0xff] }
  0xb9   :  { %5239 = vst [vmem:[#allocation16_spill] sm:$0xff] %v3648_v17  ;;  %5240 = vst [vmem:[#allocation17_spill] sm:$0xff] %v3652_v43  ;;  %v1185_v21 = vadd.f32 %v2742_v58, %v3613_v30  ;;  %v1186_v42 = vadd.f32 %v2742_v58, %v3623_v51  ;;  %v1187_v60 = vadd.f32 %v2743_v6, %v3625_v2  ;;  %v1538_v20 = vrot.slane %v3641_v22, 1 }
  0xba   :  { %5241 = vst [vmem:[#allocation18_spill] sm:$0xff] %v3656_v47  ;;  %v1540_v39 = vrot.slane %v3654_v36, 1  ;;  %v996_v48 = vsub.f32 %v3570_v45, %v3652_v43  ;;  %v722_v18 = vrot.slane %v3621_v40, 1  ;;  %v392_v38 = vadd.f32 %v344_v15, %v296_v35  ;;  %245 = vst [vmem:[#allocation3 + $0x169] sm:$0xff] %v212_v44 }
  0xbb   :  { %v723_v8 = vrot.slane %v3660_v29, 1  ;;  %v1028_v62 = vmul.f32 %v585_v34, %v585_v34  ;;  %v513_v57 = vrot.slane %v390_v23, 2  ;;  %v884_v16 = vrot.slane %v3621_v40, 2 }
  0xbc   :  { %v725_v1 = vrot.slane %v296_v35, 1  ;;  %v1059_v53 = vmul.f32 %v995_v5, %v995_v5  ;;  %v514_v49 = vrot.slane %v391_v25, 2  ;;  %v885_v11 = vrot.slane %v3660_v29, 2 }
  0xbd   :  { %v1233_v45 = vadd.f32 %v1185_v21, %v3627_v46  ;;  %v1234_v31 = vadd.f32 %v1186_v42, %v3641_v22  ;;  %v1235_v32 = vadd.f32 %v1187_v60, %v3654_v36  ;;  %v1539_v33 = vsel %vm646_vm0, %v1537_v28, %v1538_v20 }
  0xbe   :  { %v1541_v15 = vsel %vm646_vm0, %v1538_v20, %v1540_v39  ;;  %v1060_v34 = vmul.f32 %v996_v48, %v996_v48  ;;  %v516_v58 = vrot.slane %v392_v38, 2  ;;  %v724_v6 = vsel %vm646_vm0, %v722_v18, %v723_v8  ;;  %v213_v39 = vld [vmem:[%s5175_s1 + $0xe8] sm:$0xff] }
  0xbf   :  { %v887_v7 = vrot.slane %v296_v35, 2  ;;  %v726_v5 = vsel %vm646_vm0, %v723_v8, %v725_v1  ;;  %v1699_v43 = vrot.slane %v3627_v46, 2  ;;  %v1700_v21 = vrot.slane %v3641_v22, 2  ;;  %246 = vst [vmem:[#allocation3 + $0x171] sm:$0xff] %v213_v39 }
  0xc0   :  { %v1702_v44 = vrot.slane %v3654_v36, 2  ;;  %v1091_v42 = vadd.f32 %v1059_v53, %v1027_v63  ;;  %v515_v60 = vsel %vm447_vm1, %v513_v57, %v514_v49  ;;  %v1657_v28 = vadd.f32 %v1539_v33, %v3627_v46 }
  0xc1   :  { %v1658_v20 = vadd.f32 %v1541_v15, %v3641_v22  ;;  %v803_v35 = vadd.f32 %v724_v6, %v3621_v40  ;;  %v1329_v48 = vrot.slane %v1233_v45, 2  ;;  %v1330_v18 = vrot.slane %v1234_v31, 2 }
  0xc2   :  { %v1332_v38 = vrot.slane %v1235_v32, 2  ;;  %v1092_v8 = vadd.f32 %v1060_v34, %v1028_v62  ;;  %v517_v1 = vsel %vm447_vm1, %v514_v49, %v516_v58  ;;  %v804_v63 = vadd.f32 %v726_v5, %v3660_v29 }
  0xc3   :  { %v886_v57 = vsel %vm447_vm1, %v884_v16, %v885_v11  ;;  %v1188_v53 = vadd.f32 %v3627_v46, %v3613_v30  ;;  %v1189_v33 = vadd.f32 %v3641_v22, %v3623_v51  ;;  %v1701_v15 = vsel %vm447_vm1, %v1699_v43, %v1700_v21  ;;  %v149_v43 = vld [vmem:[%s5174_s0 + $0xf0] sm:$0xff] }
  0xc4   :  { %v1703_v40 = vsel %vm447_vm1, %v1700_v21, %v1702_v44  ;;  %v3706_v6 = vmul.f32 0.11111111, %v1091_v42  ;;  %v586_v32 = vsub.f32 %v390_v23, %v515_v60  ;;  %v3708_v62 = vadd.f32 %v1701_v15, %v1657_v28  ;;  %182 = vst [vmem:[#allocation2 + $0x181] sm:$0xff] %v149_v43 }
  0xc5   :  { %v3710_v49 = vadd.f32 %v1703_v40, %v1658_v20  ;;  %v587_v29 = vsub.f32 %v391_v25, %v517_v1  ;;  %v888_v16 = vsel %vm447_vm1, %v885_v11, %v887_v7  ;;  %v1331_v34 = vsel %vm447_vm1, %v1329_v48, %v1330_v18  ;;  %v3724_v25 = vld [vmem:[#allocation3 + $0x48] sm:$0xff]  ;;  %v3726_v7 = vld [vmem:[#allocation3 + $0x50] sm:$0xff] }
  0xc6   :  { %5242 = vst [vmem:[#allocation19_spill] sm:$0xff] %v3706_v6  ;;  %v1333_v58 = vsel %vm447_vm1, %v1330_v18, %v1332_v38  ;;  %v3718_v5 = vadd.f32 %v886_v57, %v803_v35  ;;  %v1532_v21 = vrot.slane %v3613_v30, 1  ;;  %v1533_v23 = vrot.slane %v3623_v51, 1  ;;  %v3737_v18 = vld [vmem:[#allocation3 + $0x58] sm:$0x3] }
  0xc7   :  { %v1190_v44 = vadd.f32 %v3654_v36, %v3625_v2  ;;  %v3728_v11 = vmul.f32 0.11111111, %v1092_v8  ;;  %v1535_v42 = vrot.slane %v3625_v2, 1  ;;  %v1236_v60 = vadd.f32 %v1188_v53, %v3724_v25 }
  0xc8   :  { %v1237_v28 = vadd.f32 %v1189_v33, %v3726_v7  ;;  %v1441_v20 = vsub.f32 %v1233_v45, %v1331_v34  ;;  %v1442_v39 = vsub.f32 %v1234_v31, %v1333_v58  ;;  %v1851_v35 = vsub.f32 %v3006_v56, %v3708_v62 }
  0xc9   :  { %5243 = vst [vmem:[#allocation20_spill] sm:$0xff] %v3728_v11  ;;  %v1852_v48 = vsub.f32 %v3631_v4, %v3710_v49  ;;  %v3739_v38 = vadd.f32 %v888_v16, %v804_v63  ;;  %v1694_v8 = vrot.slane %v3613_v30, 2  ;;  %v1695_v1 = vrot.slane %v3623_v51, 2 }
  0xca   :  { %v1697_v57 = vrot.slane %v3625_v2, 2  ;;  %v1534_v53 = vsel %vm646_vm0, %v1532_v21, %v1533_v23  ;;  %v1542_v45 = vrot.slane %v3724_v25, 1  ;;  %v1238_v31 = vadd.f32 %v1190_v44, %v3737_v18  ;;  %v150_v2 = vld [vmem:[%s5174_s0 + $0xf8] sm:$0xff] }
  0xcb   :  { %v1543_v33 = vrot.slane %v3726_v7, 1  ;;  %v1536_v4 = vsel %vm646_vm0, %v1533_v23, %v1535_v42  ;;  %v1334_v15 = vrot.slane %v1236_v60, 2  ;;  %v1335_v40 = vrot.slane %v1237_v28, 2  ;;  %183 = vst [vmem:[#allocation2 + $0x189] sm:$0xff] %v150_v2 }
  0xcc   :  { %v1545_v63 = vrot.slane %v3737_v18, 1  ;;  %v1883_v16 = vmul.f32 %v1441_v20, %v1441_v20  ;;  %v1884_v34 = vmul.f32 %v1442_v39, %v1442_v39  ;;  %v1915_v58 = vmul.f32 %v1851_v35, %v1851_v35 }
  0xcd   :  { %v1916_v43 = vmul.f32 %v1852_v48, %v1852_v48  ;;  %v3753_v21 = vmul.f32 %v586_v32, %v586_v32  ;;  %v3755_v6 = vmul.f32 %v587_v29, %v587_v29  ;;  %v3759_v44 = vsub.f32 %v3572_v27, %v3718_v5 }
  0xce   :  { %v1655_v23 = vadd.f32 %v1534_v53, %v3613_v30  ;;  %v1656_v42 = vadd.f32 %v1536_v4, %v3623_v51  ;;  %v1696_v20 = vsel %vm447_vm1, %v1694_v8, %v1695_v1  ;;  %v1337_v39 = vrot.slane %v1238_v31, 2  ;;  %v3771_v51 = vld [vmem:[#allocation3 + $0x60] sm:$0xff]  ;;  %v3773_v8 = vld [vmem:[#allocation3 + $0x68] sm:$0xff]  ;;  %v3775_v31 = vld [vmem:[#allocation3 + $0x70] sm:$0x3] }
  0xcf   :  { %v1544_v35 = vsel %vm646_vm0, %v1542_v45, %v1543_v33  ;;  %v1698_v48 = vsel %vm447_vm1, %v1695_v1, %v1697_v57  ;;  %v1704_v32 = vrot.slane %v3724_v25, 2  ;;  %v1336_v29 = vsel %vm447_vm1, %v1334_v15, %v1335_v40 }
  0xd0   :  { %v1546_v11 = vsel %vm646_vm0, %v1543_v33, %v1545_v63  ;;  %v1947_v27 = vadd.f32 %v1915_v58, %v1883_v16  ;;  %v1948_v10 = vadd.f32 %v1916_v43, %v1884_v34  ;;  %v1705_v30 = vrot.slane %v3726_v7, 2 }
  0xd1   :  { %v1707_v53 = vrot.slane %v3737_v18, 2  ;;  %v1817_v45 = vadd.f32 %v1696_v20, %v1655_v23  ;;  %v1191_v1 = vadd.f32 %v3724_v25, %v3627_v46  ;;  %v1192_v57 = vadd.f32 %v3726_v7, %v3641_v22  ;;  %v214_v22 = vld [vmem:[%s5175_s1 + $0xf0] sm:$0xff] }
  0xd2   :  { %v1659_v33 = vadd.f32 %v1544_v35, %v3724_v25  ;;  %v1193_v4 = vadd.f32 %v3737_v18, %v3654_v36  ;;  %v1338_v15 = vsel %vm447_vm1, %v1335_v40, %v1337_v39  ;;  %v1443_v63 = vsub.f32 %v1236_v60, %v1336_v29  ;;  %247 = vst [vmem:[#allocation3 + $0x181] sm:$0xff] %v214_v22 }
  0xd3   :  { %v1660_v16 = vadd.f32 %v1546_v11, %v3726_v7  ;;  %v1818_v34 = vadd.f32 %v1698_v48, %v1656_v42  ;;  %v1547_v58 = vrot.slane %v3771_v51, 1  ;;  %v1548_v43 = vrot.slane %v3773_v8, 1 }
  0xd4   :  { %v1550_v46 = vrot.slane %v3775_v31, 1  ;;  %v1979_v2 = vmul.f32 0.11111111, %v1947_v27  ;;  %v1980_v23 = vmul.f32 0.11111111, %v1948_v10  ;;  %v1706_v36 = vsel %vm447_vm1, %v1704_v32, %v1705_v30 }
  0xd5   :  { %v1708_v40 = vsel %vm447_vm1, %v1705_v30, %v1707_v53  ;;  %v1444_v60 = vsub.f32 %v1237_v28, %v1338_v15  ;;  %v3794_v11 = vadd.f32 %v1706_v36, %v1659_v33  ;;  %v1239_v42 = vadd.f32 %v1191_v1, %v3771_v51  ;;  %v3815_v33 = vld [vmem:[#allocation3 + $0x78] sm:$0xff]  ;;  %v215_v15 = vld [vmem:[%s5175_s1 + $0xf8] sm:$0xff] }
  0xd6   :  { %v1240_v20 = vadd.f32 %v1192_v57, %v3773_v8  ;;  %v3798_v39 = vadd.f32 %v1708_v40, %v1660_v16  ;;  %v1885_v35 = vmul.f32 %v1443_v63, %v1443_v63  ;;  %v1709_v48 = vrot.slane %v3771_v51, 2  ;;  %248 = vst [vmem:[#allocation3 + $0x189] sm:$0xff] %v215_v15 }
  0xd7   :  { %v1241_v29 = vadd.f32 %v1193_v4, %v3775_v31  ;;  %v1549_v10 = vsel %vm646_vm0, %v1547_v58, %v1548_v43  ;;  %v1551_v32 = vsel %vm646_vm0, %v1548_v43, %v1550_v46  ;;  %v1710_v27 = vrot.slane %v3773_v8, 2  ;;  %v3817_v4 = vld [vmem:[#allocation3 + $0x80] sm:$0xff] }
  0xd8   :  { %v1712_v28 = vrot.slane %v3775_v31, 2  ;;  %v3807_v30 = vmul.f32 %v1979_v2, %v3154_v55  ;;  %v3810_v53 = vmul.f32 %v1980_v23, %v3304_v52  ;;  %v2331_v1 = vadd.f32 %v1979_v2, %v3154_v55  ;;  %v3828_v2 = vld [vmem:[#allocation3 + $0x88] sm:$0x3] }
  0xd9   :  { %v1194_v57 = vadd.f32 %v3771_v51, %v3724_v25  ;;  %v2332_v63 = vadd.f32 %v1980_v23, %v3304_v52  ;;  %v1853_v16 = vsub.f32 %v1817_v45, %v3794_v11  ;;  %v1339_v58 = vrot.slane %v1239_v42, 2 }
  0xda   :  { %v1340_v43 = vrot.slane %v1240_v20, 2  ;;  %v1195_v55 = vadd.f32 %v3773_v8, %v3726_v7  ;;  %v1342_v46 = vrot.slane %v1241_v29, 2  ;;  %v1661_v25 = vadd.f32 %v1549_v10, %v3771_v51 }
  0xdb   :  { %v1662_v22 = vadd.f32 %v1551_v32, %v3773_v8  ;;  %v1711_v36 = vsel %vm447_vm1, %v1709_v48, %v1710_v27  ;;  %v1713_v40 = vsel %vm447_vm1, %v1710_v27, %v1712_v28  ;;  %v1552_v52 = vrot.slane %v3815_v33, 1 }
  0xdc   :  { %v1553_v45 = vrot.slane %v3817_v4, 1  ;;  %2612 = vrsqrt.f32 %v3807_v30  ;;  %v1854_v23 = vsub.f32 %v1818_v34, %v3798_v39  ;;  %v1886_v7 = vmul.f32 %v1444_v60, %v1444_v60 }
  0xdd   :  { %v1196_v29 = vadd.f32 %v3775_v31, %v3737_v18  ;;  %v2363_v10 = vadd.f32 1e-09, %v2331_v1  ;;  %v1917_v32 = vmul.f32 %v1853_v16, %v1853_v16  ;;  %v1341_v15 = vsel %vm447_vm1, %v1339_v58, %v1340_v43 }
  0xde   :  { %v1555_v48 = vrot.slane %v3828_v2, 1  ;;  %v1343_v27 = vsel %vm447_vm1, %v1340_v43, %v1342_v46  ;;  %v3841_v28 = vadd.f32 %v1711_v36, %v1661_v25  ;;  %v3843_v47 = vadd.f32 %v1713_v40, %v1662_v22 }
  0xdf   :  { %v1242_v17 = vadd.f32 %v1194_v57, %v3815_v33  ;;  %v1714_v34 = vrot.slane %v3815_v33, 2  ;;  %v1243_v60 = vadd.f32 %v1195_v55, %v3817_v4  ;;  %v1554_v18 = vsel %vm646_vm0, %v1552_v52, %v1553_v45  ;;  %v3859_v52 = vld [vmem:[#allocation3 + $0x90] sm:$0xff] }
  0xe0   :  { %v1715_v1 = vrot.slane %v3817_v4, 2  ;;  %2614 = vrsqrt.f32 %v3810_v53  ;;  %v3851_v16 = vadd.f32 1e-09, %v2332_v63  ;;  %v1918_v58 = vmul.f32 %v1854_v23, %v1854_v23  ;;  %v3861_v63 = vld [vmem:[#allocation3 + $0x98] sm:$0xff] }
  0xe1   :  { %v1244_v43 = vadd.f32 %v1196_v29, %v3828_v2  ;;  %2616 = vrcp.f32 %v2363_v10  ;;  %v1949_v46 = vadd.f32 %v1917_v32, %v1885_v35  ;;  %v1556_v25 = vsel %vm646_vm0, %v1553_v45, %v1555_v48 }
  0xe2   :  { %v1717_v57 = vrot.slane %v3828_v2, 2  ;;  %v1445_v22 = vsub.f32 %v1239_v42, %v1341_v15  ;;  %v1446_v36 = vsub.f32 %v1240_v20, %v1343_v27  ;;  %v1855_v55 = vsub.f32 %v3708_v62, %v3841_v28  ;;  %v3873_v27 = vld [vmem:[#allocation3 + $0xa0] sm:$0x3] }
  0xe3   :  { %v1663_v40 = vadd.f32 %v1554_v18, %v3815_v33  ;;  %v1856_v23 = vsub.f32 %v3710_v49, %v3843_v47  ;;  %v1344_v29 = vrot.slane %v1242_v17, 2  ;;  %v1345_v35 = vrot.slane %v1243_v60, 2 }
  0xe4   :  { %v1716_v45 = vsel %vm447_vm1, %v1714_v34, %v1715_v1  ;;  %v1950_v10 = vadd.f32 %v1918_v58, %v1886_v7  ;;  %v1197_v42 = vadd.f32 %v3815_v33, %v3771_v51  ;;  %v1347_v20 = vrot.slane %v1244_v43, 2 }
  0xe5   :  { %v1664_v62 = vadd.f32 %v1556_v25, %v3817_v4  ;;  %v1198_v32 = vadd.f32 %v3817_v4, %v3773_v8  ;;  %v1718_v15 = vsel %vm447_vm1, %v1715_v1, %v1717_v57  ;;  %v1557_v48 = vrot.slane %v3859_v52, 1 }
  0xe6   :  { %v1558_v49 = vrot.slane %v3861_v63, 1  ;;  %v1981_v18 = vmul.f32 0.11111111, %v1949_v46  ;;  %v1887_v34 = vmul.f32 %v1445_v22, %v1445_v22  ;;  %v1919_v7 = vmul.f32 %v1855_v55, %v1855_v55 }
  0xe7   :  { %v3876_v58 = vadd.f32 %v1716_v45, %v1663_v40  ;;  %v1888_v51 = vmul.f32 %v1446_v36, %v1446_v36  ;;  %v1920_v43 = vmul.f32 %v1856_v23, %v1856_v23  ;;  %v1199_v25 = vadd.f32 %v3828_v2, %v3775_v31 }
  0xe8   :  { %v1346_v8 = vsel %vm447_vm1, %v1344_v29, %v1345_v35  ;;  %v1348_v1 = vsel %vm447_vm1, %v1345_v35, %v1347_v20  ;;  %v3882_v57 = vadd.f32 %v1718_v15, %v1664_v62  ;;  %v1245_v37 = vadd.f32 %v1197_v42, %v3859_v52 }
  0xe9   :  { %v1560_v41 = vrot.slane %v3873_v27, 1  ;;  %v3886_v46 = vpop.eup %2612  ;;  %v1719_v22 = vrot.slane %v3859_v52, 2  ;;  %v1246_v36 = vadd.f32 %v1198_v32, %v3861_v63  ;;  %v1559_v55 = vsel %vm646_vm0, %v1557_v48, %v1558_v49 }
  0xea   :  { %v1720_v31 = vrot.slane %v3861_v63, 2  ;;  %v1982_v40 = vmul.f32 0.11111111, %v1950_v10  ;;  %v1951_v23 = vadd.f32 %v1919_v7, %v1887_v34  ;;  %v1447_v29 = vsub.f32 %v1242_v17, %v1346_v8 }
  0xeb   :  { %v1857_v35 = vsub.f32 %v3794_v11, %v3876_v58  ;;  %v3895_v45 = vmul.f32 %v1981_v18, %v3306_v50  ;;  %v2333_v42 = vadd.f32 %v1981_v18, %v3306_v50  ;;  %v1952_v20 = vadd.f32 %v1920_v43, %v1888_v51 }
  0xec   :  { %v1448_v62 = vsub.f32 %v1243_v60, %v1348_v1  ;;  %v1247_v15 = vadd.f32 %v1199_v25, %v3873_v27  ;;  %v1561_v32 = vsel %vm646_vm0, %v1558_v49, %v1560_v41  ;;  %v1665_v48 = vadd.f32 %v1559_v55, %v3859_v52 }
  0xed   :  { %v1722_v10 = vrot.slane %v3873_v27, 2  ;;  %v3902_v34 = vpop.eup %2614  ;;  %v1858_v17 = vsub.f32 %v3798_v39, %v3882_v57  ;;  %v1349_v11 = vrot.slane %v1245_v37, 2  ;;  %v1350_v7 = vrot.slane %v1246_v36, 2 }
  0xee   :  { %v1721_v8 = vsel %vm447_vm1, %v1719_v22, %v1720_v31  ;;  %v3907_v50 = vpop.eup %2616  ;;  %v2334_v60 = vadd.f32 %v1982_v40, %v3312_v3  ;;  %v1983_v18 = vmul.f32 0.11111111, %v1951_v23  ;;  %v1889_v51 = vmul.f32 %v1447_v29, %v1447_v29 }
  0xef   :  { %5244 = vst [vmem:[#allocation21_spill] sm:$0xff] %v3907_v50  ;;  %v1921_v41 = vmul.f32 %v1857_v35, %v1857_v35  ;;  %v998_v49 = vsub.f32 %v3576_v9, %v3739_v38  ;;  %2618 = vrcp.f32 %v3851_v16  ;;  %v3914_v43 = vmul.f32 %v1982_v40, %v3312_v3 }
  0xf0   :  { %v1666_v39 = vadd.f32 %v1561_v32, %v3861_v63  ;;  %v2365_v25 = vadd.f32 1e-09, %v2333_v42  ;;  %v1352_v1 = vrot.slane %v1247_v15, 2  ;;  %v1723_v22 = vsel %vm447_vm1, %v1720_v31, %v1722_v10 }
  0xf1   :  { %v3918_v55 = vadd.f32 %v1721_v8, %v1665_v48  ;;  %v1984_v50 = vmul.f32 0.11111111, %v1952_v20  ;;  %v1890_v23 = vmul.f32 %v1448_v62, %v1448_v62  ;;  %v1922_v29 = vmul.f32 %v1858_v17, %v1858_v17 }
  0xf2   :  { %v1351_v35 = vsel %vm447_vm1, %v1349_v11, %v1350_v7  ;;  %2620 = vrsqrt.f32 %v3895_v45  ;;  %v2366_v9 = vadd.f32 1e-09, %v2334_v60  ;;  %v2335_v16 = vadd.f32 %v1983_v18, %v3316_v59 }
  0xf3   :  { %v1953_v3 = vadd.f32 %v1921_v41, %v1889_v51  ;;  %v1002_v40 = vsub.f32 %v3739_v38, %v3150_v0  ;;  %v1001_v42 = vsub.f32 %v3718_v5, %v3006_v56  ;;  %2622 = vrsqrt.f32 %v3914_v43  ;;  %v3962_v51 = vld [vmem:[#allocation3 + $0xb8] sm:$0x3] }
  0xf4   :  { %v3928_v31 = vadd.f32 %v1723_v22, %v1666_v39  ;;  %v3931_v20 = vmul.f32 %v1983_v18, %v3316_v59  ;;  %v1353_v62 = vsel %vm447_vm1, %v1350_v7, %v1352_v1  ;;  %v1449_v15 = vsub.f32 %v1245_v37, %v1351_v35  ;;  %v3952_v18 = vld [vmem:[#allocation3 + $0xa8] sm:$0xff] }
  0xf5   :  { %v1859_v32 = vsub.f32 %v3841_v28, %v3918_v55  ;;  %2624 = vrcp.f32 %v2365_v25  ;;  %v3937_v48 = vmul.f32 %v1984_v50, %v3318_v54  ;;  %v2336_v0 = vadd.f32 %v1984_v50, %v3318_v54 }
  0xf6   :  { %5245 = vst [vmem:[#allocation22_spill] sm:$0xff] %v3931_v20  ;;  %v1954_v5 = vadd.f32 %v1922_v29, %v1890_v23  ;;  %v1062_v38 = vmul.f32 %v998_v49, %v998_v49  ;;  %2626 = vrcp.f32 %v2366_v9  ;;  %v2367_v10 = vadd.f32 1e-09, %v2335_v16 }
  0xf7   :  { %v1985_v17 = vmul.f32 0.11111111, %v1953_v3  ;;  %v1200_v59 = vadd.f32 %v3859_v52, %v3815_v33  ;;  %v1201_v37 = vadd.f32 %v3861_v63, %v3817_v4  ;;  %v1450_v11 = vsub.f32 %v1246_v36, %v1353_v62  ;;  %v3954_v4 = vld [vmem:[#allocation3 + $0xb0] sm:$0xff] }
  0xf8   :  { %v1860_v28 = vsub.f32 %v3843_v47, %v3928_v31  ;;  %2628 = vrsqrt.f32 %v3931_v20  ;;  %v1202_v54 = vadd.f32 %v3873_v27, %v3828_v2  ;;  %v1891_v7 = vmul.f32 %v1449_v15, %v1449_v15 }
  0xf9   :  { %v1923_v8 = vmul.f32 %v1859_v32, %v1859_v32  ;;  %v3949_v50 = vmul.f32 %v1002_v40, %v1002_v40  ;;  %2630 = vrsqrt.f32 %v3937_v48  ;;  %v2368_v60 = vadd.f32 1e-09, %v2336_v0 }
  0xfa   :  { %v1986_v33 = vmul.f32 0.11111111, %v1954_v5  ;;  %v1061_v47 = vmul.f32 %v3759_v44, %v3759_v44  ;;  %2632 = vrcp.f32 %v2367_v10  ;;  %v3959_v36 = vmul.f32 %v1985_v17, %v3324_v19 }
  0xfb   :  { %5246 = vst [vmem:[#allocation23_spill] sm:$0xff] %v3949_v50  ;;  %v2337_v2 = vadd.f32 %v1985_v17, %v3324_v19  ;;  %v1892_v41 = vmul.f32 %v1450_v11, %v1450_v11  ;;  %v1924_v49 = vmul.f32 %v1860_v28, %v1860_v28  ;;  %v1248_v39 = vadd.f32 %v1200_v59, %v3952_v18 }
  0xfc   :  { %5247 = vst [vmem:[#allocation24_spill] sm:$0xff] %v3959_v36  ;;  %v1249_v25 = vadd.f32 %v1201_v37, %v3954_v4  ;;  %v3966_v1 = vpop.eup %2618  ;;  %v1955_v22 = vadd.f32 %v1923_v8, %v1891_v7  ;;  %v1562_v23 = vrot.slane %v3952_v18, 1  ;;  %v1250_v44 = vadd.f32 %v1202_v54, %v3962_v51  ;;  %v3999_v8 = vld [vmem:[#allocation3 + $0xc0] sm:$0xff] }
  0xfd   :  { %5248 = vst [vmem:[#allocation25_spill] sm:$0xff] %v3966_v1  ;;  %v1563_v29 = vrot.slane %v3954_v4, 1  ;;  %2634 = vrcp.f32 %v2368_v60  ;;  %v3972_v19 = vmul.f32 %v1986_v33, %v3326_v24  ;;  %v2338_v35 = vadd.f32 %v1986_v33, %v3326_v24  ;;  %v4001_v60 = vld [vmem:[#allocation3 + $0xc8] sm:$0xff] }
  0xfe   :  { %v1565_v9 = vrot.slane %v3962_v51, 1  ;;  %v1094_v16 = vadd.f32 %v1062_v38, %v3755_v6  ;;  %v3977_v3 = vmul.f32 %v1001_v42, %v1001_v42  ;;  %2636 = vrsqrt.f32 %v3959_v36 }
  0xff   :  { %5249 = vst [vmem:[#allocation26_spill] sm:$0xff] %v3972_v19  ;;  %v2369_v40 = vadd.f32 1e-09, %v2337_v2  ;;  %v3980_v62 = vpop.eup %2620  ;;  %v1956_v15 = vadd.f32 %v1924_v49, %v1892_v41  ;;  %v1354_v32 = vrot.slane %v1248_v39, 2  ;;  %v1724_v0 = vrot.slane %v3952_v18, 2 }
 0x100   :  { %5250 = vst [vmem:[#allocation27_spill] sm:$0xff] %v3977_v3  ;;  %v1355_v5 = vrot.slane %v1249_v25, 2  ;;  %v3983_v10 = vpop.eup %2622  ;;  %v1987_v17 = vmul.f32 0.11111111, %v1955_v22  ;;  %v1357_v24 = vrot.slane %v1250_v44, 2  ;;  %v1564_v59 = vsel %vm646_vm0, %v1562_v23, %v1563_v29 }
 0x101   :  { %v1725_v6 = vrot.slane %v3954_v4, 2  ;;  %2638 = vrsqrt.f32 %v3972_v19  ;;  %v2370_v42 = vadd.f32 1e-09, %v2338_v35  ;;  %v1566_v38 = vsel %vm646_vm0, %v1563_v29, %v1565_v9 }
 0x102   :  { %v1727_v37 = vrot.slane %v3962_v51, 2  ;;  %v3990_v11 = vpop.eup %2624  ;;  %v3992_v28 = vmul.f32 0.11111111, %v1094_v16  ;;  %v3995_v54 = vadd.f32 %v1061_v47, %v3753_v21  ;;  %2640 = vrcp.f32 %v2369_v40  ;;  %v4009_v21 = vld [vmem:[#allocation3 + $0xd0] sm:$0x3] }
 0x103   :  { %5251 = vst [vmem:[#allocation28_spill] sm:$0xff] %v3990_v11  ;;  %v1203_v7 = vadd.f32 %v3952_v18, %v3859_v52  ;;  %v4003_v33 = vpop.eup %2626  ;;  %v1988_v2 = vmul.f32 0.11111111, %v1956_v15  ;;  %v1204_v41 = vadd.f32 %v3954_v4, %v3861_v63  ;;  %v1356_v49 = vsel %vm447_vm1, %v1354_v32, %v1355_v5 }
 0x104   :  { %5252 = vst [vmem:[#allocation29_spill] sm:$0xff] %v4003_v33  ;;  %v1667_v22 = vadd.f32 %v1564_v59, %v3952_v18  ;;  %v4012_v47 = vmul.f32 %v1987_v17, %v3339_v61  ;;  %v1358_v52 = vsel %vm447_vm1, %v1355_v5, %v1357_v24  ;;  %v1668_v23 = vadd.f32 %v1566_v38, %v3954_v4  ;;  %v5256_v24 = vld [vmem:[#allocation5_spill] sm:$0xff] }
 0x105   :  { %v1726_v44 = vsel %vm447_vm1, %v1724_v0, %v1725_v6  ;;  %v4017_v29 = vpop.eup %2628  ;;  %2642 = vrcp.f32 %v2370_v42  ;;  %v1728_v63 = vsel %vm447_vm1, %v1725_v6, %v1727_v37  ;;  %v1567_v35 = vrot.slane %v3999_v8, 1  ;;  %v4045_v37 = vld [vmem:[#allocation3 + $0xe0] sm:$0xff] }
 0x106   :  { %5253 = vst [vmem:[#allocation30_spill] sm:$0xff] %v4012_v47  ;;  %5254 = vst [vmem:[#allocation31_spill] sm:$0xff] %v4017_v29  ;;  %v1568_v9 = vrot.slane %v4001_v60, 1  ;;  %v4022_v16 = vpop.eup %2630  ;;  %v2339_v40 = vadd.f32 %v1987_v17, %v3339_v61  ;;  %v1205_v15 = vadd.f32 %v3962_v51, %v3873_v27  ;;  %v1451_v32 = vsub.f32 %v1248_v39, %v1356_v49  ;;  %v4043_v17 = vld [vmem:[#allocation3 + $0xd8] sm:$0xff] }
 0x107   :  { %v1570_v5 = vrot.slane %v4009_v21, 1  ;;  %v4028_v0 = vpop.eup %2632  ;;  %v4031_v59 = vmul.f32 %v1988_v2, %v5256_v24  ;;  %v4034_v6 = vadd.f32 %v1988_v2, %v5256_v24  ;;  %v1452_v42 = vsub.f32 %v1249_v25, %v1358_v52 }
 0x108   :  { %5255 = vst [vmem:[#allocation32_spill] sm:$0xff] %v4028_v0  ;;  %v4036_v38 = vadd.f32 %v1726_v44, %v1667_v22  ;;  %2644 = vrsqrt.f32 %v4012_v47  ;;  %v4039_v61 = vadd.f32 %v1728_v63, %v1668_v23  ;;  %v1251_v27 = vadd.f32 %v1203_v7, %v3999_v8  ;;  %v4059_v63 = vld [vmem:[#allocation3 + $0xe8] sm:$0x3] }
 0x109   :  { %5257 = vst [vmem:[#allocation5_spill] sm:$0xff] %v4031_v59  ;;  %v1252_v39 = vadd.f32 %v1204_v41, %v4001_v60  ;;  %v1206_v49 = vadd.f32 %v3999_v8, %v3952_v18  ;;  %v1729_v2 = vrot.slane %v3999_v8, 2  ;;  %v1569_v25 = vsel %vm646_vm0, %v1567_v35, %v1568_v9 }
 0x10a   :  { %v1730_v22 = vrot.slane %v4001_v60, 2  ;;  %v4052_v52 = vpop.eup %2634  ;;  %v1207_v7 = vadd.f32 %v4001_v60, %v3954_v4  ;;  %v1253_v41 = vadd.f32 %v1205_v15, %v4009_v21  ;;  %v1571_v23 = vsel %vm646_vm0, %v1568_v9, %v1570_v5 }
 0x10b   :  { %5258 = vst [vmem:[#allocation33_spill] sm:$0xff] %v4052_v52  ;;  %v1732_v44 = vrot.slane %v4009_v21, 2  ;;  %v4061_v18 = vpop.eup %2636  ;;  %v1861_v35 = vsub.f32 %v3876_v58, %v4036_v38  ;;  %v1893_v24 = vmul.f32 %v1451_v32, %v1451_v32  ;;  %v1572_v0 = vrot.slane %v4043_v17, 1 }
 0x10c   :  { %5259 = vst [vmem:[#allocation34_spill] sm:$0xff] %v4061_v18  ;;  %v1573_v52 = vrot.slane %v4045_v37, 1  ;;  %v1862_v4 = vsub.f32 %v3882_v57, %v4039_v61  ;;  %v1359_v15 = vrot.slane %v1251_v27, 2  ;;  %v1360_v33 = vrot.slane %v1252_v39, 2 }
 0x10d   :  { %v1669_v9 = vadd.f32 %v1569_v25, %v3999_v8  ;;  %v1208_v5 = vadd.f32 %v4009_v21, %v3962_v51  ;;  %v1670_v11 = vadd.f32 %v1571_v23, %v4001_v60  ;;  %v1731_v1 = vsel %vm447_vm1, %v1729_v2, %v1730_v22 }
 0x10e   :  { %v1575_v58 = vrot.slane %v4059_v63, 1  ;;  %v4075_v32 = vpop.eup %2638  ;;  %v1362_v47 = vrot.slane %v1253_v41, 2  ;;  %v1733_v18 = vsel %vm447_vm1, %v1730_v22, %v1732_v44  ;;  %v1254_v57 = vadd.f32 %v1206_v49, %v4043_v17 }
 0x10f   :  { %v1255_v36 = vadd.f32 %v1207_v7, %v4045_v37  ;;  %v4080_v29 = vpop.eup %2640  ;;  %v1925_v25 = vmul.f32 %v1861_v35, %v1861_v35  ;;  %v1734_v51 = vrot.slane %v4043_v17, 2  ;;  %v1574_v23 = vsel %vm646_vm0, %v1572_v0, %v1573_v52 }
 0x110   :  { %5260 = vst [vmem:[#allocation35_spill] sm:$0xff] %v4080_v29  ;;  %v1735_v2 = vrot.slane %v4045_v37, 2  ;;  %v1894_v20 = vmul.f32 %v1452_v42, %v1452_v42  ;;  %v1926_v50 = vmul.f32 %v1862_v4, %v1862_v4  ;;  %v1361_v3 = vsel %vm447_vm1, %v1359_v15, %v1360_v33 }
 0x111   :  { %v4086_v41 = vadd.f32 %v1731_v1, %v1669_v9  ;;  %v4088_v22 = vadd.f32 %v1733_v18, %v1670_v11  ;;  %v1256_v49 = vadd.f32 %v1208_v5, %v4059_v63  ;;  %v1576_v7 = vsel %vm646_vm0, %v1573_v52, %v1575_v58  ;;  %v4102_v5 = vld [vmem:[#allocation3 + $0xf0] sm:$0xff] }
 0x112   :  { %v1737_v44 = vrot.slane %v4059_v63, 2  ;;  %v4093_v35 = vpop.eup %2642  ;;  %v1363_v0 = vsel %vm447_vm1, %v1360_v33, %v1362_v47  ;;  %v1364_v29 = vrot.slane %v1254_v57, 2  ;;  %v1365_v56 = vrot.slane %v1255_v36, 2  ;;  %v4104_v33 = vld [vmem:[#allocation3 + $0xf8] sm:$0xff] }
 0x113   :  { %5261 = vst [vmem:[#allocation36_spill] sm:$0xff] %v4093_v35  ;;  %v1671_v42 = vadd.f32 %v1574_v23, %v4043_v17  ;;  %2646 = vrsqrt.f32 %v4031_v59  ;;  %v2371_v1 = vadd.f32 1e-09, %v2339_v40  ;;  %v1957_v4 = vadd.f32 %v1925_v25, %v1893_v24  ;;  %v4120_v23 = vld [vmem:[#allocation3 + $0x100] sm:$0x3] }
 0x114   :  { %v1736_v11 = vsel %vm447_vm1, %v1734_v51, %v1735_v2  ;;  %v1958_v18 = vadd.f32 %v1926_v50, %v1894_v20  ;;  %v1453_v15 = vsub.f32 %v1251_v27, %v1361_v3  ;;  %v1863_v52 = vsub.f32 %v3918_v55, %v4086_v41 }
 0x115   :  { %v1672_v9 = vadd.f32 %v1576_v7, %v4045_v37  ;;  %v4106_v47 = vpop.eup %2644  ;;  %v1454_v58 = vsub.f32 %v1252_v39, %v1363_v0  ;;  %v1864_v40 = vsub.f32 %v3928_v31, %v4088_v22  ;;  %v1367_v24 = vrot.slane %v1256_v49, 2 }
 0x116   :  { %5262 = vst [vmem:[#allocation37_spill] sm:$0xff] %v4106_v47  ;;  %v1738_v25 = vsel %vm447_vm1, %v1735_v2, %v1737_v44  ;;  %v2372_v20 = vadd.f32 1e-09, %v4034_v6  ;;  %v1209_v55 = vadd.f32 %v4043_v17, %v3999_v8  ;;  %v1366_v50 = vsel %vm447_vm1, %v1364_v29, %v1365_v56  ;;  %v5268_v47 = vld [vmem:[#allocation8_spill] sm:$0xff] }
 0x117   :  { %v4115_v3 = vadd.f32 %v1736_v11, %v1671_v42  ;;  %v1989_v27 = vmul.f32 0.11111111, %v1957_v4  ;;  %v1210_v51 = vadd.f32 %v4045_v37, %v4001_v60  ;;  %v1577_v39 = vrot.slane %v4102_v5, 1 }
 0x118   :  { %v1578_v31 = vrot.slane %v4104_v33, 1  ;;  %v1990_v2 = vmul.f32 0.11111111, %v1958_v18  ;;  %v1895_v49 = vmul.f32 %v1453_v15, %v1453_v15  ;;  %v1927_v6 = vmul.f32 %v1863_v52, %v1863_v52 }
 0x119   :  { %v4123_v7 = vadd.f32 %v1738_v25, %v1672_v9  ;;  %v1896_v8 = vmul.f32 %v1454_v58, %v1454_v58  ;;  %v1928_v44 = vmul.f32 %v1864_v40, %v1864_v40  ;;  %v1368_v29 = vsel %vm447_vm1, %v1365_v56, %v1367_v24  ;;  %v5263_v58 = vld [vmem:[#allocation6_spill] sm:$0xff]  ;;  %v5264_v40 = vld [vmem:[#allocation7_spill] sm:$0xff] }
 0x11a   :  { %v1455_v0 = vsub.f32 %v1254_v57, %v1366_v50  ;;  %v1211_v42 = vadd.f32 %v4059_v63, %v4009_v21  ;;  %v1865_v60 = vsub.f32 %v4036_v38, %v4115_v3  ;;  %v1257_v4 = vadd.f32 %v1209_v55, %v4102_v5 }
 0x11b   :  { %v1580_v11 = vrot.slane %v4120_v23, 1  ;;  %v1739_v18 = vrot.slane %v4102_v5, 2  ;;  %v1258_v15 = vadd.f32 %v1210_v51, %v4104_v33  ;;  %v1579_v52 = vsel %vm646_vm0, %v1577_v39, %v1578_v31 }
 0x11c   :  { %v1740_v9 = vrot.slane %v4104_v33, 2  ;;  %2648 = vrcp.f32 %v2371_v1  ;;  %v1959_v56 = vadd.f32 %v1927_v6, %v1895_v49  ;;  %v1456_v57 = vsub.f32 %v1255_v36, %v1368_v29 }
 0x11d   :  { %v1866_v21 = vsub.f32 %v4039_v61, %v4123_v7  ;;  %v2341_v38 = vadd.f32 %v1989_v27, %v5263_v58  ;;  %v2342_v24 = vadd.f32 %v1990_v2, %v5264_v40  ;;  %v1960_v25 = vadd.f32 %v1928_v44, %v1896_v8 }
 0x11e   :  { %v1897_v55 = vmul.f32 %v1455_v0, %v1455_v0  ;;  %v1259_v50 = vadd.f32 %v1211_v42, %v4120_v23  ;;  %v1581_v51 = vsel %vm646_vm0, %v1578_v31, %v1580_v11  ;;  %v1673_v39 = vadd.f32 %v1579_v52, %v4102_v5 }
 0x11f   :  { %v1742_v35 = vrot.slane %v4120_v23, 2  ;;  %v1929_v1 = vmul.f32 %v1865_v60, %v1865_v60  ;;  %v1369_v49 = vrot.slane %v1257_v4, 2  ;;  %v1370_v36 = vrot.slane %v1258_v15, 2 }
 0x120   :  { %v1741_v6 = vsel %vm447_vm1, %v1739_v18, %v1740_v9  ;;  %v4145_v61 = vpop.eup %2646  ;;  %v4148_v29 = vmul.f32 %v1989_v27, %v5263_v58  ;;  %v1991_v8 = vmul.f32 0.11111111, %v1959_v56  ;;  %v1898_v44 = vmul.f32 %v1456_v57, %v1456_v57 }
 0x121   :  { %5265 = vst [vmem:[#allocation6_spill] sm:$0xff] %v4145_v61  ;;  %v1930_v0 = vmul.f32 %v1866_v21, %v1866_v21  ;;  %2650 = vrcp.f32 %v2372_v20  ;;  %v4151_v31 = vmul.f32 %v1990_v2, %v5264_v40  ;;  %v1992_v42 = vmul.f32 0.11111111, %v1960_v25  ;;  %v5270_v2 = vld [vmem:[#allocation9_spill] sm:$0xff] }
 0x122   :  { %5266 = vst [vmem:[#allocation7_spill] sm:$0xff] %v4148_v29  ;;  %v1674_v11 = vadd.f32 %v1581_v51, %v4104_v33  ;;  %v2373_v60 = vadd.f32 1e-09, %v2341_v38  ;;  %v1372_v52 = vrot.slane %v1259_v50, 2  ;;  %v1743_v59 = vsel %vm447_vm1, %v1740_v9, %v1742_v35  ;;  %v4256_v50 = vld [vmem:[#allocation3 + $0x130] sm:$0x3] }
 0x123   :  { %5267 = vst [vmem:[#allocation38_spill] sm:$0xff] %v4151_v31  ;;  %v4155_v18 = vadd.f32 %v1741_v6, %v1673_v39  ;;  %v2374_v61 = vadd.f32 1e-09, %v2342_v24  ;;  %v2343_v27 = vadd.f32 %v1991_v8, %v5268_v47  ;;  %v1961_v58 = vadd.f32 %v1929_v1, %v1897_v55 }
 0x124   :  { %v1371_v56 = vsel %vm447_vm1, %v1369_v49, %v1370_v36  ;;  %2652 = vrsqrt.f32 %v4148_v29  ;;  %v4161_v20 = vmul.f32 %v1991_v8, %v5268_v47  ;;  %v2344_v57 = vadd.f32 %v1992_v42, %v5270_v2  ;;  %v4191_v8 = vld [vmem:[#allocation3 + $0x108] sm:$0xff] }
 0x125   :  { %v1962_v21 = vadd.f32 %v1930_v0, %v1898_v44  ;;  %v4165_v38 = vmul.f32 0.11111111, %v3995_v54  ;;  %2654 = vrsqrt.f32 %v4151_v31  ;;  %v4169_v35 = vmul.f32 %v1992_v42, %v5270_v2  ;;  %v5273_v0 = vld [vmem:[#allocation10_spill] sm:$0xff] }
 0x126   :  { %5269 = vst [vmem:[#allocation8_spill] sm:$0xff] %v4161_v20  ;;  %v4171_v9 = vadd.f32 %v1743_v59, %v1674_v11  ;;  %vm2052_vm2 = vcmp.eq.f32.partialorder %v3810_v53, inf  ;;  %2656 = vrcp.f32 %v2373_v60  ;;  %v1373_v40 = vsel %vm447_vm1, %v1370_v36, %v1372_v52  ;;  %v4209_v60 = vld [vmem:[#allocation3 + $0x118] sm:$0x3] }
 0x127   :  { %5271 = vst [vmem:[#allocation9_spill] sm:$0xff] %v4169_v35  ;;  %v1457_v47 = vsub.f32 %v1257_v4, %v1371_v56  ;;  %v1867_v24 = vsub.f32 %v4086_v41, %v4155_v18  ;;  %2658 = vrcp.f32 %v2374_v61  ;;  %v2375_v54 = vadd.f32 1e-09, %v2343_v27 }
 0x128   :  { %v1993_v55 = vmul.f32 0.11111111, %v1961_v58  ;;  %2660 = vrsqrt.f32 %v4161_v20  ;;  %v2376_v59 = vadd.f32 1e-09, %v2344_v57  ;;  %v1994_v51 = vmul.f32 0.11111111, %v1962_v21 }
 0x129   :  { %v4180_v39 = vpop.eup %2648  ;;  %2662 = vrsqrt.f32 %v4169_v35  ;;  %v1212_v4 = vadd.f32 %v4102_v5, %v4043_v17  ;;  %v1458_v1 = vsub.f32 %v1258_v15, %v1373_v40  ;;  %v1868_v41 = vsub.f32 %v4088_v22, %v4171_v9  ;;  %v4199_v22 = vld [vmem:[#allocation3 + $0x110] sm:$0xff] }
 0x12a   :  { %5272 = vst [vmem:[#allocation39_spill] sm:$0xff] %v4180_v39  ;;  %v1213_v49 = vadd.f32 %v4104_v33, %v4045_v37  ;;  %v1214_v36 = vadd.f32 %v4120_v23, %v4059_v63  ;;  %v1899_v6 = vmul.f32 %v1457_v47, %v1457_v47  ;;  %v1931_v61 = vmul.f32 %v1867_v24, %v1867_v24  ;;  %v5275_v63 = vld [vmem:[#allocation11_spill] sm:$0xff] }
 0x12b   :  { %v2051_v44 = vmul.f32 %v3902_v34, %v3810_v53  ;;  %2664 = vrcp.f32 %v2375_v54  ;;  %v4196_v17 = vmul.f32 %v1993_v55, %v5273_v0  ;;  %v2345_v15 = vadd.f32 %v1993_v55, %v5273_v0 }
 0x12c   :  { %v4203_v37 = vmul.f32 %v3886_v46, %v3807_v30  ;;  %2666 = vrcp.f32 %v2376_v59  ;;  %v4206_v42 = vmul.f32 %v1994_v51, %v5275_v63  ;;  %v2346_v11 = vadd.f32 %v1994_v51, %v5275_v63 }
 0x12d   :  { %5274 = vst [vmem:[#allocation10_spill] sm:$0xff] %v4196_v17  ;;  %v1900_v34 = vmul.f32 %v1458_v1, %v1458_v1  ;;  %v1932_v52 = vmul.f32 %v1868_v41, %v1868_v41  ;;  %v1260_v27 = vadd.f32 %v1212_v4, %v4191_v8  ;;  %v1582_v58 = vrot.slane %v4191_v8, 1 }
 0x12e   :  { %5276 = vst [vmem:[#allocation11_spill] sm:$0xff] %v4206_v42  ;;  %v4213_v56 = vpop.eup %2650  ;;  %v1963_v2 = vadd.f32 %v1931_v61, %v1899_v6  ;;  %v1261_v46 = vadd.f32 %v1213_v49, %v4199_v22  ;;  %v1262_v57 = vadd.f32 %v1214_v36, %v4209_v60  ;;  %v1583_v21 = vrot.slane %v4199_v22, 1  ;;  %v4238_v36 = vld [vmem:[#allocation3 + $0x120] sm:$0xff]  ;;  %v4240_v6 = vld [vmem:[#allocation3 + $0x128] sm:$0xff] }
 0x12f   :  { %5277 = vst [vmem:[#allocation40_spill] sm:$0xff] %v4213_v56  ;;  %v4221_v40 = vsel %vm2052_vm2, %v3810_v53, %v2051_v44  ;;  %2668 = vrsqrt.f32 %v4196_v17  ;;  %v2377_v47 = vadd.f32 1e-09, %v2345_v15  ;;  %v1585_v24 = vrot.slane %v4209_v60, 1 }
 0x130   :  { %v4227_v54 = vmul.f32 %v3980_v62, %v3895_v45  ;;  %v4231_v55 = vmul.f32 %v3983_v10, %v3914_v43  ;;  %2670 = vrsqrt.f32 %v4206_v42  ;;  %v2378_v59 = vadd.f32 1e-09, %v2346_v11 }
 0x131   :  { %v4234_v51 = vpop.eup %2652  ;;  %v1964_v4 = vadd.f32 %v1932_v52, %v1900_v34  ;;  %v1374_v1 = vrot.slane %v1260_v27, 2  ;;  %v1744_v41 = vrot.slane %v4191_v8, 2  ;;  %v1745_v49 = vrot.slane %v4199_v22, 2 }
 0x132   :  { %5278 = vst [vmem:[#allocation41_spill] sm:$0xff] %v4227_v54  ;;  %5279 = vst [vmem:[#allocation42_spill] sm:$0xff] %v4234_v51  ;;  %v4242_v62 = vpop.eup %2654  ;;  %v1995_v61 = vmul.f32 0.11111111, %v1963_v2  ;;  %v1375_v10 = vrot.slane %v1261_v46, 2  ;;  %v1377_v44 = vrot.slane %v1262_v57, 2  ;;  %v1584_v0 = vsel %vm646_vm0, %v1582_v58, %v1583_v21 }
 0x133   :  { %5280 = vst [vmem:[#allocation43_spill] sm:$0xff] %v4242_v62  ;;  %v4245_v15 = vpop.eup %2656  ;;  %2672 = vrcp.f32 %v2377_v47  ;;  %v1215_v63 = vadd.f32 %v4191_v8, %v4102_v5  ;;  %v1586_v11 = vsel %vm646_vm0, %v1583_v21, %v1585_v24  ;;  %v1747_v34 = vrot.slane %v4209_v60, 2 }
 0x134   :  { %5281 = vst [vmem:[#allocation44_spill] sm:$0xff] %v4245_v15  ;;  %v4251_v52 = vpop.eup %2658  ;;  %2674 = vrcp.f32 %v2378_v59  ;;  %v1216_v2 = vadd.f32 %v4199_v22, %v4104_v33  ;;  %v1587_v57 = vrot.slane %v4238_v36, 1  ;;  %v1588_v58 = vrot.slane %v4240_v6, 1 }
 0x135   :  { %5282 = vst [vmem:[#allocation45_spill] sm:$0xff] %v4251_v52  ;;  %v4259_v47 = vpop.eup %2660  ;;  %v1996_v25 = vmul.f32 0.11111111, %v1964_v4  ;;  %v1217_v5 = vadd.f32 %v4209_v60, %v4120_v23  ;;  %v1675_v21 = vadd.f32 %v1584_v0, %v4191_v8  ;;  %v1746_v24 = vsel %vm447_vm1, %v1744_v41, %v1745_v49 }
 0x136   :  { %5283 = vst [vmem:[#allocation46_spill] sm:$0xff] %v4259_v47  ;;  %v4265_v59 = vpop.eup %2662  ;;  %v4268_v33 = vmul.f32 %v1995_v61, %v3606_v26  ;;  %v1376_v52 = vsel %vm447_vm1, %v1374_v1, %v1375_v10  ;;  %v1378_v15 = vsel %vm447_vm1, %v1375_v10, %v1377_v44  ;;  %v1676_v56 = vadd.f32 %v1586_v11, %v4199_v22 }
 0x137   :  { %5284 = vst [vmem:[#allocation47_spill] sm:$0xff] %v4265_v59  ;;  %v2347_v4 = vadd.f32 %v1995_v61, %v3606_v26  ;;  %v1748_v39 = vsel %vm447_vm1, %v1745_v49, %v1747_v34  ;;  %v1263_v23 = vadd.f32 %v1215_v63, %v4238_v36  ;;  %v1590_v0 = vrot.slane %v4256_v50, 1 }
 0x138   :  { %5285 = vst [vmem:[#allocation48_spill] sm:$0xff] %v4268_v33  ;;  %v4277_v41 = vpop.eup %2664  ;;  %v1749_v42 = vrot.slane %v4238_v36, 2  ;;  %v4281_v17 = vadd.f32 %v1216_v2, %v4240_v6  ;;  %v1589_v1 = vsel %vm646_vm0, %v1587_v57, %v1588_v58  ;;  %v1750_v10 = vrot.slane %v4240_v6, 2  ;;  %v4297_v57 = vld [vmem:[#allocation3 + $0x138] sm:$0xff] }
 0x139   :  { %5286 = vst [vmem:[#allocation49_spill] sm:$0xff] %v4277_v41  ;;  %v4285_v44 = vpop.eup %2666  ;;  %v4288_v26 = vmul.f32 %v1996_v25, %v3609_v12  ;;  %v2348_v49 = vadd.f32 %v1996_v25, %v3609_v12  ;;  %v1459_v61 = vsub.f32 %v1260_v27, %v1376_v52  ;;  %v1460_v63 = vsub.f32 %v1261_v46, %v1378_v15  ;;  %v4299_v41 = vld [vmem:[#allocation3 + $0x140] sm:$0xff] }
 0x13a   :  { %5287 = vst [vmem:[#allocation50_spill] sm:$0xff] %v4285_v44  ;;  %2676 = vrsqrt.f32 %v4268_v33  ;;  %v4292_v11 = vadd.f32 %v1746_v24, %v1675_v21  ;;  %v4294_v34 = vadd.f32 %v1748_v39, %v1676_v56  ;;  %v1265_v2 = vadd.f32 %v1217_v5, %v4256_v50  ;;  %v4315_v21 = vld [vmem:[#allocation3 + $0x148] sm:$0x3] }
 0x13b   :  { %5288 = vst [vmem:[#allocation51_spill] sm:$0xff] %v4288_v26  ;;  %v1218_v44 = vadd.f32 %v4238_v36, %v4191_v8  ;;  %v1591_v59 = vsel %vm646_vm0, %v1588_v58, %v1590_v0  ;;  %v1677_v12 = vadd.f32 %v1589_v1, %v4238_v36  ;;  %v1752_v25 = vrot.slane %v4256_v50, 2 }
 0x13c   :  { %v4306_v27 = vpop.eup %2668  ;;  %v1379_v46 = vrot.slane %v1263_v23, 2  ;;  %v1219_v39 = vadd.f32 %v4240_v6, %v4199_v22  ;;  %v1380_v56 = vrot.slane %v4281_v17, 2  ;;  %v1751_v15 = vsel %vm447_vm1, %v1749_v42, %v1750_v10 }
 0x13d   :  { %5289 = vst [vmem:[#allocation52_spill] sm:$0xff] %v4306_v27  ;;  %v4312_v52 = vpop.eup %2670  ;;  %v2379_v5 = vadd.f32 1e-09, %v2347_v4  ;;  %v1901_v8 = vmul.f32 %v1459_v61, %v1459_v61  ;;  %v1592_v58 = vrot.slane %v4297_v57, 1  ;;  %v1593_v24 = vrot.slane %v4299_v41, 1 }
 0x13e   :  { %5290 = vst [vmem:[#allocation53_spill] sm:$0xff] %v4312_v52  ;;  %v1869_v0 = vsub.f32 %v4115_v3, %v4292_v11  ;;  %v1870_v22 = vsub.f32 %v4123_v7, %v4294_v34  ;;  %v1382_v1 = vrot.slane %v1265_v2, 2  ;;  %v1678_v33 = vadd.f32 %v1591_v59, %v4240_v6 }
 0x13f   :  { %v1220_v42 = vadd.f32 %v4256_v50, %v4209_v60  ;;  %v1753_v4 = vsel %vm447_vm1, %v1750_v10, %v1752_v25  ;;  %v4326_v61 = vadd.f32 %v1751_v15, %v1677_v12  ;;  %v1266_v52 = vadd.f32 %v1218_v44, %v4297_v57 }
 0x140   :  { %v4329_v27 = vpop.eup %2672  ;;  %2678 = vrsqrt.f32 %v4288_v26  ;;  %v1381_v3 = vsel %vm447_vm1, %v1379_v46, %v1380_v56  ;;  %v4334_v7 = vadd.f32 %v1219_v39, %v4299_v41  ;;  %v1595_v59 = vrot.slane %v4315_v21, 1 }
 0x141   :  { %5291 = vst [vmem:[#allocation54_spill] sm:$0xff] %v4329_v27  ;;  %v4337_v2 = vpop.eup %2674  ;;  %v1902_v60 = vmul.f32 %v1460_v63, %v1460_v63  ;;  %v1754_v10 = vrot.slane %v4297_v57, 2  ;;  %v1594_v12 = vsel %vm646_vm0, %v1592_v58, %v1593_v24  ;;  %v1755_v44 = vrot.slane %v4299_v41, 2 }
 0x142   :  { %5292 = vst [vmem:[#allocation55_spill] sm:$0xff] %v4337_v2  ;;  %v1933_v25 = vmul.f32 %v1869_v0, %v1869_v0  ;;  %v1934_v15 = vmul.f32 %v1870_v22, %v1870_v22  ;;  %v1383_v27 = vsel %vm447_vm1, %v1380_v56, %v1382_v1  ;;  %v4343_v26 = vadd.f32 %v1753_v4, %v1678_v33  ;;  %v4357_v4 = vld [vmem:[#allocation3 + $0x150] sm:$0xff] }
 0x143   :  { %v1461_v46 = vsub.f32 %v1263_v23, %v1381_v3  ;;  %v1871_v39 = vsub.f32 %v4155_v18, %v4326_v61  ;;  %v1384_v35 = vrot.slane %v1266_v52, 2  ;;  %v1268_v2 = vadd.f32 %v1220_v42, %v4315_v21 }
 0x144   :  { %v1385_v63 = vrot.slane %v4334_v7, 2  ;;  %v1596_v47 = vsel %vm646_vm0, %v1593_v24, %v1595_v59  ;;  %v1679_v58 = vadd.f32 %v1594_v12, %v4297_v57  ;;  %v1757_v0 = vrot.slane %v4315_v21, 2  ;;  %v4359_v24 = vld [vmem:[#allocation3 + $0x158] sm:$0xff] }
 0x145   :  { %v2380_v56 = vadd.f32 1e-09, %v2348_v49  ;;  %2680 = vrcp.f32 %v2379_v5  ;;  %v1756_v33 = vsel %vm447_vm1, %v1754_v10, %v1755_v44  ;;  %v1965_v23 = vadd.f32 %v1933_v25, %v1901_v8 }
 0x146   :  { %v1966_v1 = vadd.f32 %v1934_v15, %v1902_v60  ;;  %v1462_v18 = vsub.f32 %v4281_v17, %v1383_v27  ;;  %v1872_v42 = vsub.f32 %v4171_v9, %v4343_v26  ;;  %v1903_v59 = vmul.f32 %v1461_v46, %v1461_v46 }
 0x147   :  { %v4361_v3 = vpop.eup %2676  ;;  %v1935_v12 = vmul.f32 %v1871_v39, %v1871_v39  ;;  %v1221_v49 = vadd.f32 %v4297_v57, %v4238_v36  ;;  %v1680_v5 = vadd.f32 %v1596_v47, %v4299_v41  ;;  %v1386_v8 = vsel %vm447_vm1, %v1384_v35, %v1385_v63 }
 0x148   :  { %5293 = vst [vmem:[#allocation56_spill] sm:$0xff] %v4361_v3  ;;  %v1387_v60 = vrot.slane %v1268_v2, 2  ;;  %v1758_v17 = vsel %vm447_vm1, %v1755_v44, %v1757_v0  ;;  %v4368_v27 = vadd.f32 %v1756_v33, %v1679_v58  ;;  %vm2066_vm3 = vcmp.eq.f32.partialorder %v3914_v43, inf  ;;  %v4377_v2 = vld [vmem:[#allocation3 + $0x160] sm:$0x3]  ;;  %v2745_v3 = vld [vmem:[#allocation2 + $0x168] sm:$0xff] }
 0x149   :  { %2682 = vrcp.f32 %v2380_v56  ;;  %v1222_v9 = vadd.f32 %v4299_v41, %v4240_v6  ;;  %v1597_v10 = vrot.slane %v4357_v4, 1  ;;  %v1598_v25 = vrot.slane %v4359_v24, 1 }
 0x14a   :  { %v4375_v36 = vmul.f32 0.11111111, %v1965_v23  ;;  %v1998_v47 = vmul.f32 0.11111111, %v1966_v1  ;;  %v1904_v15 = vmul.f32 %v1462_v18, %v1462_v18  ;;  %v1936_v35 = vmul.f32 %v1872_v42, %v1872_v42 }
 0x14b   :  { %v1967_v44 = vadd.f32 %v1935_v12, %v1903_v59  ;;  %v1223_v46 = vadd.f32 %v4315_v21, %v4256_v50  ;;  %v1463_v39 = vsub.f32 %v1266_v52, %v1386_v8  ;;  %v4381_v58 = vadd.f32 %v1758_v17, %v1680_v5 }
 0x14c   :  { %v1388_v6 = vsel %vm447_vm1, %v1385_v63, %v1387_v60  ;;  %v1873_v0 = vsub.f32 %v4292_v11, %v4368_v27  ;;  %v1269_v56 = vadd.f32 %v1221_v49, %v4357_v4  ;;  %v1759_v33 = vrot.slane %v4357_v4, 2 }
 0x14d   :  { %v4388_v23 = vpop.eup %2678  ;;  %v4391_v1 = vadd.f32 %v1222_v9, %v4359_v24  ;;  %v1599_v18 = vsel %vm646_vm0, %v1597_v10, %v1598_v25  ;;  %v1600_v50 = vrot.slane %v4377_v2, 1  ;;  %v1760_v52 = vrot.slane %v4359_v24, 2 }
 0x14e   :  { %5294 = vst [vmem:[#allocation57_spill] sm:$0xff] %v4388_v23  ;;  %v4397_v63 = vmul.f32 %v1998_v47, %v3637_v14  ;;  %v2349_v11 = vadd.f32 %v4375_v36, %v3615_v13  ;;  %v2350_v42 = vadd.f32 %v1998_v47, %v3637_v14  ;;  %v1968_v59 = vadd.f32 %v1936_v35, %v1904_v15 }
 0x14f   :  { %v4402_v12 = vmul.f32 0.11111111, %v1967_v44  ;;  %v1464_v49 = vsub.f32 %v4334_v7, %v1388_v6  ;;  %v1874_v5 = vsub.f32 %v4294_v34, %v4381_v58  ;;  %v1905_v8 = vmul.f32 %v1463_v39, %v1463_v39 }
 0x150   :  { %5295 = vst [vmem:[#allocation58_spill] sm:$0xff] %v4397_v63  ;;  %v1937_v60 = vmul.f32 %v1873_v0, %v1873_v0  ;;  %v1389_v17 = vrot.slane %v1269_v56, 2  ;;  %v1271_v9 = vadd.f32 %v1223_v46, %v4377_v2  ;;  %v1681_v10 = vadd.f32 %v1599_v18, %v4357_v4  ;;  %v5298_v46 = vld [vmem:[#allocation14_spill] sm:$0xff] }
 0x151   :  { %v1390_v22 = vrot.slane %v4391_v1, 2  ;;  %v1601_v23 = vsel %vm646_vm0, %v1598_v25, %v1600_v50  ;;  %v1761_v14 = vsel %vm447_vm1, %v1759_v33, %v1760_v52  ;;  %v1762_v47 = vrot.slane %v4377_v2, 2 }
 0x152   :  { %v4413_v15 = vpop.eup %2680  ;;  %v4419_v34 = vsel %vm2066_vm3, %v3914_v43, %v4231_v55  ;;  %2684 = vrsqrt.f32 %v4397_v63  ;;  %v2381_v7 = vadd.f32 1e-09, %v2349_v11  ;;  %v2000_v35 = vmul.f32 0.11111111, %v1968_v59 }
 0x153   :  { %5296 = vst [vmem:[#allocation59_spill] sm:$0xff] %v4413_v15  ;;  %5297 = vst [vmem:[#allocation60_spill] sm:$0xff] %v4419_v34  ;;  %v2382_v44 = vadd.f32 1e-09, %v2350_v42  ;;  %v2351_v25 = vadd.f32 %v4402_v12, %v5298_v46  ;;  %v1225_v39 = vadd.f32 %v4359_v24, %v4299_v41  ;;  %v1226_v6 = vadd.f32 %v4377_v2, %v4315_v21  ;;  %v5301_v21 = vld [vmem:[#allocation15_spill] sm:$0xff] }
 0x154   :  { %v1906_v0 = vmul.f32 %v1464_v49, %v1464_v49  ;;  %v1938_v33 = vmul.f32 %v1874_v5, %v1874_v5  ;;  %v1682_v18 = vadd.f32 %v1601_v23, %v4359_v24  ;;  %v4429_v55 = vadd.f32 %v1761_v14, %v1681_v10  ;;  %v4444_v5 = vld [vmem:[#allocation3 + $0x170] sm:$0xff] }
 0x155   :  { %v1969_v50 = vadd.f32 %v1937_v60, %v1905_v8  ;;  %v1391_v11 = vsel %vm447_vm1, %v1389_v17, %v1390_v22  ;;  %v1392_v59 = vrot.slane %v1271_v9, 2  ;;  %v1763_v42 = vsel %vm447_vm1, %v1760_v52, %v1762_v47  ;;  %v4446_v8 = vld [vmem:[#allocation3 + $0x178] sm:$0x3]  ;;  %v4452_v60 = vld [vmem:[#allocation3 + $0x168] sm:$0xff] }
 0x156   :  { %v4433_v15 = vpop.eup %2682  ;;  %v4437_v41 = vmul.f32 %v4022_v16, %v3937_v48  ;;  %2686 = vrcp.f32 %v2381_v7  ;;  %v4440_v49 = vmul.f32 %v2000_v35, %v5301_v21  ;;  %v1224_v23 = vadd.f32 %v4357_v4, %v4297_v57 }
 0x157   :  { %5299 = vst [vmem:[#allocation14_spill] sm:$0xff] %v4433_v15  ;;  %v4450_v52 = vmul.f32 %v4075_v32, %v3972_v19  ;;  %2688 = vrcp.f32 %v2382_v44  ;;  %v1273_v16 = vadd.f32 %v1225_v39, %v4444_v5  ;;  %v1274_v17 = vadd.f32 %v1226_v6, %v4446_v8 }
 0x158   :  { %5300 = vst [vmem:[#allocation61_spill] sm:$0xff] %v4437_v41  ;;  %5302 = vst [vmem:[#allocation15_spill] sm:$0xff] %v4440_v49  ;;  %v2352_v9 = vadd.f32 %v2000_v35, %v5301_v21  ;;  %v1465_v10 = vsub.f32 %v1269_v56, %v1391_v11  ;;  %v4457_v14 = vadd.f32 %v1763_v42, %v1682_v18  ;;  %v2383_v47 = vadd.f32 1e-09, %v2351_v25  ;;  %v5304_v35 = vld [vmem:[#allocation16_spill] sm:$0xff] }
 0x159   :  { %5303 = vst [vmem:[#allocation62_spill] sm:$0xff] %v4450_v52  ;;  %v1875_v57 = vsub.f32 %v4326_v61, %v4429_v55  ;;  %v1970_v7 = vadd.f32 %v1938_v33, %v1906_v0  ;;  %v2001_v15 = vmul.f32 0.11111111, %v1969_v50  ;;  %v1393_v32 = vsel %vm447_vm1, %v1390_v22, %v1392_v59 }
 0x15a   :  { %2690 = vrsqrt.f32 %v4440_v49  ;;  %v1272_v44 = vadd.f32 %v1224_v23, %v4452_v60  ;;  %v1602_v39 = vrot.slane %v4452_v60, 1  ;;  %v1603_v6 = vrot.slane %v4444_v5, 1 }
 0x15b   :  { %v2353_v56 = vadd.f32 %v2001_v15, %v5304_v35  ;;  %v1395_v18 = vrot.slane %v1273_v16, 2  ;;  %v1397_v11 = vrot.slane %v1274_v17, 2  ;;  %v1605_v42 = vrot.slane %v4446_v8, 1 }
 0x15c   :  { %v1466_v61 = vsub.f32 %v4391_v1, %v1393_v32  ;;  %v1876_v25 = vsub.f32 %v4343_v26, %v4457_v14  ;;  %v1907_v22 = vmul.f32 %v1465_v10, %v1465_v10  ;;  %v1939_v0 = vmul.f32 %v1875_v57, %v1875_v57  ;;  %v5307_v32 = vld [vmem:[#allocation18_spill] sm:$0xff] }
 0x15d   :  { %v4473_v33 = vmul.f32 %v4375_v36, %v3615_v13  ;;  %v2384_v50 = vadd.f32 1e-09, %v2352_v9  ;;  %2692 = vrcp.f32 %v2383_v47  ;;  %v2002_v59 = vmul.f32 0.11111111, %v1970_v7 }
 0x15e   :  { %v1394_v21 = vrot.slane %v1272_v44, 2  ;;  %v1764_v23 = vrot.slane %v4452_v60, 2  ;;  %v1604_v17 = vsel %vm646_vm0, %v1602_v39, %v1603_v6  ;;  %v1765_v49 = vrot.slane %v4444_v5, 2 }
 0x15f   :  { %5305 = vst [vmem:[#allocation16_spill] sm:$0xff] %v4473_v33  ;;  %v4478_v1 = vpop.eup %2684  ;;  %v2354_v26 = vadd.f32 %v2002_v59, %v5307_v32  ;;  %v1398_v10 = vsel %vm447_vm1, %v1395_v18, %v1397_v11  ;;  %v1606_v57 = vsel %vm646_vm0, %v1603_v6, %v1605_v42  ;;  %v1767_v13 = vrot.slane %v4446_v8, 2 }
 0x160   :  { %5306 = vst [vmem:[#allocation63_spill] sm:$0xff] %v4478_v1  ;;  %v2385_v36 = vadd.f32 1e-09, %v2353_v56  ;;  %v1908_v9 = vmul.f32 %v1466_v61, %v1466_v61  ;;  %v1940_v47 = vmul.f32 %v1876_v25, %v1876_v25  ;;  %v1971_v7 = vadd.f32 %v1939_v0, %v1907_v22  ;;  %v2744_v1 = vld [vmem:[#allocation2 + $0x150] sm:$0xff]  ;;  %v297_v25 = vld [vmem:[#allocation2 + $0x180] sm:$0xff]  ;;  %v298_v22 = vld [vmem:[#allocation2 + $0x188] sm:$0xff] }
 0x161   :  { %v4486_v63 = vmul.f32 %v4402_v12, %v5298_v46  ;;  %2694 = vrcp.f32 %v2384_v50  ;;  %v1683_v39 = vadd.f32 %v1604_v17, %v4452_v60  ;;  %v345_v33 = vadd.f32 %v2745_v3, %v2744_v1  ;;  %v2746_v0 = vld [vmem:[#allocation2 + $0x158] sm:$0xff]  ;;  %v2747_v50 = vld [vmem:[#allocation2 + $0x170] sm:$0xff]  ;;  %v2748_v1 = vld [vmem:[#allocation2 + $0x160] sm:$0x3] }
 0x162   :  { %v1396_v11 = vsel %vm447_vm1, %v1394_v21, %v1395_v18  ;;  %v1468_v20 = vsub.f32 %v1273_v16, %v1398_v10  ;;  %v1684_v6 = vadd.f32 %v1606_v57, %v4444_v5  ;;  %v1766_v56 = vsel %vm447_vm1, %v1764_v23, %v1765_v49  ;;  %v1179_v57 = vld [vmem:[#allocation3 + $0x180] sm:$0xff] }
 0x163   :  { %5308 = vst [vmem:[#allocation18_spill] sm:$0xff] %v4486_v63  ;;  %v4492_v42 = vpop.eup %2686  ;;  %v4495_v61 = vmul.f32 %v2001_v15, %v5304_v35  ;;  %v4498_v12 = vmul.f32 %v2002_v59, %v5307_v32  ;;  %v1768_v46 = vsel %vm447_vm1, %v1765_v49, %v1767_v13  ;;  %v346_v18 = vadd.f32 %v2747_v50, %v2746_v0  ;;  %v299_v15 = vld [vmem:[#allocation2 + $0x190] sm:$0x3]  ;;  %v2749_v32 = vld [vmem:[#allocation2 + $0x178] sm:$0x3] }
 0x164   :  { %5309 = vst [vmem:[#allocation64_spill] sm:$0xff] %v4492_v42  ;;  %v4501_v16 = vpop.eup %2688  ;;  %v4503_v21 = vadd.f32 1e-09, %v2354_v26  ;;  %2696 = vrcp.f32 %v2385_v36  ;;  %v4505_v23 = vadd.f32 %v1940_v47, %v1908_v9  ;;  %v4507_v17 = vmul.f32 0.11111111, %v1971_v7  ;;  %v1180_v13 = vld [vmem:[#allocation3 + $0x188] sm:$0xff] }
 0x165   :  { %5310 = vst [vmem:[#allocation65_spill] sm:$0xff] %v4495_v61  ;;  %5311 = vst [vmem:[#allocation66_spill] sm:$0xff] %v4498_v12  ;;  %v4509_v35 = vsub.f32 %v1272_v44, %v1396_v11  ;;  %v4511_v59 = vadd.f32 %v1766_v56, %v1683_v39  ;;  %v4513_v49 = vadd.f32 %v345_v33, %v297_v25  ;;  %v727_v36 = vrot.slane %v297_v25, 1  ;;  %v1181_v47 = vld [vmem:[#allocation3 + $0x190] sm:$0x3] }
 0x166   :  { %5312 = vst [vmem:[#allocation67_spill] sm:$0xff] %v4501_v16  ;;  %v347_v10 = vadd.f32 %v2749_v32, %v2748_v1  ;;  %v4515_v0 = vadd.f32 %v1768_v46, %v1684_v6  ;;  %v4517_v26 = vmul.f32 %v1468_v20, %v1468_v20  ;;  %v728_v9 = vrot.slane %v298_v22, 1 }
 0x167   :  { %v4519_v7 = vpop.eup %2690  ;;  %v4521_v44 = vadd.f32 %v346_v18, %v298_v22  ;;  %v730_v39 = vrot.slane %v299_v15, 1  ;;  %v1227_v33 = vadd.f32 %v4452_v60, %v4357_v4  ;;  %v1228_v11 = vadd.f32 %v4444_v5, %v4359_v24 }
 0x168   :  { %5313 = vst [vmem:[#allocation68_spill] sm:$0xff] %v4519_v7  ;;  %v889_v56 = vrot.slane %v297_v25, 2  ;;  %v1607_v1 = vrot.slane %v1179_v57, 1  ;;  %v1229_v20 = vadd.f32 %v4446_v8, %v4377_v2  ;;  %v1608_v6 = vrot.slane %v1180_v13, 1 }
 0x169   :  { %v518_v46 = vrot.slane %v4513_v49, 2  ;;  %v348_v16 = vadd.f32 %v2745_v3, %v297_v25  ;;  %v395_v42 = vadd.f32 %v347_v10, %v299_v15  ;;  %v1610_v7 = vrot.slane %v1181_v47, 1 }
 0x16a   :  { %v4530_v18 = vpop.eup %2692  ;;  %v350_v12 = vadd.f32 %v2749_v32, %v299_v15  ;;  %v729_v61 = vsel %vm646_vm0, %v727_v36, %v728_v9  ;;  %v890_v4 = vrot.slane %v298_v22, 2  ;;  %v892_v63 = vrot.slane %v299_v15, 2 }
 0x16b   :  { %5314 = vst [vmem:[#allocation69_spill] sm:$0xff] %v4530_v18  ;;  %v519_v24 = vrot.slane %v4521_v44, 2  ;;  %v731_v62 = vsel %vm646_vm0, %v728_v9, %v730_v39  ;;  %v1275_v31 = vadd.f32 %v1227_v33, %v1179_v57  ;;  %v1276_v51 = vadd.f32 %v1228_v11, %v1180_v13 }
 0x16c   :  { %v1769_v2 = vrot.slane %v1179_v57, 2  ;;  %v1277_v29 = vadd.f32 %v1229_v20, %v1181_v47  ;;  %v1609_v52 = vsel %vm646_vm0, %v1607_v1, %v1608_v6  ;;  %v1770_v3 = vrot.slane %v1180_v13, 2 }
 0x16d   :  { %v521_v10 = vrot.slane %v395_v42, 2  ;;  %v805_v19 = vadd.f32 %v729_v61, %v297_v25  ;;  %v1611_v18 = vsel %vm646_vm0, %v1608_v6, %v1610_v7  ;;  %v1772_v32 = vrot.slane %v1181_v47, 2 }
 0x16e   :  { %v4537_v34 = vpop.eup %2694  ;;  %v806_v36 = vadd.f32 %v731_v62, %v298_v22  ;;  %v891_v15 = vsel %vm447_vm1, %v889_v56, %v890_v4  ;;  %v893_v41 = vsel %vm447_vm1, %v890_v4, %v892_v63  ;;  %v349_v9 = vadd.f32 %v2747_v50, %v298_v22  ;;  %v2751_v56 = vld [vmem:[#allocation2 + $0x1a8] sm:$0x3] }
 0x16f   :  { %v1399_v39 = vrot.slane %v1275_v31, 2  ;;  %v1232_v33 = vadd.f32 %v1181_v47, %v4446_v8  ;;  %v1400_v11 = vrot.slane %v1276_v51, 2  ;;  %v1685_v20 = vadd.f32 %v1609_v52, %v1179_v57  ;;  %v2750_v52 = vld [vmem:[#allocation2] sm:$0xff] }
 0x170   :  { %v1402_v1 = vrot.slane %v1277_v29, 2  ;;  %v1686_v54 = vadd.f32 %v1611_v18, %v1180_v13  ;;  %v1771_v42 = vsel %vm447_vm1, %v1769_v2, %v1770_v3  ;;  %v1231_v61 = vadd.f32 %v1180_v13, %v4444_v5 }
 0x171   :  { %v4544_v25 = vpop.eup %2696  ;;  %v1878_v62 = vsub.f32 %v4381_v58, %v4515_v0  ;;  %v520_v7 = vsel %vm447_vm1, %v518_v46, %v519_v24  ;;  %v522_v63 = vsel %vm447_vm1, %v519_v24, %v521_v10  ;;  %v1773_v22 = vsel %vm447_vm1, %v1770_v3, %v1772_v32  ;;  %v2752_v46 = vld [vmem:[#allocation3 + $0x1a8] sm:$0x3] }
 0x172   :  { %v967_v8 = vadd.f32 %v891_v15, %v805_v19  ;;  %v968_v50 = vadd.f32 %v893_v41, %v806_v36  ;;  %v396_v29 = vadd.f32 %v2750_v52, %v348_v16  ;;  %v397_v47 = vadd.f32 %v2750_v52, %v349_v9 }
 0x173   :  { %v398_v6 = vadd.f32 %v2751_v56, %v350_v12  ;;  %v1230_v5 = vadd.f32 %v1179_v57, %v4452_v60  ;;  %v1401_v13 = vsel %vm447_vm1, %v1399_v39, %v1400_v11  ;;  %v1847_v18 = vadd.f32 %v1771_v42, %v1685_v20  ;;  %v5315_v12 = vld [vmem:[#allocation12_spill] sm:$0xff]  ;;  %v5316_v60 = vld [vmem:[#allocation17_spill] sm:$0xff] }
 0x174   :  { %v1403_v58 = vsel %vm447_vm1, %v1400_v11, %v1402_v1  ;;  %v1848_v4 = vadd.f32 %v1773_v22, %v1686_v54  ;;  %v1280_v2 = vadd.f32 %v2752_v46, %v1232_v33  ;;  %v1279_v24 = vadd.f32 %v2750_v52, %v1231_v61 }
 0x175   :  { %v1942_v10 = vmul.f32 %v1878_v62, %v1878_v62  ;;  %v1877_v19 = vsub.f32 %v4368_v27, %v4511_v59  ;;  %v588_v41 = vsub.f32 %v4513_v49, %v520_v7  ;;  %v589_v16 = vsub.f32 %v4521_v44, %v522_v63 }
 0x176   :  { %v999_v3 = vsub.f32 %v5315_v12, %v967_v8  ;;  %v1000_v57 = vsub.f32 %v5316_v60, %v968_v50  ;;  %v523_v32 = vrot.slane %v396_v29, 2  ;;  %v524_v36 = vrot.slane %v397_v47, 2 }
 0x177   :  { %v526_v15 = vrot.slane %v398_v6, 2  ;;  %v1469_v9 = vsub.f32 %v1275_v31, %v1401_v13  ;;  %v1470_v54 = vsub.f32 %v1276_v51, %v1403_v58  ;;  %v1278_v39 = vadd.f32 %v2750_v52, %v1230_v5  ;;  %v5317_v52 = vld [vmem:[#allocation20_spill] sm:$0xff]  ;;  %v5318_v5 = vld [vmem:[#allocation19_spill] sm:$0xff] }
 0x178   :  { %v1879_v33 = vsub.f32 %v4429_v55, %v1847_v18  ;;  %v1880_v11 = vsub.f32 %v4457_v14, %v1848_v4  ;;  %v1405_v20 = vrot.slane %v1279_v24, 2  ;;  %v1407_v27 = vrot.slane %v1280_v2, 2  ;;  %v5319_v18 = vld [vmem:[#allocation13_spill] sm:$0xff] }
 0x179   :  { %v2004_v49 = vmul.f32 0.11111111, %v4505_v23  ;;  %v1909_v44 = vmul.f32 %v4509_v35, %v4509_v35  ;;  %v1974_v1 = vadd.f32 %v1942_v10, %v4517_v26  ;;  %v1941_v42 = vmul.f32 %v1877_v19, %v1877_v19 }
 0x17a   :  { %v1031_v61 = vmul.f32 %v588_v41, %v588_v41  ;;  %v1032_v62 = vmul.f32 %v589_v16, %v589_v16  ;;  %v1063_v7 = vmul.f32 %v999_v3, %v999_v3  ;;  %v525_v31 = vsel %vm447_vm1, %v523_v32, %v524_v36  ;;  %v5320_v41 = vld [vmem:[#allocation4_spill] sm:$0xff] }
 0x17b   :  { %v1064_v51 = vmul.f32 %v1000_v57, %v1000_v57  ;;  %v1911_v63 = vmul.f32 %v1469_v9, %v1469_v9  ;;  %v527_v55 = vsel %vm447_vm1, %v524_v36, %v526_v15  ;;  %v1404_v14 = vrot.slane %v1278_v39, 2 }
 0x17c   :  { %v1912_v22 = vmul.f32 %v1470_v54, %v1470_v54  ;;  %v1943_v8 = vmul.f32 %v1879_v33, %v1879_v33  ;;  %v1944_v50 = vmul.f32 %v1880_v11, %v1880_v11  ;;  %v1408_v23 = vsel %vm447_vm1, %v1405_v20, %v1407_v27 }
 0x17d   :  { %v2356_v35 = vadd.f32 %v2004_v49, %v5317_v52  ;;  %v2006_v56 = vmul.f32 0.11111111, %v1974_v1  ;;  %v1973_v26 = vadd.f32 %v1941_v42, %v1909_v44  ;;  %v590_v6 = vsub.f32 %v396_v29, %v525_v31  ;;  %v5322_v42 = vld [vmem:[#allocation23_spill] sm:$0xff] }
 0x17e   :  { %2698 = vrcp.f32 %v4503_v21  ;;  %v2355_v13 = vadd.f32 %v4507_v17, %v5318_v5  ;;  %v1882_v58 = vsub.f32 %v4515_v0, %v5319_v18  ;;  %v591_v4 = vsub.f32 %v397_v47, %v527_v55 }
 0x17f   :  { %vm2054_vm4 = vcmp.eq.f32.partialorder %v3810_v53, 0.0  ;;  %v2358_v46 = vadd.f32 %v2006_v56, %v3992_v28  ;;  %v1095_v2 = vadd.f32 %v1063_v7, %v1031_v61  ;;  %v1406_v10 = vsel %vm447_vm1, %v1404_v14, %v1405_v20 }
 0x180   :  { %v1472_v19 = vsub.f32 %v1279_v24, %v1408_v23  ;;  %v1881_v29 = vsub.f32 %v4511_v59, %v5320_v41  ;;  %v1096_v16 = vadd.f32 %v1064_v51, %v1032_v62  ;;  %v1975_v21 = vadd.f32 %v1943_v8, %v1911_v63  ;;  %v5324_v8 = vld [vmem:[#allocation22_spill] sm:$0xff] }
 0x181   :  { %v1976_v12 = vadd.f32 %v1944_v50, %v1912_v22  ;;  %v4582_v3 = vmul.f32 %v4507_v17, %v5318_v5  ;;  %v2388_v0 = vadd.f32 1e-09, %v2356_v35  ;;  %v2005_v47 = vmul.f32 0.11111111, %v1973_v26 }
 0x182   :  { %v1033_v60 = vmul.f32 %v590_v6, %v590_v6  ;;  %v4585_v57 = vmul.f32 %v2004_v49, %v5317_v52  ;;  %v4587_v32 = vadd.f32 1e-09, %v2355_v13  ;;  %v1034_v36 = vmul.f32 %v591_v4, %v591_v4  ;;  %v5327_v13 = vld [vmem:[#allocation61_spill] sm:$0xff]  ;;  %v5329_v4 = vld [vmem:[#allocation34_spill] sm:$0xff] }
 0x183   :  { %v1471_v24 = vsub.f32 %v1278_v39, %v1406_v10  ;;  %vm2080_vm5 = vcmp.eq.f32.partialorder %v3937_v48, inf  ;;  %v2390_v59 = vadd.f32 1e-09, %v2358_v46  ;;  %v1946_v15 = vmul.f32 %v1882_v58, %v1882_v58  ;;  %v5321_v39 = vld [vmem:[#allocation27_spill] sm:$0xff]  ;;  %v5328_v58 = vld [vmem:[#allocation24_spill] sm:$0xff] }
 0x184   :  { %v1127_v9 = vmul.f32 0.11111111, %v1095_v2  ;;  %v1914_v54 = vmul.f32 %v1472_v19, %v1472_v19  ;;  %vm2068_vm6 = vcmp.eq.f32.partialorder %v3914_v43, 0.0  ;;  %v1945_v17 = vmul.f32 %v1881_v29, %v1881_v29  ;;  %v5330_v19 = vld [vmem:[#allocation60_spill] sm:$0xff] }
 0x185   :  { %v1128_v33 = vmul.f32 0.11111111, %v1096_v16  ;;  %v2007_v11 = vmul.f32 0.11111111, %v1975_v21  ;;  %v2008_v20 = vmul.f32 0.11111111, %v1976_v12  ;;  %2700 = vrcp.f32 %v2388_v0 }
 0x186   :  { %v4592_v27 = vmul.f32 %v2005_v47, %v4165_v38  ;;  %v4595_v49 = vadd.f32 %v2005_v47, %v4165_v38  ;;  %v1097_v44 = vadd.f32 %v5321_v39, %v1033_v60  ;;  %v1098_v61 = vadd.f32 %v5322_v42, %v1034_v36  ;;  %v5333_v47 = vld [vmem:[#allocation26_spill] sm:$0xff] }
 0x187   :  { %v2360_v1 = vadd.f32 %v2008_v20, %v1128_v33  ;;  %v1913_v62 = vmul.f32 %v1471_v24, %v1471_v24  ;;  %vm2045_vm7 = vcmp.eq.f32.partialorder %v3807_v30, inf  ;;  %v4601_v7 = vmul.f32 %v2006_v56, %v3992_v28  ;;  %v5326_v56 = vld [vmem:[#allocation41_spill] sm:$0xff]  ;;  %v5334_v24 = vld [vmem:[#allocation62_spill] sm:$0xff] }
 0x188   :  { %2702 = vrcp.f32 %v2390_v59  ;;  %v1978_v31 = vadd.f32 %v1946_v15, %v1914_v54  ;;  %v2046_v51 = vsel %vm2045_vm7, %v3807_v30, %v4203_v37  ;;  %v4605_v63 = vmul.f32 %v2007_v11, %v1127_v9  ;;  %v5325_v37 = vld [vmem:[#allocation31_spill] sm:$0xff]  ;;  %v5335_v54 = vld [vmem:[#allocation30_spill] sm:$0xff] }
 0x189   :  { %vm2047_vm8 = vcmp.eq.f32.partialorder %v3807_v30, 0.0  ;;  %v2048_v38 = vand.u32 2147483648, %v3807_v30  ;;  %v5323_v55 = vand.u32 2147483648, %v3810_v53  ;;  %v4616_v28 = vadd.f32 %v2007_v11, %v1127_v9  ;;  %v5338_v11 = vld [vmem:[#allocation6_spill] sm:$0xff] }
 0x18a   :  { %v1129_v22 = vmul.f32 0.11111111, %v1097_v44  ;;  %vm2059_vm9 = vcmp.eq.f32.partialorder %v3895_v45, inf  ;;  %v2072_v50 = vmul.f32 %v5325_v37, %v5324_v8  ;;  %v2392_v23 = vadd.f32 1e-09, %v2360_v1  ;;  %v5339_v1 = vld [vmem:[#allocation7_spill] sm:$0xff] }
 0x18b   :  { %v4614_v14 = vsel %vm2054_vm4, %v5323_v55, %v4221_v40  ;;  %v1130_v52 = vmul.f32 0.11111111, %v1098_v61  ;;  %v1977_v35 = vadd.f32 %v1945_v17, %v1913_v62  ;;  %v2060_v30 = vsel %vm2059_vm9, %v3895_v45, %v5326_v56  ;;  %v4623_v26 = vpop.eup %2698  ;;  %v5340_v42 = vld [vmem:[#allocation42_spill] sm:$0xff] }
 0x18c   :  { %v4625_v6 = vmul.f32 %v2008_v20, %v1128_v33  ;;  %v2010_v53 = vmul.f32 0.11111111, %v1978_v31  ;;  %v4627_v40 = vsel %vm2047_vm8, %v2048_v38, %v2046_v51  ;;  %v2062_v5 = vand.u32 2147483648, %v3895_v45  ;;  %v5337_v33 = vld [vmem:[#allocation5_spill] sm:$0xff] }
 0x18d   :  { %vm2061_vm10 = vcmp.eq.f32.partialorder %v3895_v45, 0.0  ;;  %vm2073_vm11 = vcmp.eq.f32.partialorder %v5324_v8, inf  ;;  %v2081_v18 = vsel %vm2080_vm5, %v3937_v48, %v5327_v13  ;;  %v2086_v46 = vmul.f32 %v5329_v4, %v5328_v58 }
 0x18e   :  { %v2362_v2 = vadd.f32 %v2010_v53, %v1130_v52  ;;  %v4638_v10 = vsel %vm2061_vm10, %v2062_v5, %v2060_v30  ;;  %v5331_v41 = vand.u32 2147483648, %v3914_v43  ;;  %v2074_v45 = vsel %vm2073_vm11, %v5324_v8, %v2072_v50  ;;  %v5343_v30 = vld [vmem:[#allocation8_spill] sm:$0xff] }
 0x18f   :  { %2704 = vrcp.f32 %v2392_v23  ;;  %v2009_v16 = vmul.f32 0.11111111, %v1977_v35  ;;  %v2076_v21 = vand.u32 2147483648, %v5324_v8  ;;  %vm2082_vm12 = vcmp.eq.f32.partialorder %v3937_v48, 0.0  ;;  %v5342_v35 = vld [vmem:[#allocation43_spill] sm:$0xff] }
 0x190   :  { %v4645_v29 = vsel %vm2068_vm6, %v5331_v41, %v5330_v19  ;;  %vm2075_vm13 = vcmp.eq.f32.partialorder %v5324_v8, 0.0  ;;  %v5332_v12 = vand.u32 2147483648, %v3937_v48  ;;  %vm2087_vm14 = vcmp.eq.f32.partialorder %v5328_v58, inf  ;;  %v5336_v48 = vld [vmem:[#allocation37_spill] sm:$0xff]  ;;  %v5348_v41 = vld [vmem:[#allocation10_spill] sm:$0xff] }
 0x191   :  { %vm2094_vm15 = vcmp.eq.f32.partialorder %v5333_v47, inf  ;;  %v4657_v43 = vsel %vm2075_vm13, %v2076_v21, %v2074_v45  ;;  %v2088_v60 = vsel %vm2087_vm14, %v5328_v58, %v2086_v46  ;;  %v2090_v36 = vand.u32 2147483648, %v5328_v58  ;;  %v5347_v46 = vld [vmem:[#allocation16_spill] sm:$0xff] }
 0x192   :  { %v4653_v0 = vsel %vm2082_vm12, %v5332_v12, %v2081_v18  ;;  %v2095_v59 = vsel %vm2094_vm15, %v5333_v47, %v5334_v24  ;;  %v2394_v15 = vadd.f32 1e-09, %v2362_v2  ;;  %v2097_v9 = vand.u32 2147483648, %v5333_v47  ;;  %v4668_v39 = vpop.eup %2700  ;;  %v5345_v18 = vld [vmem:[#allocation9_spill] sm:$0xff]  ;;  %v5349_v45 = vld [vmem:[#allocation52_spill] sm:$0xff] }
 0x193   :  { %v2100_v17 = vmul.f32 %v5336_v48, %v5335_v54  ;;  %v2107_v20 = vmul.f32 %v5338_v11, %v5337_v33  ;;  %v4670_v44 = vmul.f32 %v2009_v16, %v1129_v22  ;;  %vm2089_vm0 = vcmp.eq.f32.partialorder %v5328_v58, 0.0  ;;  %v5346_v58 = vld [vmem:[#allocation47_spill] sm:$0xff]  ;;  %v5353_v11 = vld [vmem:[#allocation48_spill] sm:$0xff] }
 0x194   :  { %vm2096_vm1 = vcmp.eq.f32.partialorder %v5333_v47, 0.0  ;;  %v2114_v61 = vmul.f32 %v5340_v42, %v5339_v1  ;;  %v4676_v62 = vmul.f32 %v2010_v53, %v1130_v52  ;;  %v4678_v31 = vadd.f32 %v2009_v16, %v1129_v22  ;;  %v5341_v52 = vld [vmem:[#allocation38_spill] sm:$0xff]  ;;  %v5351_v48 = vld [vmem:[#allocation11_spill] sm:$0xff]  ;;  %v5355_v42 = vld [vmem:[#allocation65_spill] sm:$0xff] }
 0x195   :  { %v4680_v51 = vsel %vm2089_vm0, %v2090_v36, %v2088_v60  ;;  %v4682_v38 = vsel %vm2096_vm1, %v2097_v9, %v2095_v59  ;;  %v4684_v55 = vpop.eup %2702  ;;  %vm2101_vm2 = vcmp.eq.f32.partialorder %v5335_v54, inf  ;;  %vm2103_vm3 = vcmp.eq.f32.partialorder %v5335_v54, 0.0  ;;  %v5344_v53 = vld [vmem:[#allocation46_spill] sm:$0xff] }
 0x196   :  { %v2104_v8 = vand.u32 2147483648, %v5335_v54  ;;  %vm2108_vm4 = vcmp.eq.f32.partialorder %v5337_v33, inf  ;;  %2706 = vrcp.f32 %v2394_v15  ;;  %v2102_v37 = vsel %vm2101_vm2, %v5335_v54, %v2100_v17  ;;  %v5350_v9 = vld [vmem:[#allocation18_spill] sm:$0xff]  ;;  %v5352_v17 = vld [vmem:[#allocation53_spill] sm:$0xff] }
 0x197   :  { %v2109_v22 = vsel %vm2108_vm4, %v5337_v33, %v2107_v20  ;;  %vm2115_vm5 = vcmp.eq.f32.partialorder %v5339_v1, inf  ;;  %v2111_v50 = vand.u32 2147483648, %v5337_v33  ;;  %v2121_v56 = vmul.f32 %v5342_v35, %v5341_v52  ;;  %v5354_v20 = vld [vmem:[#allocation56_spill] sm:$0xff] }
 0x198   :  { %v2116_v23 = vsel %vm2115_vm5, %v5339_v1, %v2114_v61  ;;  %v2128_v5 = vmul.f32 %v5344_v53, %v5343_v30  ;;  %vm2110_vm6 = vcmp.eq.f32.partialorder %v5337_v33, 0.0  ;;  %v2118_v13 = vand.u32 2147483648, %v5339_v1 }
 0x199   :  { %v2135_v4 = vmul.f32 %v5346_v58, %v5345_v18  ;;  %2708 = vrsqrt.f32 %v5347_v46  ;;  %v4704_v2 = vsel %vm2103_vm3, %v2104_v8, %v2102_v37  ;;  %v4706_v19 = vsel %vm2110_vm6, %v2111_v50, %v2109_v22  ;;  %v5359_v58 = vld [vmem:[#allocation58_spill] sm:$0xff] }
 0x19a   :  { %vm2117_vm7 = vcmp.eq.f32.partialorder %v5339_v1, 0.0  ;;  %v2142_v16 = vmul.f32 %v5349_v45, %v5348_v41  ;;  %vm2122_vm8 = vcmp.eq.f32.partialorder %v5341_v52, inf  ;;  %v2125_v12 = vand.u32 2147483648, %v5341_v52  ;;  %v5361_v45 = vld [vmem:[#allocation15_spill] sm:$0xff] }
 0x19b   :  { %v4711_v21 = vsel %vm2117_vm7, %v2118_v13, %v2116_v23  ;;  %vm2129_vm9 = vcmp.eq.f32.partialorder %v5343_v30, inf  ;;  %v2123_v47 = vsel %vm2122_vm8, %v5341_v52, %v2121_v56  ;;  %v2132_v36 = vand.u32 2147483648, %v5343_v30  ;;  %v5356_v23 = vld [vmem:[#allocation66_spill] sm:$0xff]  ;;  %v5357_v56 = vld [vmem:[#allocation51_spill] sm:$0xff] }
 0x19c   :  { %v2130_v60 = vsel %vm2129_vm9, %v5343_v30, %v2128_v5  ;;  %vm2136_vm10 = vcmp.eq.f32.partialorder %v5345_v18, inf  ;;  %v4720_v24 = vpop.eup %2704  ;;  %v2139_v15 = vand.u32 2147483648, %v5345_v18  ;;  %vm2143_vm11 = vcmp.eq.f32.partialorder %v5348_v41, inf }
 0x19d   :  { %v2137_v59 = vsel %vm2136_vm10, %v5345_v18, %v2135_v4  ;;  %2710 = vrsqrt.f32 %v5350_v9  ;;  %v2144_v54 = vsel %vm2143_vm11, %v5348_v41, %v2142_v16  ;;  %v2149_v33 = vmul.f32 %v5352_v17, %v5351_v48  ;;  %v5360_v4 = vld [vmem:[#allocation63_spill] sm:$0xff]  ;;  %v5362_v16 = vld [vmem:[#allocation68_spill] sm:$0xff] }
 0x19e   :  { %v2156_v1 = vmul.f32 %v5354_v20, %v5353_v11  ;;  %2712 = vrsqrt.f32 %v5355_v42  ;;  %vm2124_vm12 = vcmp.eq.f32.partialorder %v5341_v52, 0.0  ;;  %vm2131_vm13 = vcmp.eq.f32.partialorder %v5343_v30, 0.0  ;;  %v5358_v30 = vld [vmem:[#allocation57_spill] sm:$0xff] }
 0x19f   :  { %vm2138_vm14 = vcmp.eq.f32.partialorder %v5345_v18, 0.0  ;;  %v2146_v61 = vand.u32 2147483648, %v5348_v41  ;;  %v4736_v8 = vsel %vm2124_vm12, %v2125_v12, %v2123_v47  ;;  %v4738_v37 = vsel %vm2131_vm13, %v2132_v36, %v2130_v60 }
 0x1a0   :  { %v4740_v22 = vsel %vm2138_vm14, %v2139_v15, %v2137_v59  ;;  %vm2145_vm15 = vcmp.eq.f32.partialorder %v5348_v41, 0.0  ;;  %vm2150_vm0 = vcmp.eq.f32.partialorder %v5351_v48, inf  ;;  %vm2157_vm1 = vcmp.eq.f32.partialorder %v5353_v11, inf }
 0x1a1   :  { %v4743_v50 = vsel %vm2145_vm15, %v2146_v61, %v2144_v54  ;;  %2714 = vrsqrt.f32 %v5356_v23  ;;  %v2151_v52 = vsel %vm2150_vm0, %v5351_v48, %v2149_v33  ;;  %v2158_v35 = vsel %vm2157_vm1, %v5353_v11, %v2156_v1 }
 0x1a2   :  { %v2163_v53 = vmul.f32 %v5358_v30, %v5357_v56  ;;  %2716 = vrsqrt.f32 %v4582_v3  ;;  %vm2152_vm2 = vcmp.eq.f32.partialorder %v5351_v48, 0.0  ;;  %v2153_v5 = vand.u32 2147483648, %v5351_v48 }
 0x1a3   :  { %v2160_v13 = vand.u32 2147483648, %v5353_v11  ;;  %2718 = vrsqrt.f32 %v4585_v57  ;;  %v4757_v18 = vpop.eup %2706  ;;  %vm2159_vm3 = vcmp.eq.f32.partialorder %v5353_v11, 0.0  ;;  %v2177_v41 = vmul.f32 %v5360_v4, %v5359_v58 }
 0x1a4   :  { %v2191_v12 = vmul.f32 %v5362_v16, %v5361_v45  ;;  %2720 = vrsqrt.f32 %v4592_v27  ;;  %v4765_v47 = vsel %vm2152_vm2, %v2153_v5, %v2151_v52  ;;  %vm2164_vm4 = vcmp.eq.f32.partialorder %v5357_v56, inf }
 0x1a5   :  { %v4767_v60 = vsel %vm2159_vm3, %v2160_v13, %v2158_v35  ;;  %vm2166_vm5 = vcmp.eq.f32.partialorder %v5357_v56, 0.0  ;;  %v2165_v59 = vsel %vm2164_vm4, %v5357_v56, %v2163_v53  ;;  %v2167_v15 = vand.u32 2147483648, %v5357_v56 }
 0x1a6   :  { %v2709_v36 = vpop.eup %2708  ;;  %vm2171_vm6 = vcmp.eq.f32.partialorder %v5347_v46, inf  ;;  %2722 = vrsqrt.f32 %v4601_v7  ;;  %vm2173_vm7 = vcmp.eq.f32.partialorder %v5347_v46, 0.0  ;;  %vm2178_vm8 = vcmp.eq.f32.partialorder %v5359_v58, inf }
 0x1a7   :  { %vm2192_vm9 = vcmp.eq.f32.partialorder %v5361_v45, inf  ;;  %2724 = vrsqrt.f32 %v4605_v63  ;;  %v2174_v54 = vand.u32 2147483648, %v5347_v46  ;;  %v2179_v48 = vsel %vm2178_vm8, %v5359_v58, %v2177_v41 }
 0x1a8   :  { %v2193_v17 = vsel %vm2192_vm9, %v5361_v45, %v2191_v12  ;;  %2726 = vrsqrt.f32 %v4625_v6  ;;  %v4783_v33 = vsel %vm2166_vm5, %v2167_v15, %v2165_v59  ;;  %v2170_v11 = vmul.f32 %v2709_v36, %v5347_v46 }
 0x1a9   :  { %v2181_v20 = vand.u32 2147483648, %v5359_v58  ;;  %v2195_v1 = vand.u32 2147483648, %v5361_v45  ;;  %vm2180_vm10 = vcmp.eq.f32.partialorder %v5359_v58, 0.0  ;;  %vm2185_vm11 = vcmp.eq.f32.partialorder %v5350_v9, inf }
 0x1aa   :  { %v2711_v61 = vpop.eup %2710  ;;  %v2188_v52 = vand.u32 2147483648, %v5350_v9  ;;  %vm2194_vm12 = vcmp.eq.f32.partialorder %v5361_v45, 0.0  ;;  %vm2187_vm13 = vcmp.eq.f32.partialorder %v5350_v9, 0.0  ;;  %vm2199_vm14 = vcmp.eq.f32.partialorder %v5355_v42, inf }
 0x1ab   :  { %v2713_v35 = vpop.eup %2712  ;;  %v4792_v56 = vsel %vm2180_vm10, %v2181_v20, %v2179_v48  ;;  %v4795_v30 = vsel %vm2194_vm12, %v2195_v1, %v2193_v17  ;;  %v2202_v53 = vand.u32 2147483648, %v5355_v42  ;;  %vm2201_vm15 = vcmp.eq.f32.partialorder %v5355_v42, 0.0 }
 0x1ac   :  { %v2209_v5 = vand.u32 2147483648, %v5356_v23  ;;  %vm2213_vm0 = vcmp.eq.f32.partialorder %v4582_v3, inf  ;;  %v2216_v13 = vand.u32 2147483648, %v4582_v3  ;;  %2728 = vrsqrt.f32 %v4670_v44 }
 0x1ad   :  { %v2172_v58 = vsel %vm2171_vm6, %v5347_v46, %v2170_v11  ;;  %v2184_v4 = vmul.f32 %v2711_v61, %v5350_v9  ;;  %vm2206_vm1 = vcmp.eq.f32.partialorder %v5356_v23, inf  ;;  %vm2220_vm2 = vcmp.eq.f32.partialorder %v4585_v57, inf }
 0x1ae   :  { %v2223_v41 = vand.u32 2147483648, %v4585_v57  ;;  %v2715_v45 = vpop.eup %2714  ;;  %v2198_v16 = vmul.f32 %v2713_v35, %v5355_v42  ;;  %vm2227_vm3 = vcmp.eq.f32.partialorder %v4592_v27, inf  ;;  %vm2222_vm4 = vcmp.eq.f32.partialorder %v4585_v57, 0.0 }
 0x1af   :  { %v2717_v59 = vpop.eup %2716  ;;  %2730 = vrsqrt.f32 %v4676_v62  ;;  %v2175_v20 = vsel %vm2173_vm7, %v2174_v54, %v2172_v58  ;;  %vm2208_vm5 = vcmp.eq.f32.partialorder %v5356_v23, 0.0  ;;  %vm2229_vm6 = vcmp.eq.f32.partialorder %v4592_v27, 0.0 }
 0x1b0   :  { %v2719_v11 = vpop.eup %2718  ;;  %vm2234_vm8 = vcmp.eq.f32.partialorder %v4601_v7, inf  ;;  %vm2241_vm9 = vcmp.eq.f32.partialorder %v4605_v63, inf  ;;  %v2267_v61 = vmul.f32 2.0, %v4627_v40  ;;  %v2268_v35 = vmul.f32 2.0, %v4614_v14 }
 0x1b1   :  { %v2721_v17 = vpop.eup %2720  ;;  %v2186_v46 = vsel %vm2185_vm11, %v5350_v9, %v2184_v4  ;;  %vm2215_vm7 = vcmp.eq.f32.partialorder %v4582_v3, 0.0  ;;  %vm2248_vm10 = vcmp.eq.f32.partialorder %v4625_v6, inf  ;;  %v2269_v54 = vmul.f32 2.0, %v4638_v10 }
 0x1b2   :  { %v2270_v58 = vmul.f32 2.0, %v4645_v29  ;;  %v2271_v48 = vmul.f32 2.0, %v4657_v43  ;;  %v2200_v40 = vsel %vm2199_vm14, %v5355_v42, %v2198_v16  ;;  %v2205_v14 = vmul.f32 %v2715_v45, %v5356_v23 }
 0x1b3   :  { %v2272_v1 = vmul.f32 2.0, %v4653_v0  ;;  %v2273_v4 = vmul.f32 2.0, %v4680_v51  ;;  %v2723_v15 = vpop.eup %2722  ;;  %v2212_v36 = vmul.f32 %v2717_v59, %v4582_v3  ;;  %v2219_v12 = vmul.f32 %v2719_v11, %v4585_v57 }
 0x1b4   :  { %v2274_v10 = vmul.f32 2.0, %v4682_v38  ;;  %v2275_v29 = vmul.f32 2.0, %v4704_v2  ;;  %v2725_v43 = vpop.eup %2724  ;;  %v2189_v16 = vsel %vm2187_vm13, %v2188_v52, %v2186_v46  ;;  %v2226_v45 = vmul.f32 %v2721_v17, %v4592_v27 }
 0x1b5   :  { %vm2243_vm12 = vcmp.eq.f32.partialorder %v4605_v63, 0.0  ;;  %v2276_v0 = vmul.f32 2.0, %v4706_v19  ;;  %v2277_v51 = vmul.f32 2.0, %v4711_v21  ;;  %v2727_v59 = vpop.eup %2726  ;;  %v2203_v11 = vsel %vm2201_vm15, %v2202_v53, %v2200_v40 }
 0x1b6   :  { %vm2250_vm14 = vcmp.eq.f32.partialorder %v4625_v6, 0.0  ;;  %vm2255_vm11 = vcmp.eq.f32.partialorder %v4670_v44, inf  ;;  %v2278_v38 = vmul.f32 2.0, %v4736_v8  ;;  %v4860_v2 = vmul.f32 2.0, %v4738_v37 }
 0x1b7   :  { %v2280_v9 = vmul.f32 2.0, %v4740_v22  ;;  %v2207_v19 = vsel %vm2206_vm1, %v5356_v23, %v2205_v14  ;;  %v4867_v21 = vmul.f32 2.0, %v4743_v50  ;;  %v4870_v42 = vmul.f32 2.0, %v4765_v47 }
 0x1b8   :  { %v4873_v52 = vmul.f32 2.0, %v4767_v60  ;;  %v2214_v8 = vsel %vm2213_vm0, %v4582_v3, %v2212_v36  ;;  %v2221_v37 = vsel %vm2220_vm2, %v4585_v57, %v2219_v12  ;;  %v2233_v22 = vmul.f32 %v2723_v15, %v4601_v7 }
 0x1b9   :  { %v2240_v53 = vmul.f32 %v2725_v43, %v4605_v63  ;;  %v2228_v50 = vsel %vm2227_vm3, %v4592_v27, %v2226_v45  ;;  %v2247_v47 = vmul.f32 %v2727_v59, %v4625_v6  ;;  %v4888_v60 = vmul.f32 2.0, %v4783_v33  ;;  %v2729_v46 = vpop.eup %2728  ;;  %v5365_v45 = vld [vmem:[#allocation25_spill] sm:$0xff] }
 0x1ba   :  { %v2299_v17 = vadd.f32 1e-09, %v2267_v61  ;;  %v2210_v12 = vsel %vm2208_vm5, %v2209_v5, %v2207_v19  ;;  %v2300_v36 = vadd.f32 1e-09, %v2268_v35  ;;  %v2301_v15 = vadd.f32 1e-09, %v2269_v54 }
 0x1bb   :  { %v2302_v40 = vadd.f32 1e-09, %v2270_v58  ;;  %v2217_v14 = vsel %vm2215_vm7, %v2216_v13, %v2214_v8  ;;  %v2224_v33 = vsel %vm2222_vm4, %v2223_v41, %v2221_v37  ;;  %v4902_v61 = vmul.f32 2.0, %v2175_v20  ;;  %v5364_v54 = vld [vmem:[#allocation21_spill] sm:$0xff]  ;;  %v5366_v19 = vld [vmem:[#allocation28_spill] sm:$0xff] }
 0x1bc   :  { %v4905_v43 = vmul.f32 2.0, %v4792_v56  ;;  %v5363_v23 = vand.u32 2147483648, %v4592_v27  ;;  %v2235_v3 = vsel %vm2234_vm8, %v4601_v7, %v2233_v22  ;;  %v2242_v57 = vsel %vm2241_vm9, %v4605_v63, %v2240_v53  ;;  %v2731_v41 = vpop.eup %2730 }
 0x1bd   :  { %v4919_v13 = vmul.f32 2.0, %v2189_v16  ;;  %v2249_v56 = vsel %vm2248_vm10, %v4625_v6, %v2247_v47  ;;  %v2254_v20 = vmul.f32 %v2729_v46, %v4670_v44  ;;  %v2303_v27 = vadd.f32 1e-09, %v2271_v48  ;;  %v5367_v16 = vld [vmem:[#allocation29_spill] sm:$0xff] }
 0x1be   :  { %v4911_v5 = vsel %vm2229_vm6, %v5363_v23, %v2228_v50  ;;  %v2304_v35 = vadd.f32 1e-09, %v2272_v1  ;;  %v4926_v58 = vmul.f32 %v5364_v54, %v2299_v17  ;;  %v4929_v59 = vmul.f32 %v5365_v45, %v2300_v36 }
 0x1bf   :  { %v4932_v8 = vmul.f32 %v5366_v19, %v2301_v15  ;;  %v4935_v37 = vmul.f32 %v5367_v16, %v2302_v40  ;;  %v5368_v22 = vand.u32 2147483648, %v4601_v7  ;;  %vm5369_vm13 = vcmp.eq.f32.partialorder %v4601_v7, 0.0  ;;  %v5372_v40 = vld [vmem:[#allocation32_spill] sm:$0xff] }
 0x1c0   :  { %v2288_v48 = vmul.f32 2.0, %v4795_v30  ;;  %v4944_v1 = vmul.f32 2.0, %v2203_v11  ;;  %v2305_v50 = vadd.f32 1e-09, %v2273_v4  ;;  %v5370_v47 = vand.u32 2147483648, %v4605_v63 }
 0x1c1   :  { %v4941_v53 = vsel %vm5369_vm13, %v5368_v22, %v2235_v3  ;;  %v2261_v46 = vmul.f32 %v2731_v41, %v4676_v62  ;;  %vm2262_vm15 = vcmp.eq.f32.partialorder %v4676_v62, inf  ;;  %v2290_v36 = vmul.f32 2.0, %v2210_v12  ;;  %v5373_v3 = vld [vmem:[#allocation33_spill] sm:$0xff]  ;;  %v5377_v22 = vld [vmem:[#allocation40_spill] sm:$0xff] }
 0x1c2   :  { %v4950_v17 = vsel %vm2243_vm12, %v5370_v47, %v2242_v57  ;;  %v2306_v15 = vadd.f32 1e-09, %v2274_v10  ;;  %v5371_v7 = vand.u32 2147483648, %v4625_v6  ;;  %v2256_v4 = vsel %vm2255_vm11, %v4670_v44, %v2254_v20  ;;  %v5374_v20 = vld [vmem:[#allocation35_spill] sm:$0xff] }
 0x1c3   :  { %v2307_v11 = vadd.f32 1e-09, %v2275_v29  ;;  %v2308_v63 = vadd.f32 1e-09, %v2276_v0  ;;  %vm2257_vm0 = vcmp.eq.f32.partialorder %v4670_v44, 0.0  ;;  %v4965_v23 = vmul.f32 %v5372_v40, %v2303_v27  ;;  %v5375_v27 = vld [vmem:[#allocation36_spill] sm:$0xff] }
 0x1c4   :  { %v4958_v30 = vsel %vm2250_vm14, %v5371_v7, %v2249_v56  ;;  %v4968_v12 = vmul.f32 %v5373_v3, %v2304_v35  ;;  %v2459_v10 = vadd.f32 %v4932_v8, %v4926_v58  ;;  %v2474_v6 = vadd.f32 %v4935_v37, %v4929_v59  ;;  %v5379_v40 = vld [vmem:[#allocation45_spill] sm:$0xff] }
 0x1c5   :  { %v2291_v57 = vmul.f32 2.0, %v2217_v14  ;;  %v2309_v41 = vadd.f32 1e-09, %v2277_v51  ;;  %v2310_v56 = vadd.f32 1e-09, %v2278_v38  ;;  %v4975_v29 = vmul.f32 %v5374_v20, %v2305_v50  ;;  %v5376_v14 = vld [vmem:[#allocation39_spill] sm:$0xff] }
 0x1c6   :  { %vm2264_vm1 = vcmp.eq.f32.partialorder %v4676_v62, 0.0  ;;  %v2389_v0 = vadd.f32 1e-09, %v4595_v49  ;;  %v4980_v54 = vmul.f32 %v5375_v27, %v2306_v15  ;;  %v2460_v35 = vadd.f32 %v2459_v10, %v4965_v23 }
 0x1c7   :  { %v2475_v45 = vadd.f32 %v2474_v6, %v4968_v12  ;;  %v2311_v19 = vadd.f32 1e-09, %v4860_v2  ;;  %v2312_v16 = vadd.f32 1e-09, %v2280_v9  ;;  %v4986_v51 = vmul.f32 %v5376_v14, %v2307_v11  ;;  %v5378_v9 = vld [vmem:[#allocation44_spill] sm:$0xff]  ;;  %v5380_v6 = vld [vmem:[#allocation49_spill] sm:$0xff] }
 0x1c8   :  { %2732 = vrcp.f32 %v4587_v32  ;;  %v2391_v38 = vadd.f32 1e-09, %v4616_v28  ;;  %v4991_v50 = vmul.f32 %v5377_v22, %v2308_v63  ;;  %v2461_v49 = vadd.f32 %v2460_v35, %v4975_v29  ;;  %v5383_v35 = vld [vmem:[#allocation55_spill] sm:$0xff] }
 0x1c9   :  { %v2476_v47 = vadd.f32 %v2475_v45, %v4980_v54  ;;  %v2313_v15 = vadd.f32 1e-09, %v4867_v21  ;;  %v2314_v7 = vadd.f32 1e-09, %v4870_v42  ;;  %v2393_v2 = vadd.f32 1e-09, %v4678_v31 }
 0x1ca   :  { %v4999_v11 = vmul.f32 %v5378_v9, %v2309_v41  ;;  %v5002_v32 = vmul.f32 %v5379_v40, %v2310_v56  ;;  %2734 = vrcp.f32 %v2389_v0  ;;  %v2462_v28 = vadd.f32 %v2461_v49, %v4986_v51  ;;  %v5381_v31 = vld [vmem:[#allocation50_spill] sm:$0xff]  ;;  %v5385_v22 = vld [vmem:[#allocation59_spill] sm:$0xff] }
 0x1cb   :  { %v2477_v63 = vadd.f32 %v2476_v47, %v4991_v50  ;;  %v2292_v3 = vmul.f32 2.0, %v2224_v33  ;;  %v2315_v10 = vadd.f32 1e-09, %v4873_v52  ;;  %v2316_v21 = vadd.f32 1e-09, %v4888_v60  ;;  %v5382_v60 = vld [vmem:[#allocation54_spill] sm:$0xff] }
 0x1cc   :  { %v5009_v42 = vmul.f32 %v5380_v6, %v2311_v19  ;;  %v5012_v20 = vmul.f32 %v5381_v31, %v2312_v16  ;;  %2736 = vrcp.f32 %v2391_v38  ;;  %v2463_v41 = vadd.f32 %v2462_v28, %v4999_v11  ;;  %v5386_v47 = vld [vmem:[#allocation14_spill] sm:$0xff]  ;;  %v5389_v28 = vld [vmem:[#allocation67_spill] sm:$0xff] }
 0x1cd   :  { %v2478_v56 = vadd.f32 %v2477_v63, %v5002_v32  ;;  %v2263_v0 = vsel %vm2262_vm15, %v4676_v62, %v2261_v46  ;;  %v2317_v33 = vadd.f32 1e-09, %v4902_v61  ;;  %v2318_v52 = vadd.f32 1e-09, %v4905_v43 }
 0x1ce   :  { %v5022_v27 = vmul.f32 %v5382_v60, %v2313_v15  ;;  %v5025_v45 = vmul.f32 %v5383_v35, %v2314_v7  ;;  %2738 = vrcp.f32 %v2393_v2  ;;  %v2464_v19 = vadd.f32 %v2463_v41, %v5009_v42 }
 0x1cf   :  { %v2479_v16 = vadd.f32 %v2478_v56, %v5012_v20  ;;  %v5384_v14 = vand.u32 2147483648, %v4670_v44  ;;  %v2293_v61 = vmul.f32 2.0, %v4911_v5  ;;  %v2319_v43 = vadd.f32 1e-09, %v4919_v13  ;;  %v5390_v56 = vld [vmem:[#allocation69_spill] sm:$0xff] }
 0x1d0   :  { %v2320_v38 = vadd.f32 1e-09, %v2288_v48  ;;  %v5036_v49 = vmul.f32 %v5385_v22, %v2315_v10  ;;  %v5039_v15 = vmul.f32 %v5386_v47, %v2316_v21  ;;  %v2465_v7 = vadd.f32 %v2464_v19, %v5022_v27 }
 0x1d1   :  { %v2259_v46 = vsel %vm2257_vm0, %v5384_v14, %v2256_v4  ;;  %v2480_v2 = vadd.f32 %v2479_v16, %v5025_v45  ;;  %v5387_v9 = vand.u32 2147483648, %v4676_v62  ;;  %v2294_v5 = vmul.f32 2.0, %v4941_v53  ;;  %v5388_v4 = vld [vmem:[#allocation64_spill] sm:$0xff] }
 0x1d2   :  { %v2321_v13 = vadd.f32 1e-09, %v4944_v1  ;;  %v2322_v48 = vadd.f32 1e-09, %v2290_v36  ;;  %v5050_v40 = vmul.f32 %v5388_v4, %v2317_v33  ;;  %v5053_v63 = vmul.f32 %v5389_v28, %v2318_v52 }
 0x1d3   :  { %v2266_v44 = vsel %vm2264_vm1, %v5387_v9, %v2263_v0  ;;  %v2466_v10 = vadd.f32 %v2465_v7, %v5036_v49  ;;  %v2481_v21 = vadd.f32 %v2480_v2, %v5039_v15  ;;  %v2295_v6 = vmul.f32 2.0, %v4950_v17 }
 0x1d4   :  { %v2296_v62 = vmul.f32 2.0, %v4958_v30  ;;  %v2323_v31 = vadd.f32 1e-09, %v2291_v57  ;;  %v2324_v41 = vadd.f32 1e-09, %v2292_v3  ;;  %v5060_v1 = vmul.f32 %v5390_v56, %v2319_v43 }
 0x1d5   :  { %v2733_v53 = vpop.eup %2732  ;;  %v5063_v36 = vmul.f32 %v4537_v34, %v2320_v38  ;;  %v2467_v0 = vadd.f32 %v2466_v10, %v5050_v40  ;;  %v2482_v33 = vadd.f32 %v2481_v21, %v5053_v63  ;;  %v2297_v52 = vmul.f32 2.0, %v2259_v46 }
 0x1d6   :  { %v2298_v60 = vmul.f32 2.0, %v2266_v44  ;;  %v2325_v35 = vadd.f32 1e-09, %v2293_v61  ;;  %v2326_v19 = vadd.f32 1e-09, %v2294_v5  ;;  %v5068_v17 = vmul.f32 %v4544_v25, %v2321_v13 }
 0x1d7   :  { %v5071_v30 = vmul.f32 %v4623_v26, %v2322_v48  ;;  %v2468_v57 = vadd.f32 %v2467_v0, %v5060_v1  ;;  %v2483_v3 = vadd.f32 %v2482_v33, %v5063_v36  ;;  %v2735_v34 = vpop.eup %2734  ;;  %v2327_v16 = vadd.f32 1e-09, %v2295_v6 }
 0x1d8   :  { %v2328_v14 = vadd.f32 1e-09, %v2296_v62  ;;  %v5075_v43 = vmul.f32 %v2733_v53, %v2323_v31  ;;  %v5078_v46 = vmul.f32 %v4668_v39, %v2324_v41  ;;  %v2329_v22 = vadd.f32 1e-09, %v2297_v52 }
 0x1d9   :  { %v2469_v61 = vadd.f32 %v2468_v57, %v5068_v17  ;;  %v2484_v25 = vadd.f32 %v2483_v3, %v5071_v30  ;;  %v2737_v38 = vpop.eup %2736  ;;  %v2330_v26 = vadd.f32 1e-09, %v2298_v60  ;;  %v5082_v47 = vmul.f32 %v2735_v34, %v2325_v35 }
 0x1da   :  { %v5085_v7 = vmul.f32 %v4684_v55, %v2326_v19  ;;  %v5089_v5 = vmul.f32 %v2737_v38, %v2327_v16  ;;  %v5092_v39 = vmul.f32 %v4720_v24, %v2328_v14 }
 0x1db   :  { %v2470_v2 = vadd.f32 %v2469_v61, %v5075_v43  ;;  %v2485_v9 = vadd.f32 %v2484_v25, %v5078_v46  ;;  %v2739_v44 = vpop.eup %2738  ;;  %v5099_v28 = vmul.f32 %v4757_v18, %v2330_v26 }
 0x1dc   :  { %v5096_v4 = vmul.f32 %v2739_v44, %v2329_v22 }
 0x1dd   :  { %v2471_v13 = vadd.f32 %v2470_v2, %v5082_v47  ;;  %v2486_v48 = vadd.f32 %v2485_v9, %v5085_v7 }
 0x1df   :  { %v2472_v55 = vadd.f32 %v2471_v13, %v5089_v5  ;;  %v2487_v10 = vadd.f32 %v2486_v48, %v5092_v39 }
 0x1e1   :  { %v2473_v21 = vadd.f32 %v2472_v55, %v5096_v4  ;;  %v2488_v6 = vadd.f32 %v2487_v10, %v5099_v28 }
 0x1e3   :  { %v2489_v62 = vadd.f32 %v2488_v6, %v2473_v21 }
 0x1e5   :  { %v2490_v24 = vrot.slane %v2489_v62, 4 }
 0x1e7   :  { %v2491_v31 = vadd.f32 %v2490_v24, %v2489_v62 }
 0x1e9   :  { %v2492_v41 = vrot.slane %v2491_v31, 2 }
 0x1eb   :  { %v2493_v53 = vadd.f32 %v2492_v41, %v2491_v31 }
 0x1ed   :  { %v2494_v56 = vrot.slane %v2493_v53, 1 }
 0x1ef   :  { %v2495_v0 = vadd.f32 %v2494_v56, %v2493_v53 }
 0x1f1   :  { %v5105_v33 = vmul.f32 0.00390625, %v2495_v0 }
 0x1f3   :  { %v2497_v18 = vsub.f32 %v4926_v58, %v5105_v33  ;;  %v2498_v52 = vsub.f32 %v4929_v59, %v5105_v33  ;;  %v2499_v60 = vsub.f32 %v4932_v8, %v5105_v33  ;;  %v2500_v35 = vsub.f32 %v4935_v37, %v5105_v33 }
 0x1f4   :  { %v2501_v19 = vsub.f32 %v4965_v23, %v5105_v33  ;;  %v2502_v57 = vsub.f32 %v4968_v12, %v5105_v33  ;;  %v2503_v58 = vsub.f32 %v4975_v29, %v5105_v33  ;;  %v2504_v59 = vsub.f32 %v4980_v54, %v5105_v33 }
 0x1f5   :  { %v2529_v3 = vmul.f32 %v2497_v18, %v2497_v18  ;;  %v2530_v34 = vmul.f32 %v2498_v52, %v2498_v52  ;;  %v2531_v16 = vmul.f32 %v2499_v60, %v2499_v60  ;;  %v2532_v14 = vmul.f32 %v2500_v35, %v2500_v35 }
 0x1f6   :  { %v2505_v8 = vsub.f32 %v4986_v51, %v5105_v33  ;;  %v2506_v37 = vsub.f32 %v4991_v50, %v5105_v33  ;;  %v2533_v23 = vmul.f32 %v2501_v19, %v2501_v19  ;;  %v2534_v61 = vmul.f32 %v2502_v57, %v2502_v57 }
 0x1f7   :  { %v2561_v25 = vadd.f32 %v2531_v16, %v2529_v3  ;;  %v2576_v12 = vadd.f32 %v2532_v14, %v2530_v34  ;;  %v2507_v38 = vsub.f32 %v4999_v11, %v5105_v33  ;;  %v2508_v22 = vsub.f32 %v5002_v32, %v5105_v33 }
 0x1f8   :  { %v2535_v29 = vmul.f32 %v2503_v58, %v2503_v58  ;;  %v2536_v26 = vmul.f32 %v2504_v59, %v2504_v59  ;;  %v2509_v51 = vsub.f32 %v5009_v42, %v5105_v33  ;;  %v2510_v50 = vsub.f32 %v5012_v20, %v5105_v33 }
 0x1f9   :  { %v2562_v2 = vadd.f32 %v2561_v25, %v2533_v23  ;;  %v2577_v54 = vadd.f32 %v2576_v12, %v2534_v61  ;;  %v2537_v9 = vmul.f32 %v2505_v8, %v2505_v8  ;;  %v2538_v44 = vmul.f32 %v2506_v37, %v2506_v37 }
 0x1fa   :  { %v2511_v11 = vsub.f32 %v5022_v27, %v5105_v33  ;;  %v2512_v32 = vsub.f32 %v5025_v45, %v5105_v33  ;;  %v2539_v55 = vmul.f32 %v2507_v38, %v2507_v38  ;;  %v2540_v10 = vmul.f32 %v2508_v22, %v2508_v22 }
 0x1fb   :  { %v2563_v13 = vadd.f32 %v2562_v2, %v2535_v29  ;;  %v2578_v48 = vadd.f32 %v2577_v54, %v2536_v26  ;;  %v2513_v42 = vsub.f32 %v5036_v49, %v5105_v33  ;;  %v2514_v20 = vsub.f32 %v5039_v15, %v5105_v33 }
 0x1fc   :  { %v2541_v62 = vmul.f32 %v2509_v51, %v2509_v51  ;;  %v2542_v24 = vmul.f32 %v2510_v50, %v2510_v50  ;;  %v2515_v27 = vsub.f32 %v5050_v40, %v5105_v33  ;;  %v2516_v45 = vsub.f32 %v5053_v63, %v5105_v33 }
 0x1fd   :  { %v2564_v21 = vadd.f32 %v2563_v13, %v2537_v9  ;;  %v2579_v6 = vadd.f32 %v2578_v48, %v2538_v44  ;;  %v2543_v53 = vmul.f32 %v2511_v11, %v2511_v11  ;;  %v2544_v56 = vmul.f32 %v2512_v32, %v2512_v32 }
 0x1fe   :  { %v2517_v49 = vsub.f32 %v5060_v1, %v5105_v33  ;;  %v2518_v15 = vsub.f32 %v5063_v36, %v5105_v33  ;;  %v2545_v52 = vmul.f32 %v2513_v42, %v2513_v42  ;;  %v2546_v60 = vmul.f32 %v2514_v20, %v2514_v20 }
 0x1ff   :  { %v2565_v31 = vadd.f32 %v2564_v21, %v2539_v55  ;;  %v2580_v41 = vadd.f32 %v2579_v6, %v2540_v10  ;;  %v2519_v40 = vsub.f32 %v5068_v17, %v5105_v33  ;;  %v2520_v63 = vsub.f32 %v5071_v30, %v5105_v33 }
 0x200   :  { %v2547_v57 = vmul.f32 %v2515_v27, %v2515_v27  ;;  %v2548_v3 = vmul.f32 %v2516_v45, %v2516_v45  ;;  %v2521_v1 = vsub.f32 %v5075_v43, %v5105_v33  ;;  %v2522_v36 = vsub.f32 %v5078_v46, %v5105_v33 }
 0x201   :  { %v2566_v0 = vadd.f32 %v2565_v31, %v2541_v62  ;;  %v2581_v18 = vadd.f32 %v2580_v41, %v2542_v24  ;;  %v2549_v14 = vmul.f32 %v2517_v49, %v2517_v49  ;;  %v2550_v58 = vmul.f32 %v2518_v15, %v2518_v15 }
 0x202   :  { %v2523_v17 = vsub.f32 %v5082_v47, %v5105_v33  ;;  %v2524_v30 = vsub.f32 %v5085_v7, %v5105_v33  ;;  %v2551_v37 = vmul.f32 %v2519_v40, %v2519_v40  ;;  %v2552_v23 = vmul.f32 %v2520_v63, %v2520_v63 }
 0x203   :  { %v2567_v35 = vadd.f32 %v2566_v0, %v2543_v53  ;;  %v2582_v19 = vadd.f32 %v2581_v18, %v2544_v56  ;;  %v2525_v43 = vsub.f32 %v5089_v5, %v5105_v33  ;;  %v2526_v46 = vsub.f32 %v5092_v39, %v5105_v33 }
 0x204   :  { %v2553_v12 = vmul.f32 %v2521_v1, %v2521_v1  ;;  %v2554_v38 = vmul.f32 %v2522_v36, %v2522_v36  ;;  %v2527_v47 = vsub.f32 %v5096_v4, %v5105_v33  ;;  %v2528_v7 = vsub.f32 %v5099_v28, %v5105_v33 }
 0x205   :  { %v2568_v34 = vadd.f32 %v2567_v35, %v2545_v52  ;;  %v2583_v16 = vadd.f32 %v2582_v19, %v2546_v60  ;;  %v2555_v26 = vmul.f32 %v2523_v17, %v2523_v17  ;;  %v2556_v2 = vmul.f32 %v2524_v30, %v2524_v30 }
 0x206   :  { %v2557_v50 = vmul.f32 %v2525_v43, %v2525_v43  ;;  %v2558_v9 = vmul.f32 %v2526_v46, %v2526_v46  ;;  %v2559_v13 = vmul.f32 %v2527_v47, %v2527_v47  ;;  %v2560_v39 = vmul.f32 %v2528_v7, %v2528_v7 }
 0x207   :  { %v2569_v59 = vadd.f32 %v2568_v34, %v2547_v57  ;;  %v2584_v8 = vadd.f32 %v2583_v16, %v2548_v3 }
 0x209   :  { %v2570_v61 = vadd.f32 %v2569_v59, %v2549_v14  ;;  %v2585_v25 = vadd.f32 %v2584_v8, %v2550_v58 }
 0x20b   :  { %v2571_v22 = vadd.f32 %v2570_v61, %v2551_v37  ;;  %v2586_v29 = vadd.f32 %v2585_v25, %v2552_v23 }
 0x20d   :  { %v2572_v54 = vadd.f32 %v2571_v22, %v2553_v12  ;;  %v2587_v51 = vadd.f32 %v2586_v29, %v2554_v38 }
 0x20f   :  { %v2573_v5 = vadd.f32 %v2572_v54, %v2555_v26  ;;  %v2588_v44 = vadd.f32 %v2587_v51, %v2556_v2 }
 0x211   :  { %v2574_v48 = vadd.f32 %v2573_v5, %v2557_v50  ;;  %v2589_v11 = vadd.f32 %v2588_v44, %v2558_v9 }
 0x213   :  { %v2575_v32 = vadd.f32 %v2574_v48, %v2559_v13  ;;  %v2590_v55 = vadd.f32 %v2589_v11, %v2560_v39 }
 0x215   :  { %v2591_v10 = vadd.f32 %v2590_v55, %v2575_v32 }
 0x217   :  { %v2592_v21 = vrot.slane %v2591_v10, 4 }
 0x219   :  { %v2593_v4 = vadd.f32 %v2592_v21, %v2591_v10 }
 0x21b   :  { %v2594_v6 = vrot.slane %v2593_v4, 2 }
 0x21d   :  { %v2595_v42 = vadd.f32 %v2594_v6, %v2593_v4 }
 0x21f   :  { %v2596_v28 = vrot.slane %v2595_v42, 1 }
 0x221   :  { %v2597_v33 = vadd.f32 %v2596_v28, %v2595_v42 }
 0x223   :  { %v2598_v20 = vmul.f32 0.003921569, %v2597_v33 }
 0x225   :  { %2740 = vrsqrt.f32 %v2598_v20  ;;  %vm2601_vm2 = vcmp.eq.f32.partialorder %v2598_v20, inf  ;;  %v2604_v31 = vand.u32 2147483648, %v2598_v20  ;;  %vm2603_vm3 = vcmp.eq.f32.partialorder %v2598_v20, 0.0 }
 0x232   :  { %v2741_v62 = vpop.eup %2740 }
 0x233   :  { %v2600_v24 = vmul.f32 %v2741_v62, %v2598_v20 }
 0x235   :  { %v2602_v41 = vsel %vm2601_vm2, %v2598_v20, %v2600_v24 }
 0x236   :  { %v2605_v27 = vsel %vm2603_vm3, %v2604_v31, %v2602_v41 }
 0x237   :  { %2606 = vst [vmem:[%s5176_s2] sm:$0x1] %v2605_v27 }

</bundles_post_ra>
